<compile_context>
chip_gen: v7x
topology: tpu7x:2x2x1
jax: 0.10.0
libtpu: 0.0.40
codegen_flags: <defaults>
</compile_context>

<pallas_src>
import functools

import jax
import jax.numpy as jnp
from jax.experimental import pallas as pl
from jax.experimental.pallas import tpu as pltpu


def _round_up(x, m):
    return ((x + m - 1) // m) * m


# ----------------------------------------------------------------------------
# Fused kernel.  Per (b, s_tile):
#   gather TILE_S token rows from the resident embed table into a VMEM tile,
#   hidden = x_tile @ W_eff   (bf16 in, f32 MXU acc),
#   acc[b] += sum_rows(hidden).
# At the last s_tile:
#   pooled = acc / S ; y = LayerNorm(pooled) ; out[b] = y @ fcW + fcB
# ----------------------------------------------------------------------------
def fused_kernel(ids_ref,            # SMEM [B, S] int32     (scalar prefetch)
                 embed_ref,          # VMEM [V, H] f32       (resident table)
                 w_ref,              # VMEM [H, H] bf16      (merged LoRA q_proj)
                 gamma_ref,          # VMEM [1, H] f32
                 beta_ref,           # VMEM [1, H] f32
                 fcw_ref,            # VMEM [H, C_pad] bf16
                 fcb_ref,            # VMEM [1, C_pad] f32
                 o_ref,              # VMEM [1, 1, C_pad] f32
                 x_scratch,          # VMEM [TILE_S, H] f32  (gathered tile)
                 acc_ref,            # VMEM [1, H] f32       (pool accumulator)
                 *, seq_len, tile_s, eps):
    b = pl.program_id(0)
    s = pl.program_id(1)

    @pl.when(s == 0)
    def _init():
        acc_ref[...] = jnp.zeros_like(acc_ref)

    start = s * tile_s
    n_valid = jnp.minimum(tile_s, seq_len - start)

    # Zero-fill only when this tile has padding rows (the last partial tile).
    # Zero rows project to zero, so they contribute nothing to the pooled sum.
    @pl.when(n_valid < tile_s)
    def _zero_pad():
        x_scratch[...] = jnp.zeros_like(x_scratch)

    # Fused embedding gather: copy each valid token's row from the resident
    # f32 table into the x tile (dynamic-row load + store, f32 layout).
    def _fill_row(i, carry):
        tok = ids_ref[b, start + i]
        x_scratch[pl.ds(i, 1), :] = embed_ref[pl.ds(tok, 1), :]
        return carry

    jax.lax.fori_loop(0, n_valid, _fill_row, 0)

    # Merged-LoRA projection: bf16 operands, f32 MXU accumulation.
    hidden = jnp.dot(x_scratch[...].astype(jnp.bfloat16), w_ref[...],
                     preferred_element_type=jnp.float32)          # [TILE_S, H]
    acc_ref[...] += jnp.sum(hidden, axis=0, keepdims=True)        # [1, H]

    @pl.when(s == pl.num_programs(1) - 1)
    def _finalize():
        pooled = acc_ref[...] * (1.0 / seq_len)                   # mean over S
        mu = jnp.mean(pooled, axis=-1, keepdims=True)
        centered = pooled - mu
        var = jnp.mean(centered * centered, axis=-1, keepdims=True)
        normed = centered * jax.lax.rsqrt(var + eps) * gamma_ref[...] + beta_ref[...]
        logits = jnp.dot(normed.astype(jnp.bfloat16), fcw_ref[...],
                         preferred_element_type=jnp.float32) + fcb_ref[...]
        o_ref[0] = logits                                         # [1, C_pad]


def fused_forward(input_ids, embed, w_eff_bf16, gamma, beta, fcw_bf16, fcb,
                  *, n_classes, tile_s=None):
    """input_ids: [B, S] int32.  Returns logits [B, n_classes] float32."""
    B, S = input_ids.shape
    V, H = embed.shape
    C_pad = fcw_bf16.shape[1]

    if tile_s is None:
        tile_s = min(512, _round_up(S, 16))     # amortize ~0.35us per grid step
    tile_s = max(16, _round_up(tile_s, 16))     # bf16 sublane alignment
    num_s = pl.cdiv(S, tile_s)

    kernel = functools.partial(fused_kernel, seq_len=S, tile_s=tile_s, eps=1e-5)
    invariant = lambda b, s, ids: (0, 0)        # grid-invariant operands

    out = pl.pallas_call(
        kernel,
        out_shape=jax.ShapeDtypeStruct((B, 1, C_pad), jnp.float32),
        grid_spec=pltpu.PrefetchScalarGridSpec(
            num_scalar_prefetch=1,              # input_ids -> SMEM
            grid=(B, num_s),
            in_specs=[
                pl.BlockSpec((V, H), invariant, pipeline_mode=pl.Buffered(1)),
                pl.BlockSpec((H, H), invariant, pipeline_mode=pl.Buffered(1)),
                pl.BlockSpec((1, H), invariant, pipeline_mode=pl.Buffered(1)),
                pl.BlockSpec((1, H), invariant, pipeline_mode=pl.Buffered(1)),
                pl.BlockSpec((H, C_pad), invariant, pipeline_mode=pl.Buffered(1)),
                pl.BlockSpec((1, C_pad), invariant, pipeline_mode=pl.Buffered(1)),
            ],
            out_specs=pl.BlockSpec((1, 1, C_pad), lambda b, s, ids: (b, 0, 0)),
            scratch_shapes=[
                pltpu.VMEM((tile_s, H), jnp.float32),   # gathered x tile
                pltpu.VMEM((1, H), jnp.float32),        # pooling accumulator
            ],
        ),
        # TODO(synk): on v7x (2 TensorCores) with B == 1 / odd B this
        # batch-parallel split leaves a core idle; per-core partial pooling
        # accumulators over the sequence axis would be needed for balance.
        compiler_params=pltpu.CompilerParams(
            dimension_semantics=("parallel", "arbitrary")),
    )(input_ids.astype(jnp.int32), embed, w_eff_bf16, gamma, beta,
      fcw_bf16, fcb)

    return out[:, 0, :n_classes]                                   # [B, n_classes]


# ----------------------------------------------------------------------------
# One-time weight preparation (hoisted out of the per-call forward path).
# ----------------------------------------------------------------------------
def prepare_inference_params(params):
    H = params["q_wt"].shape[0]
    C = params["fc1_wt"].shape[1]
    C_pad = 128    # lane-dense head output tile; sliced back to C in the wrapper

    # Merge LoRA into the base weight (forward-equivalent; lora_dropout is a
    # no-op at inference) and cast once to bf16 for the MXU.  NOTE: bf16
    # rounds the small adapter delta slightly; accumulation stays f32.
    w_eff = params["q_wt"] + params["lora_scale"] * (
        params["lora_at"] @ params["lora_bt"])

    fcw_pad = jnp.zeros((H, C_pad), jnp.bfloat16)
    fcw_pad = fcw_pad.at[:, :C].set(params["fc1_wt"].astype(jnp.bfloat16))
    fcb_pad = jnp.zeros((1, C_pad), jnp.float32).at[0, :C].set(params["fc1_b"])

    return dict(
        # TODO(synk): embed table kept f32-resident in VMEM (vocab=64 here);
        # a realistic vocab needs a pl.Element / manual-DMA row gather instead.
        embed=params["embed"].astype(jnp.float32),
        w_eff_bf16=w_eff.astype(jnp.bfloat16),
        gamma=params["ln_gamma"].reshape(1, H).astype(jnp.float32),
        beta=params["ln_beta"].reshape(1, H).astype(jnp.float32),
        fcw_bf16=fcw_pad,
        fcb=fcb_pad,
        n_classes=C,
    )


def qwen_lora_4_forward(input_ids, prep):
    return fused_forward(input_ids, prep["embed"], prep["w_eff_bf16"],
                         prep["gamma"], prep["beta"], prep["fcw_bf16"],
                         prep["fcb"], n_classes=prep["n_classes"])


def init_params(key, vocab=64, H=1024, r=8, n_classes=4):
    ks = jax.random.split(key, 6)
    embed = jax.random.normal(ks[0], (vocab, H), jnp.float32) * 0.02
    # base q_proj weight (stored transposed: [H_in, H_out])
    q_wt = jax.random.normal(ks[1], (H, H), jnp.float32) * (1.0 / jnp.sqrt(H))
    # LoRA A ~ normal, B = 0 in PEFT; use small nonzero B so the path matters.
    lora_at = jax.random.normal(ks[2], (H, r), jnp.float32) * 0.02   # A^T
    lora_bt = jax.random.normal(ks[3], (r, H), jnp.float32) * 0.02   # B^T
    lora_scale = 2.0   # lora_alpha / r = (2*r)/r
    ln_gamma = jnp.ones((H,), jnp.float32)
    ln_beta = jnp.zeros((H,), jnp.float32)
    fc1_wt = jax.random.normal(ks[4], (H, n_classes), jnp.float32) * 0.02
    fc1_b = jax.random.normal(ks[5], (n_classes,), jnp.float32) * 0.01
    return dict(embed=embed, q_wt=q_wt, lora_at=lora_at, lora_bt=lora_bt,
                lora_scale=lora_scale, ln_gamma=ln_gamma, ln_beta=ln_beta,
                fc1_wt=fc1_wt, fc1_b=fc1_b)


if __name__ == "__main__":
    B, S, H, vocab, C = 2, 8, 1024, 64, 4
    key = jax.random.PRNGKey(0)
    k_ids, k_params = jax.random.split(key)
    input_ids = jax.random.randint(k_ids, (B, S), 0, vocab, dtype=jnp.int32)
    params = init_params(k_params, vocab=vocab, H=H, n_classes=C)

    prep = prepare_inference_params(params)    # hoisted: once per weight update
    out = qwen_lora_4_forward(input_ids, prep)
    out = jax.block_until_ready(out)

    # --- plain-JAX reference with the same bf16-in / f32-acc matmuls --------
    x = jnp.take(prep["embed"], input_ids, axis=0)                 # [B, S, H] f32
    hid = jnp.einsum("bsh,hk->bsk", x.astype(jnp.bfloat16), prep["w_eff_bf16"],
                     preferred_element_type=jnp.float32)
    pooled = jnp.mean(hid, axis=1)
    mu = jnp.mean(pooled, -1, keepdims=True)
    var = jnp.mean((pooled - mu) ** 2, -1, keepdims=True)
    normed = (pooled - mu) * jax.lax.rsqrt(var + 1e-5) * params["ln_gamma"] \
        + params["ln_beta"]
    ref = jnp.dot(normed.astype(jnp.bfloat16), prep["fcw_bf16"],
                  preferred_element_type=jnp.float32)[:, :C] + params["fc1_b"]

    assert out.shape == (B, C), out.shape
    assert jnp.allclose(out, ref, atol=1e-2, rtol=1e-2), (out, ref)
    print("KERNEL_OK")
</pallas_src>

<mosaic_0001>
module attributes {stable_mosaic.version = 11 : i64} {
  func.func @fused_kernel(%arg0: i32, %arg1: i32, %arg2: memref<2x8xi32, #tpu.memory_space<smem>>, %arg3: memref<64x1024xf32, #tpu.memory_space<vmem>>, %arg4: memref<1024x1024xbf16, #tpu.memory_space<vmem>>, %arg5: memref<1x1024xf32, #tpu.memory_space<vmem>>, %arg6: memref<1x1024xf32, #tpu.memory_space<vmem>>, %arg7: memref<1024x128xbf16, #tpu.memory_space<vmem>>, %arg8: memref<1x128xf32, #tpu.memory_space<vmem>>, %arg9: memref<1x1x128xf32, #tpu.memory_space<vmem>>, %arg10: memref<16x1024xf32, #tpu.memory_space<vmem>>, %arg11: memref<1x1024xf32, #tpu.memory_space<vmem>>) attributes {dimension_semantics = [#tpu.dimension_semantics<parallel>, #tpu.dimension_semantics<arbitrary>], iteration_bounds = array<i64: 2, 1>, scalar_prefetch = 1 : i64, scratch_operands = 2 : i64, tpu.core_type = #tpu.core_type<tc>, window_params = [{pipeline_mode = #tpu.pipeline_mode<synchronous>, transform_indices = @transform_0, window_bounds = array<i64: 64, 1024>}, {pipeline_mode = #tpu.pipeline_mode<synchronous>, transform_indices = @transform_1, window_bounds = array<i64: 1024, 1024>}, {pipeline_mode = #tpu.pipeline_mode<synchronous>, transform_indices = @transform_2, window_bounds = array<i64: 1, 1024>}, {pipeline_mode = #tpu.pipeline_mode<synchronous>, transform_indices = @transform_3, window_bounds = array<i64: 1, 1024>}, {pipeline_mode = #tpu.pipeline_mode<synchronous>, transform_indices = @transform_4, window_bounds = array<i64: 1024, 128>}, {pipeline_mode = #tpu.pipeline_mode<synchronous>, transform_indices = @transform_5, window_bounds = array<i64: 1, 128>}, {transform_indices = @transform_6, window_bounds = array<i64: 1, 1, 128>}]} {
    %c0_i32 = arith.constant 0 : i32
    %0 = arith.cmpi eq, %arg1, %c0_i32 : i32
    %1 = arith.extui %0 : i1 to i32
    %c0_i32_0 = arith.constant 0 : i32
    %2 = arith.cmpi ne, %1, %c0_i32_0 : i32
    scf.if %2 {
      %cst_16 = arith.constant 0.000000e+00 : f32
      %23 = vector.broadcast %cst_16 : f32 to vector<1x1024xf32>
      %c0_17 = arith.constant 0 : index
      %c0_18 = arith.constant 0 : index
      %24 = vector.load %arg11[%c0_17, %c0_18] : memref<1x1024xf32, #tpu.memory_space<vmem>>, vector<1x1024xf32>
      tpu.vector_store %arg11[%c0_17, %c0_18], %23 {strides = array<i32>} : memref<1x1024xf32, #tpu.memory_space<vmem>>, vector<1x1024xf32>,
    } else {
    }
    %c16_i32 = arith.constant 16 : i32
    %3 = arith.muli %arg1, %c16_i32 : i32
    %c8_i32 = arith.constant 8 : i32
    %4 = arith.subi %c8_i32, %3 : i32
    %c16_i32_1 = arith.constant 16 : i32
    %5 = arith.minsi %c16_i32_1, %4 : i32
    %c16_i32_2 = arith.constant 16 : i32
    %6 = arith.cmpi slt, %5, %c16_i32_2 : i32
    %7 = arith.extui %6 : i1 to i32
    %c0_i32_3 = arith.constant 0 : i32
    %8 = arith.cmpi ne, %7, %c0_i32_3 : i32
    scf.if %8 {
      %cst_16 = arith.constant 0.000000e+00 : f32
      %23 = vector.broadcast %cst_16 : f32 to vector<16x1024xf32>
      %c0_17 = arith.constant 0 : index
      %c0_18 = arith.constant 0 : index
      %24 = vector.load %arg10[%c0_17, %c0_18] : memref<16x1024xf32, #tpu.memory_space<vmem>>, vector<16x1024xf32>
      tpu.vector_store %arg10[%c0_17, %c0_18], %23 {strides = array<i32>} : memref<16x1024xf32, #tpu.memory_space<vmem>>, vector<16x1024xf32>,
    } else {
    }
    %c0_i32_4 = arith.constant 0 : i32
    %c0_i32_5 = arith.constant 0 : i32
    %9 = arith.subi %5, %c0_i32_5 : i32
    %10 = arith.addi %c0_i32_5, %9 : i32
    %c1_i32 = arith.constant 1 : i32
    scf.for %arg12 = %c0_i32_5 to %10 step %c1_i32  : i32 {
      %23 = arith.addi %3, %arg12 : i32
      %24 = arith.index_cast %arg0 : i32 to index
      %25 = arith.index_cast %23 : i32 to index
      %26 = memref.load %arg2[%24, %25] : memref<2x8xi32, #tpu.memory_space<smem>>
      %27 = arith.index_cast %26 : i32 to index
      %c0_16 = arith.constant 0 : index
      %28 = vector.load %arg3[%27, %c0_16] : memref<64x1024xf32, #tpu.memory_space<vmem>>, vector<1x1024xf32>
      %29 = arith.index_cast %arg12 : i32 to index
      %c0_17 = arith.constant 0 : index
      %30 = vector.load %arg10[%29, %c0_17] : memref<16x1024xf32, #tpu.memory_space<vmem>>, vector<1x1024xf32>
      tpu.vector_store %arg10[%29, %c0_17], %28 {strides = array<i32>} : memref<16x1024xf32, #tpu.memory_space<vmem>>, vector<1x1024xf32>,
    }
    %c0 = arith.constant 0 : index
    %c0_6 = arith.constant 0 : index
    %11 = vector.load %arg10[%c0, %c0_6] : memref<16x1024xf32, #tpu.memory_space<vmem>>, vector<16x1024xf32>
    %12 = arith.truncf %11 : vector<16x1024xf32> to vector<16x1024xbf16>
    %c0_7 = arith.constant 0 : index
    %c0_8 = arith.constant 0 : index
    %13 = vector.load %arg4[%c0_7, %c0_8] : memref<1024x1024xbf16, #tpu.memory_space<vmem>>, vector<1024x1024xbf16>
    %cst = arith.constant dense<0.000000e+00> : vector<16x1024xf32>
    %14 = tpu.matmul %12, %13, %cst {dimension_numbers = #tpu.dot_dimension_numbers<[1], [0], [0], [1], [0, 0, 1, 1], [], []>} : vector<16x1024xbf16>, vector<1024x1024xbf16>, vector<16x1024xf32> -> vector<16x1024xf32>
    %c0_9 = arith.constant 0 : index
    %c0_10 = arith.constant 0 : index
    %15 = vector.load %arg11[%c0_9, %c0_10] : memref<1x1024xf32, #tpu.memory_space<vmem>>, vector<1x1024xf32>
    %cst_11 = arith.constant dense<0.000000e+00> : vector<1024xf32>
    %16 = vector.multi_reduction <add>, %14, %cst_11 [0] : vector<16x1024xf32> to vector<1024xf32>
    %17 = vector.shape_cast %16 : vector<1024xf32> to vector<1x1024xf32>
    %18 = arith.addf %15, %17 : vector<1x1024xf32>
    %c0_12 = arith.constant 0 : index
    %c0_13 = arith.constant 0 : index
    %19 = vector.load %arg11[%c0_12, %c0_13] : memref<1x1024xf32, #tpu.memory_space<vmem>>, vector<1x1024xf32>
    tpu.vector_store %arg11[%c0_12, %c0_13], %18 {strides = array<i32>} : memref<1x1024xf32, #tpu.memory_space<vmem>>, vector<1x1024xf32>,
    %c0_i32_14 = arith.constant 0 : i32
    %20 = arith.cmpi eq, %arg1, %c0_i32_14 : i32
    %21 = arith.extui %20 : i1 to i32
    %c0_i32_15 = arith.constant 0 : i32
    %22 = arith.cmpi ne, %21, %c0_i32_15 : i32
    scf.if %22 {
      %c0_16 = arith.constant 0 : index
      %c0_17 = arith.constant 0 : index
      %23 = vector.load %arg11[%c0_16, %c0_17] : memref<1x1024xf32, #tpu.memory_space<vmem>>, vector<1x1024xf32>
      %cst_18 = arith.constant 1.250000e-01 : f32
      %24 = vector.broadcast %cst_18 : f32 to vector<1x1024xf32>
      %25 = arith.mulf %23, %24 : vector<1x1024xf32>
      %cst_19 = arith.constant dense<0.000000e+00> : vector<1xf32>
      %26 = vector.multi_reduction <add>, %25, %cst_19 [1] : vector<1x1024xf32> to vector<1xf32>
      %27 = vector.shape_cast %26 : vector<1xf32> to vector<1x1xf32>
      %cst_20 = arith.constant 1.024000e+03 : f32
      %28 = vector.broadcast %cst_20 : f32 to vector<1x1xf32>
      %29 = arith.divf %27, %28 : vector<1x1xf32>
      %30 = vector.broadcast %29 : vector<1x1xf32> to vector<1x1024xf32>
      %31 = arith.subf %25, %30 : vector<1x1024xf32>
      %32 = arith.mulf %31, %31 : vector<1x1024xf32>
      %cst_21 = arith.constant dense<0.000000e+00> : vector<1xf32>
      %33 = vector.multi_reduction <add>, %32, %cst_21 [1] : vector<1x1024xf32> to vector<1xf32>
      %34 = vector.shape_cast %33 : vector<1xf32> to vector<1x1xf32>
      %cst_22 = arith.constant 1.024000e+03 : f32
      %35 = vector.broadcast %cst_22 : f32 to vector<1x1xf32>
      %36 = arith.divf %34, %35 : vector<1x1xf32>
      %cst_23 = arith.constant 9.99999974E-6 : f32
      %37 = vector.broadcast %cst_23 : f32 to vector<1x1xf32>
      %38 = arith.addf %36, %37 : vector<1x1xf32>
      %39 = math.rsqrt %38 : vector<1x1xf32>
      %40 = vector.broadcast %39 : vector<1x1xf32> to vector<1x1024xf32>
      %41 = arith.mulf %31, %40 : vector<1x1024xf32>
      %c0_24 = arith.constant 0 : index
      %c0_25 = arith.constant 0 : index
      %42 = vector.load %arg5[%c0_24, %c0_25] : memref<1x1024xf32, #tpu.memory_space<vmem>>, vector<1x1024xf32>
      %43 = arith.mulf %41, %42 : vector<1x1024xf32>
      %c0_26 = arith.constant 0 : index
      %c0_27 = arith.constant 0 : index
      %44 = vector.load %arg6[%c0_26, %c0_27] : memref<1x1024xf32, #tpu.memory_space<vmem>>, vector<1x1024xf32>
      %45 = arith.addf %43, %44 : vector<1x1024xf32>
      %46 = arith.truncf %45 : vector<1x1024xf32> to vector<1x1024xbf16>
      %c0_28 = arith.constant 0 : index
      %c0_29 = arith.constant 0 : index
      %47 = vector.load %arg7[%c0_28, %c0_29] : memref<1024x128xbf16, #tpu.memory_space<vmem>>, vector<1024x128xbf16>
      %cst_30 = arith.constant dense<0.000000e+00> : vector<1x128xf32>
      %48 = tpu.matmul %46, %47, %cst_30 {dimension_numbers = #tpu.dot_dimension_numbers<[1], [0], [0], [1], [0, 0, 1, 1], [], []>} : vector<1x1024xbf16>, vector<1024x128xbf16>, vector<1x128xf32> -> vector<1x128xf32>
      %c0_31 = arith.constant 0 : index
      %c0_32 = arith.constant 0 : index
      %49 = vector.load %arg8[%c0_31, %c0_32] : memref<1x128xf32, #tpu.memory_space<vmem>>, vector<1x128xf32>
      %50 = arith.addf %48, %49 : vector<1x128xf32>
      %c0_33 = arith.constant 0 : index
      %c0_34 = arith.constant 0 : index
      %c0_35 = arith.constant 0 : index
      %51 = vector.load %arg9[%c0_33, %c0_34, %c0_35] : memref<1x1x128xf32, #tpu.memory_space<vmem>>, vector<1x1x128xf32>
      %52 = vector.shape_cast %51 : vector<1x1x128xf32> to vector<1x128xf32>
      %53 = vector.shape_cast %50 : vector<1x128xf32> to vector<1x1x128xf32>
      tpu.vector_store %arg9[%c0_33, %c0_34, %c0_35], %53 {strides = array<i32>} : memref<1x1x128xf32, #tpu.memory_space<vmem>>, vector<1x1x128xf32>,
    } else {
    }
    return
  }
  func.func @transform_0(%arg0: i32, %arg1: i32, %arg2: memref<2x8xi32, #tpu.memory_space<smem>>) -> (i32, i32) {
    %c0_i32 = arith.constant 0 : i32
    %c0_i32_0 = arith.constant 0 : i32
    %c0_i32_1 = arith.constant 0 : i32
    return %c0_i32, %c0_i32_0 : i32, i32
  }
  func.func @transform_1(%arg0: i32, %arg1: i32, %arg2: memref<2x8xi32, #tpu.memory_space<smem>>) -> (i32, i32) {
    %c0_i32 = arith.constant 0 : i32
    %c0_i32_0 = arith.constant 0 : i32
    %c0_i32_1 = arith.constant 0 : i32
    return %c0_i32, %c0_i32_0 : i32, i32
  }
  func.func @transform_2(%arg0: i32, %arg1: i32, %arg2: memref<2x8xi32, #tpu.memory_space<smem>>) -> (i32, i32) {
    %c0_i32 = arith.constant 0 : i32
    %c0_i32_0 = arith.constant 0 : i32
    %c0_i32_1 = arith.constant 0 : i32
    return %c0_i32, %c0_i32_0 : i32, i32
  }
  func.func @transform_3(%arg0: i32, %arg1: i32, %arg2: memref<2x8xi32, #tpu.memory_space<smem>>) -> (i32, i32) {
    %c0_i32 = arith.constant 0 : i32
    %c0_i32_0 = arith.constant 0 : i32
    %c0_i32_1 = arith.constant 0 : i32
    return %c0_i32, %c0_i32_0 : i32, i32
  }
  func.func @transform_4(%arg0: i32, %arg1: i32, %arg2: memref<2x8xi32, #tpu.memory_space<smem>>) -> (i32, i32) {
    %c0_i32 = arith.constant 0 : i32
    %c0_i32_0 = arith.constant 0 : i32
    %c0_i32_1 = arith.constant 0 : i32
    return %c0_i32, %c0_i32_0 : i32, i32
  }
  func.func @transform_5(%arg0: i32, %arg1: i32, %arg2: memref<2x8xi32, #tpu.memory_space<smem>>) -> (i32, i32) {
    %c0_i32 = arith.constant 0 : i32
    %c0_i32_0 = arith.constant 0 : i32
    %c0_i32_1 = arith.constant 0 : i32
    return %c0_i32, %c0_i32_0 : i32, i32
  }
  func.func @transform_6(%arg0: i32, %arg1: i32, %arg2: memref<2x8xi32, #tpu.memory_space<smem>>) -> (i32, i32, i32) {
    %c0_i32 = arith.constant 0 : i32
    %c0_i32_0 = arith.constant 0 : i32
    %c0_i32_1 = arith.constant 0 : i32
    return %arg0, %c0_i32, %c0_i32_0 : i32, i32, i32
  }
}

</mosaic_0001>

<bundles_post_ra>
// kernel: tpu_custom_call.1
= control target key start
LH: loop header
LB: loop body
LE: loop exit
PB: predicated region body
PF: predicated region fallthrough
CT: control target
= control target key end

     0   :  { %s7016_s0 = inlined_call_operand.hbm [shape: s32[2,8], index: 0, kind: input, shape index: {}]   ;;  %s7017_s1 = inlined_call_operand.hbm [shape: f32[64,1024], index: 1, kind: input, shape index: {}]   ;;  %s7018_s2 = inlined_call_operand.hbm [shape: bf16[1024,1024], index: 2, kind: input, shape index: {}]   ;;  %s7019_s3 = inlined_call_operand.hbm [shape: f32[1,1024], index: 3, kind: input, shape index: {}]   ;;  %s7020_s4 = inlined_call_operand.hbm [shape: f32[1,1024], index: 4, kind: input, shape index: {}]   ;;  %s7021_s5 = inlined_call_operand.hbm [shape: bf16[1024,128], index: 5, kind: input, shape index: {}]   ;;  %s7022_s6 = inlined_call_operand.hbm [shape: f32[1,128], index: 6, kind: input, shape index: {}]   ;;  %s7023_s7 = inlined_call_operand.hbm [shape: f32[2,1,128], index: 7, kind: output, shape index: {}]  }
   0x1   :  { %7031 = sst [smem:[#allocation27_spill]] %s7018_s2  ;;  %s6235_s26 = scalar_lea.hbm %s7016_s0, 32 }
   0x2   :  { %p6236_p0 = scmp.ne.s32.totalorder %s7016_s0, %s6235_s26  ;;  %p6239_p1 = scmp.lt.u32.totalorder %s6235_s26, %s7016_s0 }
   0x4   :  { %p6241_p2 = pnand %p6239_p1, %p6236_p0 }
   0x6   :  { %6244 = shalt.err (!%p6241_p2)  }
   0x7   :  { %s6519_s8 = smov [#allocation5]  }
   0x8   :  { %13 = dma.hbm_to_smem %s7016_s0, 32, %s6519_s8, [#allocation4] }
   0x9   :  { %6469 = dma.done.wait [#allocation4], 32 }
   0xa   :  { %6470 = vsyncadd [#allocation4], 4294967264 }
   0xb   :  { %15 = sfence }
   0xc   :  { %16 = vsyncpa [#allocation7], 0 }
   0xd   :  { %17 = vsyncpa [#allocation10], 0 }
   0xe   :  { %18 = vsyncpa [#allocation13], 0 }
   0xf   :  { %19 = vsyncpa [#allocation16], 0 }
  0x10   :  { %20 = vsyncpa [#allocation8], 0 }
  0x11   :  { %22 = vsyncpa [#allocation8 + $0x1], 0  ;;  %s6586_s11 = smov 0   ;;  %s6588_s12 = smov 0  }
  0x12   :  { %s6590_s13 = smov 0   ;;  %s6592_s14 = smov 0  }
  0x13   :  { %s6594_s15 = smov 0   ;;  %s6596_s0 = smov 0  }
  0x14 LB: > { %7032 = sst [smem:[#allocation24_spill]] %s6509_s15  ;;  %s5299_s16 = sadd.s32 4294967295, %s6513_s0   ;;  %s6513_s0 = sphi %s6596_s0, %s28_s0   ;;  %s6509_s15 = sphi %s6594_s15, %s7049_s15   ;;  %s6505_s14 = sphi %s6592_s14, %s7048_s14   ;;  %s6501_s13 = sphi %s6590_s13, %s7052_s13   ;;  %s6497_s12 = sphi %s6588_s12, %s7051_s12   ;;  %s6493_s11 = sphi %s6586_s11, %s7050_s11  }
  0x15   : > { %s5300_s17 = sadd.s32 4294967294, %s6513_s0   ;;  %s40_s18 = sadd.s32 1, %s6509_s15 }
  0x16   : > { %s173_s19 = sadd.s32 1, %s6501_s13  ;;  %p42_p3 = scmp.ge.s32.totalorder %s40_s18, 2 }
  0x17   : > { %p183_p4 = scmp.ne.s32.totalorder %s6501_s13, %s6497_s12  ;;  %p184_p5 = scmp.eq.s32.totalorder %s5299_s16, 1 }
  0x18   : > { %p189_p6 = scmp.ne.s32.totalorder %s6497_s12, %s6493_s11  ;;  %s7054_s18 = smov (%p42_p3, %s40_s18), 0 }
  0x19   : > { %7033 = sst [smem:[#allocation25_spill]] %s7054_s18  ;;  %p6626_p7 = por %p184_p5, %p183_p4 }
  0x1a   : > { %p190_p8 = scmp.eq.s32.totalorder %s5300_s17, 1  ;;  %s170_s21 = ssub.s32 %s6509_s15, %s7054_s18 }
  0x1b   : > { %s7034_s20 = scalar_select %p6626_p7, 1, 0 }
  0x1c   : > { %p5301_p9 = scmp.ge.s32.totalorder %s6513_s0, 1  ;;  %p171_p10 = scmp.eq.s32.totalorder %s170_s21, 0 }
  0x1d   : > { %p6633_p11 = por %p190_p8, %p189_p6  ;;  %p197_p12 = scmp.lt.s32.totalorder %s6513_s0, 3 }
  0x1e   : > { %s6639_s23 = scalar_select %p171_p10, %s6501_s13, %s173_s19  }
  0x1f   : > { %s7035_s22 = scalar_select %p6633_p11, 1, 0 }
  0x20   : > { %7036 = sst [smem:[#allocation26_spill]] %s6639_s23  ;;  %p6641_p13 = pnand %p5301_p9, %p197_p12 }
  0x21   : > { %p6645_p0 = scmp.eq.s32.totalorder %s5299_s16, 0  ;;  %s6520_s26 = smov [#allocation9]  }
  0x22   : > { %s7037_s24 = scalar_select %p6641_p13, 1, 0 }
  0x23   : > { %s7038_s25 = scalar_select %p6645_p0, 1, 0 }
  0x24   : > { %p6063_p1 = pneg %p6641_p13  ;;  %s222_s27 = sshll.u32 %s6520_s26, 4  ;;  %s223_s27 = int_to_ptr.vmem [resolvable:$true] %s222_s27 }
  0x25   : > { %s6521_s29 = smov [#allocation12]   ;;  %s7040_s2 = sld [smem:[#allocation27_spill]] }
  0x26   : > { %p6653_p2 = pnand %p6645_p0, %p6063_p1  ;;  %s247_s30 = sshll.u32 %s6521_s29, 4  ;;  %s6657_s30 = int_to_ptr.vmem [resolvable:$true] %s247_s30 }
  0x28   : > { %p6667_p4 = pneg %p6653_p2 }
  0x2b   : > { %s6245_s10 = scalar_lea.hbm %s7040_s2, 65536 }
  0x2c   : > { %p6246_p3 = scmp.ne.s32.totalorder %s7040_s2, %s6245_s10  ;;  %p6252_p8 = scmp.lt.u32.totalorder %s6245_s10, %s7040_s2 }
  0x2e   : > { %p6248_p5 = pnand %p6667_p4, %p6246_p3 }
  0x30   : > { %p6249_p6 = pneg %p6248_p5 }
  0x32   : > { %p6254_p9 = pnand %p6252_p8, %p6249_p6 }
  0x34   : > { %6257 = shalt.err (!%p6254_p9)
}
  0x35   : > { %s6258_s29 = scalar_lea.vmem %s223_s27, 65536  ;;  %p6266_p11 = scmp.lt.s32.totalorder %s223_s27, %s223_s27 }
  0x36   : > { %p6259_p10 = scmp.ne.s32.totalorder %s223_s27, %s6258_s29  ;;  %p6267_p7 = scmp.lt.s32.totalorder %s6258_s29, %s6258_s29 }
  0x38   : > { %p6261_p12 = pnand %p6259_p10, %p6667_p4  ;;  %p6268_p0 = por %p6267_p7, %p6266_p11 }
  0x3a   : > { %p6262_p1 = pneg %p6261_p12 }
  0x3c   : > { %p6269_p13 = pnand %p6268_p0, %p6262_p1 }
  0x3e   : > { %6272 = shalt.err (!%p6269_p13)
}
  0x3f   : > { %s6522_s8 = smov 512   ;;  %s6523_s9 = smov 32  }
  0x40   : > { %6069 = dma.hbm_to_vmem [thread:$0]  (!%p6653_p2), %s7040_s2, 65536, %s223_s27, [#allocation10], %s6522_s8, %s6522_s8, %s6523_s9  }
  0x41   : > { %s6273_s26 = scalar_lea.hbm %s7020_s4, 128 }
  0x42   : > { %p6274_p3 = scmp.ne.s32.totalorder %s7020_s4, %s6273_s26  ;;  %p6280_p13 = scmp.lt.u32.totalorder %s6273_s26, %s7020_s4 }
  0x44   : > { %p6276_p7 = pnand %p6274_p3, %p6667_p4 }
  0x46   : > { %p6277_p11 = pneg %p6276_p7 }
  0x48   : > { %p6282_p0 = pnand %p6280_p13, %p6277_p11 }
  0x4a   : > { %6285 = shalt.err (!%p6282_p0)
}
  0x4b   : > { %s6286_s27 = scalar_lea.vmem %s6657_s30, 128  ;;  %p6294_p9 = scmp.lt.s32.totalorder %s6657_s30, %s6657_s30 }
  0x4c   : > { %p6287_p5 = scmp.ne.s32.totalorder %s6657_s30, %s6286_s27  ;;  %p6295_p10 = scmp.lt.s32.totalorder %s6286_s27, %s6286_s27 }
  0x4e   : > { %p6289_p6 = pnand %p6287_p5, %p6667_p4  ;;  %p6296_p12 = por %p6295_p10, %p6294_p9 }
  0x50   : > { %p6290_p8 = pneg %p6289_p6 }
  0x52   : > { %p6297_p1 = pnand %p6296_p12, %p6290_p8 }
  0x54   : > { %6300 = shalt.err (!%p6297_p1)
}
  0x55   : > { %6075 = dma.hbm_to_vmem [thread:$0]  (!%p6653_p2), %s7020_s4, 128, %s6657_s30, [#allocation13]  }
  0x56   : > { %s6524_s23 = smov [#allocation6]   ;;  %s6301_s10 = scalar_lea.hbm %s7017_s1, 8192 }
  0x57   : > { %s209_s8 = sshll.u32 %s6524_s23, 4  ;;  %p6302_p3 = scmp.ne.s32.totalorder %s7017_s1, %s6301_s10  ;;  %s210_s8 = int_to_ptr.vmem [resolvable:$true] %s209_s8 }
  0x58   : > { %p6308_p13 = scmp.lt.u32.totalorder %s6301_s10, %s7017_s1 }
  0x59   : > { %p6304_p7 = pnand %p6302_p3, %p6667_p4 }
  0x5b   : > { %p6305_p11 = pneg %p6304_p7 }
  0x5d   : > { %p6310_p0 = pnand %p6308_p13, %p6305_p11 }
  0x5f   : > { %6313 = shalt.err (!%p6310_p0)
}
  0x60   : > { %s6314_s30 = scalar_lea.vmem %s210_s8, 8192  ;;  %p6322_p9 = scmp.lt.s32.totalorder %s210_s8, %s210_s8 }
  0x61   : > { %p6315_p5 = scmp.ne.s32.totalorder %s210_s8, %s6314_s30  ;;  %p6323_p10 = scmp.lt.s32.totalorder %s6314_s30, %s6314_s30 }
  0x63   : > { %p6317_p6 = pnand %p6315_p5, %p6667_p4  ;;  %p6324_p12 = por %p6323_p10, %p6322_p9 }
  0x65   : > { %p6318_p8 = pneg %p6317_p6 }
  0x67   : > { %p6325_p1 = pnand %p6324_p12, %p6318_p8 }
  0x69   : > { %6328 = shalt.err (!%p6325_p1)
}
  0x6a   : > { %s6525_s27 = smov 1024   ;;  %s6526_s15 = smov 64  }
  0x6b   : > { %6066 = dma.hbm_to_vmem [thread:$0]  (!%p6653_p2), %s7017_s1, 8192, %s210_s8, [#allocation7], %s6525_s27, %s6525_s27, %s6526_s15  }
  0x6c   : > { %s6527_s9 = smov [#allocation11]   ;;  %s6528_s10 = smov [#allocation14]  }
  0x6d   : > { %s236_s16 = sshll.u32 %s6527_s9, 4  ;;  %s257_s17 = sshll.u32 %s6528_s10, 4  ;;  %s237_s16 = int_to_ptr.vmem [resolvable:$true] %s236_s16  ;;  %s6725_s17 = int_to_ptr.vmem [resolvable:$true] %s257_s17 }
  0x6e   : > { %s6329_s29 = scalar_lea.hbm %s7019_s3, 128 }
  0x6f   : > { %p6330_p3 = scmp.ne.s32.totalorder %s7019_s3, %s6329_s29  ;;  %p6336_p13 = scmp.lt.u32.totalorder %s6329_s29, %s7019_s3 }
  0x71   : > { %p6332_p7 = pnand %p6330_p3, %p6667_p4 }
  0x73   : > { %p6333_p11 = pneg %p6332_p7 }
  0x75   : > { %p6338_p0 = pnand %p6336_p13, %p6333_p11 }
  0x77   : > { %6341 = shalt.err (!%p6338_p0)
}
  0x78   : > { %s6342_s27 = scalar_lea.vmem %s237_s16, 128  ;;  %p6350_p9 = scmp.lt.s32.totalorder %s237_s16, %s237_s16 }
  0x79   : > { %p6343_p5 = scmp.ne.s32.totalorder %s237_s16, %s6342_s27  ;;  %p6351_p10 = scmp.lt.s32.totalorder %s6342_s27, %s6342_s27 }
  0x7b   : > { %p6345_p6 = pnand %p6343_p5, %p6667_p4  ;;  %p6352_p12 = por %p6351_p10, %p6350_p9 }
  0x7d   : > { %p6346_p8 = pneg %p6345_p6 }
  0x7f   : > { %p6353_p1 = pnand %p6352_p12, %p6346_p8 }
  0x81   : > { %6356 = shalt.err (!%p6353_p1)
}
  0x82   : > { %6072 = dma.hbm_to_vmem [thread:$0]  (!%p6653_p2), %s7019_s3, 128, %s237_s16, [#allocation10]  }
  0x83   : > { %s6357_s21 = scalar_lea.hbm %s7021_s5, 8192 }
  0x84   : > { %p6358_p3 = scmp.ne.s32.totalorder %s7021_s5, %s6357_s21  ;;  %p6364_p13 = scmp.lt.u32.totalorder %s6357_s21, %s7021_s5 }
  0x86   : > { %p6360_p7 = pnand %p6358_p3, %p6667_p4 }
  0x88   : > { %p6361_p11 = pneg %p6360_p7 }
  0x8a   : > { %p6366_p0 = pnand %p6364_p13, %p6361_p11 }
  0x8c   : > { %6369 = shalt.err (!%p6366_p0)
}
  0x8d   : > { %s6370_s16 = scalar_lea.vmem %s6725_s17, 8192  ;;  %p6378_p9 = scmp.lt.s32.totalorder %s6725_s17, %s6725_s17 }
  0x8e   : > { %p6371_p5 = scmp.ne.s32.totalorder %s6725_s17, %s6370_s16  ;;  %p6379_p10 = scmp.lt.s32.totalorder %s6370_s16, %s6370_s16 }
  0x90   : > { %p6373_p6 = pnand %p6371_p5, %p6667_p4  ;;  %p6380_p12 = por %p6379_p10, %p6378_p9 }
  0x92   : > { %p6374_p8 = pneg %p6373_p6 }
  0x94   : > { %p6381_p1 = pnand %p6380_p12, %p6374_p8 }
  0x96   : > { %6384 = shalt.err (!%p6381_p1)
}
  0x97   : > { %s6529_s8 = smov 4   ;;  %s6530_s23 = smov [#allocation15]  }
  0x98   : > { %6078 = dma.hbm_to_vmem [thread:$0]  (!%p6653_p2), %s7021_s5, 8192, %s6725_s17, [#allocation13], %s6526_s15, %s6526_s15, %s6529_s8  }
  0x99   : > { %s271_s9 = sshll.u32 %s6530_s23, 4  ;;  %s6385_s26 = scalar_lea.hbm %s7022_s6, 16  ;;  %s272_s9 = int_to_ptr.vmem [resolvable:$true] %s271_s9 }
  0x9a   : > { %p6386_p3 = scmp.ne.s32.totalorder %s7022_s6, %s6385_s26  ;;  %p6392_p13 = scmp.lt.u32.totalorder %s6385_s26, %s7022_s6 }
  0x9c   : > { %p6388_p7 = pnand %p6386_p3, %p6667_p4 }
  0x9e   : > { %p6389_p11 = pneg %p6388_p7 }
  0xa0   : > { %p6394_p0 = pnand %p6392_p13, %p6389_p11 }
  0xa2   : > { %6397 = shalt.err (!%p6394_p0)
}
  0xa3   : > { %s6398_s15 = scalar_lea.vmem %s272_s9, 16  ;;  %s6405_s17 = scalar_lea.vmem %s272_s9, 32 }
  0xa4   : > { %p6399_p5 = scmp.ne.s32.totalorder %s272_s9, %s6398_s15  ;;  %p6406_p9 = scmp.lt.s32.totalorder %s272_s9, %s272_s9 }
  0xa5   : > { %p6407_p10 = scmp.lt.s32.totalorder %s6405_s17, %s6398_s15 }
  0xa6   : > { %p6401_p6 = pnand %p6399_p5, %p6667_p4 }
  0xa7   : > { %p6408_p12 = por %p6407_p10, %p6406_p9 }
  0xa8   : > { %p6402_p8 = pneg %p6401_p6 }
  0xaa   : > { %p6409_p1 = pnand %p6408_p12, %p6402_p8 }
  0xac   : > { %6412 = shalt.err (!%p6409_p1)
}
  0xad   : > { %6081 = dma.hbm_to_vmem [thread:$0]  (!%p6653_p2), %s7022_s6, 16, %s272_s9, [#allocation16]  }
  0xae   : > { %p7042_p3 = scmp.ne.s32.totalorder %s7037_s24, 0 }
  0xaf   : > { %p7043_p7 = scmp.ne.s32.totalorder (!%p7042_p3), %s7038_s25, 0 }
  0xb0   : > { %284 = sbr.rel (%p7042_p3) target bundleno = 1585 (0x631), region = 44 }
  0xb7   : > { %6472 = dma.done.wait (%p7043_p7), [#allocation7], 8192  }
  0xb8   : > { %6474 = vsyncadd (%p7043_p7), [#allocation7], 4294959104 }
  0xb9   : > { %6476 = dma.done.wait (%p7043_p7), [#allocation10], 65664  }
  0xba   : > { %6478 = vsyncadd (%p7043_p7), [#allocation10], 4294901632 }
  0xbb   : > { %6480 = dma.done.wait (%p7043_p7), [#allocation13], 8320  }
  0xbc   : > { %6482 = vsyncadd (%p7043_p7), [#allocation13], 4294958976 }
  0xbd   : > { %6484 = dma.done.wait (%p7043_p7), [#allocation16], 16  }
  0xbe   : > { %6486 = vsyncadd (%p7043_p7), [#allocation16], 4294967280  ;;  %s7030_s24 = sand.u32 1, %s6497_s12   ;;  %v6531_v0 = vmov 0.0   ;;  %s6515_s28 = smov 0  }
  0xbf   : > { %333 = vst [vmem:[#allocation3] sm:$0xff] %v6531_v0  ;;  %342 = vst [vmem:[#allocation2] sm:$0xff] %v6531_v0  ;;  %s6809_s25 = scalar_lea.vmem [#allocation17], %s7030_s24 }
  0xc0   : > { %343 = vst [vmem:[#allocation2 + $0x8] sm:$0xff] %v6531_v0  ;;  %344 = vst [vmem:[#allocation2 + $0x10] sm:$0xff] %v6531_v0 }
  0xc1   : > { %345 = vst [vmem:[#allocation2 + $0x18] sm:$0xff] %v6531_v0  ;;  %346 = vst [vmem:[#allocation2 + $0x20] sm:$0xff] %v6531_v0 }
  0xc2   : > { %347 = vst [vmem:[#allocation2 + $0x28] sm:$0xff] %v6531_v0  ;;  %348 = vst [vmem:[#allocation2 + $0x30] sm:$0xff] %v6531_v0 }
  0xc3   : > { %349 = vst [vmem:[#allocation2 + $0x38] sm:$0xff] %v6531_v0  ;;  %350 = vst [vmem:[#allocation2 + $0x40] sm:$0xff] %v6531_v0 }
  0xc4   : > { %351 = vst [vmem:[#allocation2 + $0x48] sm:$0xff] %v6531_v0  ;;  %352 = vst [vmem:[#allocation2 + $0x50] sm:$0xff] %v6531_v0 }
  0xc5   : > { %353 = vst [vmem:[#allocation2 + $0x58] sm:$0xff] %v6531_v0  ;;  %354 = vst [vmem:[#allocation2 + $0x60] sm:$0xff] %v6531_v0 }
  0xc6   : > { %355 = vst [vmem:[#allocation2 + $0x68] sm:$0xff] %v6531_v0  ;;  %356 = vst [vmem:[#allocation2 + $0x70] sm:$0xff] %v6531_v0 }
  0xc7   : > { %357 = vst [vmem:[#allocation2 + $0x78] sm:$0xff] %v6531_v0 }
  0xc8 LB: >> { %s365_s19 = sshra.s32 %s6517_s28, 7  ;;  %s370_s2 = sand.u32 127, %s6517_s28  ;;  %s6517_s28 = sphi %s6515_s28, %s361_s28  }
  0xc9   : >> { %s367_s23 = sadd.s32 %s6505_s14, %s365_s19  ;;  %s384_s21 = sshra.s32 %s6517_s28, 3 }
  0xca   : >> { %s5315_s9 = sshll.u32 %s367_s23, 7  ;;  %s387_s29 = sand.u32 7, %s6517_s28 }
  0xcb   : >> { %s371_s10 = sadd.s32 %s5315_s9, %s370_s2  ;;  %s5900_s30 = sshll.u32 %s384_s21, 6 }
  0xcc   : >> { %s372_s26 = sld [smem:[#allocation5 + %s371_s10]]  ;;  %s390_s18 = sadd.s32 %s5900_s30, %s387_s29 }
  0xcd   : >> { %s391_s24 = scalar_lea.vmem [#allocation2], %s390_s18  ;;  %s361_s28 = sadd.s32 1, %s6517_s28  }
  0xce   : >> { %p360_p2 = scmp.ge.s32.totalorder %s361_s28, 8 }
  0xcf   : > { %v418_v4 = vld [vmem:[#allocation9] sm:$0xff] (%p360_p2)  ;;  %v419_v6 = vld [vmem:[#allocation9 + $0x8] sm:$0xff] (%p360_p2)  ;;  %vm4341_vm0 = vcmask (%p360_p2), 1040384   ;;  %s5177_s28 = sshll.u32 (%p360_p2), %s6809_s25, 4  ;;  %s7044_s9 = sand.u32 (%p360_p2), 1, %s6497_s12   ;;  %s6968_s28 = int_to_ptr.vmem [resolvable:$true] %s5177_s28 }
  0xd0   : > { %v422_v5 = vld [vmem:[#allocation9 + $0x20] sm:$0xff] (%p360_p2)  ;;  %v423_v8 = vld [vmem:[#allocation9 + $0x28] sm:$0xff] (%p360_p2)  ;;  %s5165_s10 = scalar_lea.sflag (%p360_p2), [#allocation8], %s7044_s9  ;;  %s6413_s21 = scalar_lea.vmem (%p360_p2), %s6968_s28, 16 }
  0xd1   : > { %v5321_v7 = vcombine.high (%p360_p2), %v418_v4, %v422_v5  ;;  %v5320_v9 = vcombine.low (%p360_p2), %v418_v4, %v422_v5  ;;  %v426_v10 = vld [vmem:[#allocation9 + $0x40] sm:$0xff] (%p360_p2)  ;;  %v5323_v12 = vcombine.high (%p360_p2), %v419_v6, %v423_v8  ;;  %v5322_v13 = vcombine.low (%p360_p2), %v419_v6, %v423_v8  ;;  %v427_v15 = vld [vmem:[#allocation9 + $0x48] sm:$0xff] (%p360_p2)  ;;  %p6414_p4 = scmp.ne.s32.totalorder (%p360_p2), %s6968_s28, %s6413_s21  ;;  %p7045_p11 = scmp.ne.s32.totalorder (%p360_p2), %s7034_s20, 0 }
  0xd2   : >> { %s373_s16 = sshra.s32 %s372_s26, 3  ;;  %s376_s15 = sand.u32 7, %s372_s26  ;;  %v430_v11 = vld [vmem:[#allocation9 + $0x60] sm:$0xff] (%p360_p2)  ;;  %v431_v16 = vld [vmem:[#allocation9 + $0x68] sm:$0xff] (%p360_p2) }
  0xd3   : >> { %s5899_s17 = sshll.u32 %s373_s16, 6  ;;  %v5329_v14 = vcombine.high (%p360_p2), %v426_v10, %v430_v11  ;;  %v434_v17 = vld [vmem:[#allocation9 + $0x80] sm:$0xff] (%p360_p2)  ;;  %3490 = vmatprep.subr.bf16.mxu0 (%p360_p2), %v5321_v7  ;;  %v5331_v18 = vcombine.high (%p360_p2), %v427_v15, %v431_v16  ;;  %v435_v20 = vld [vmem:[#allocation9 + $0x88] sm:$0xff] (%p360_p2)  ;;  %3662 = vmatprep.subr.bf16.mxu1 (%p360_p2), %v5323_v12  ;;  %v5328_v22 = vcombine.low (%p360_p2), %v426_v10, %v430_v11  ;;  %p6415_p13 = pnand (%p360_p2), %p6414_p4, %p7045_p11 }
  0xd4   : >> { %s379_s8 = sadd.s32 %s5899_s17, %s376_s15  ;;  %363 = sbr.rel (!%p360_p2) target bundleno = 200 (0xc8), region = 122  ;;  %v438_v19 = vld [vmem:[#allocation9 + $0xa0] sm:$0xff] (%p360_p2)  ;;  %v439_v21 = vld [vmem:[#allocation9 + $0xa8] sm:$0xff] (%p360_p2)  ;;  %3491 = vmatpush1.bf16.msra.mxu0 (%p360_p2), %v5320_v9  ;;  %3663 = vmatpush1.bf16.msra.mxu1 (%p360_p2), %v5322_v13  ;;  %v5330_v23 = vcombine.low (%p360_p2), %v427_v15, %v431_v16 }
  0xd5   : >> { %s380_s27 = scalar_lea.vmem [#allocation6], %s379_s8  ;;  %3492 = vmatprep.subr.bf16.mxu0 (%p360_p2), %v5329_v14  ;;  %v5337_v24 = vcombine.high (%p360_p2), %v434_v17, %v438_v19  ;;  %3664 = vmatprep.subr.bf16.mxu1 (%p360_p2), %v5331_v18  ;;  %v5339_v25 = vcombine.high (%p360_p2), %v435_v20, %v439_v21  ;;  %v442_v26 = vld [vmem:[#allocation9 + $0xc0] sm:$0xff] (%p360_p2)  ;;  %v443_v28 = vld [vmem:[#allocation9 + $0xc8] sm:$0xff] (%p360_p2)  ;;  %v5336_v30 = vcombine.low (%p360_p2), %v434_v17, %v438_v19  ;;  %p6416_p0 = pneg (%p360_p2), %p6415_p13 }
  0xd6   : >> { %v381_v1 = vld [vmem:[%s380_s27] ss:$8 sm:$0xf]  ;;  %v5338_v31 = vcombine.low (%p360_p2), %v435_v20, %v439_v21 }
  0xd7   : >> { %v382_v2 = vld [vmem:[%s380_s27] ss:$8 sm:$0xf0] }
  0xd8   : >> { %v383_v3 = vor.u32 %v382_v2, %v381_v1  ;;  %v446_v27 = vld [vmem:[#allocation9 + $0xe0] sm:$0xff] (%p360_p2)  ;;  %v447_v29 = vld [vmem:[#allocation9 + $0xe8] sm:$0xff] (%p360_p2)  ;;  %3493 = vmatpush1.bf16.msra.mxu0 (%p360_p2), %v5328_v22  ;;  %3665 = vmatpush1.bf16.msra.mxu1 (%p360_p2), %v5330_v23 }
  0xd9   : > { %3494 = vmatprep.subr.bf16.mxu0 (%p360_p2), %v5337_v24  ;;  %v5345_v32 = vcombine.high (%p360_p2), %v442_v26, %v446_v27  ;;  %3666 = vmatprep.subr.bf16.mxu1 (%p360_p2), %v5339_v25  ;;  %v5347_v33 = vcombine.high (%p360_p2), %v443_v28, %v447_v29  ;;  %v450_v34 = vld [vmem:[#allocation9 + $0x100] sm:$0xff] (%p360_p2)  ;;  %v451_v36 = vld [vmem:[#allocation9 + $0x108] sm:$0xff] (%p360_p2)  ;;  %v5344_v38 = vcombine.low (%p360_p2), %v442_v26, %v446_v27 }
  0xda   : >> { %392 = vst [vmem:[%s391_s24] ss:$8 sm:$0xf] %v383_v3  ;;  %393 = vst [vmem:[%s391_s24] ss:$8 sm:$0xf0] %v383_v3  ;;  %v454_v35 = vld [vmem:[#allocation9 + $0x120] sm:$0xff] (%p360_p2)  ;;  %v455_v37 = vld [vmem:[#allocation9 + $0x128] sm:$0xff] (%p360_p2)  ;;  %v5346_v39 = vcombine.low (%p360_p2), %v443_v28, %v447_v29 }
  0xdb   : > { %v5353_v40 = vcombine.high %v450_v34, %v454_v35  ;;  %v5355_v41 = vcombine.high %v451_v36, %v455_v37  ;;  %v458_v42 = vld [vmem:[#allocation9 + $0x140] sm:$0xff]  ;;  %v459_v44 = vld [vmem:[#allocation9 + $0x148] sm:$0xff]  ;;  %v5352_v46 = vcombine.low %v450_v34, %v454_v35  ;;  %v5354_v47 = vcombine.low %v451_v36, %v455_v37  ;;  %s5896_s24 = sshll.u32 %s6505_s14, 4  ;;  %s6533_s14 = smov [#allocation17]  }
  0xdc   : > { %3495 = vmatpush1.bf16.msra.mxu0 %v5336_v30  ;;  %3667 = vmatpush1.bf16.msra.mxu1 %v5338_v31  ;;  %v462_v43 = vld [vmem:[#allocation9 + $0x160] sm:$0xff]  ;;  %v463_v45 = vld [vmem:[#allocation9 + $0x168] sm:$0xff]  ;;  %s6966_s23 = scalar_lea.hbm %s7023_s7, %s5896_s24  ;;  %s6417_s26 = sshll.u32 %s6533_s14, 4  ;;  %s6418_s26 = int_to_ptr.vmem [resolvable:$false] %s6417_s26 }
  0xdd   : > { %3496 = vmatprep.subr.bf16.mxu0 %v5345_v32  ;;  %3668 = vmatprep.subr.bf16.mxu1 %v5347_v33  ;;  %v5361_v48 = vcombine.high %v458_v42, %v462_v43  ;;  %v5363_v49 = vcombine.high %v459_v44, %v463_v45  ;;  %v466_v50 = vld [vmem:[#allocation9 + $0x180] sm:$0xff]  ;;  %v467_v52 = vld [vmem:[#allocation9 + $0x188] sm:$0xff]  ;;  %v5360_v54 = vcombine.low %v458_v42, %v462_v43  ;;  %s6419_s29 = scalar_lea.vmem %s6418_s26, 32  ;;  %p6420_p5 = scmp.lt.s32.totalorder %s6968_s28, %s6418_s26 }
  0xde   : > { %v470_v51 = vld [vmem:[#allocation9 + $0x1a0] sm:$0xff]  ;;  %v471_v53 = vld [vmem:[#allocation9 + $0x1a8] sm:$0xff]  ;;  %v5362_v55 = vcombine.low %v459_v44, %v463_v45  ;;  %p6421_p6 = scmp.lt.s32.totalorder %s6419_s29, %s6413_s21 }
  0xdf   : > { %v5369_v56 = vcombine.high %v466_v50, %v470_v51  ;;  %v5371_v59 = vcombine.high %v467_v52, %v471_v53  ;;  %v474_v60 = vld [vmem:[#allocation9 + $0x1c0] sm:$0xff]  ;;  %v475_v63 = vld [vmem:[#allocation9 + $0x1c8] sm:$0xff]  ;;  %v5368_v1 = vcombine.low %v466_v50, %v470_v51  ;;  %v5370_v2 = vcombine.low %v467_v52, %v471_v53 }
  0xe0   : > { %3497 = vmatpush1.bf16.msra.mxu0 %v5344_v38  ;;  %3669 = vmatpush1.bf16.msra.mxu1 %v5346_v39  ;;  %v478_v61 = vld [vmem:[#allocation9 + $0x1e0] sm:$0xff]  ;;  %v479_v0 = vld [vmem:[#allocation9 + $0x1e8] sm:$0xff]  ;;  %p6422_p8 = por %p6421_p6, %p6420_p5 }
  0xe1   : > { %3498 = vmatprep.subr.bf16.mxu0 %v5353_v40  ;;  %3670 = vmatprep.subr.bf16.mxu1 %v5355_v41  ;;  %v395_v57 = vld [vmem:[#allocation2 + $0x8] sm:$0xff]  ;;  %v5377_v3 = vcombine.high %v474_v60, %v478_v61  ;;  %v5379_v4 = vcombine.high %v475_v63, %v479_v0  ;;  %v483_v7 = vld [vmem:[#allocation9 + $0x208] sm:$0xff]  ;;  %v5376_v9 = vcombine.low %v474_v60, %v478_v61 }
  0xe2   : > { %v403_v58 = vld [vmem:[#allocation2 + $0x48] sm:$0xff]  ;;  %v487_v8 = vld [vmem:[#allocation9 + $0x228] sm:$0xff]  ;;  %v5378_v10 = vcombine.low %v475_v63, %v479_v0  ;;  %p6423_p9 = pnand %p6422_p8, %p6416_p0 }
  0xe3   : > { %v6812_v62 = vpack.c.bf16 %v403_v58, %v395_v57  ;;  %v482_v5 = vld [vmem:[#allocation9 + $0x200] sm:$0xff]  ;;  %v5387_v12 = vcombine.high %v483_v7, %v487_v8  ;;  %v491_v15 = vld [vmem:[#allocation9 + $0x248] sm:$0xff]  ;;  %v5386_v18 = vcombine.low %v483_v7, %v487_v8 }
  0xe4   : > { %3499 = vmatpush1.bf16.msra.mxu0 %v5352_v46  ;;  %3671 = vmatpush1.bf16.msra.mxu1 %v5354_v47  ;;  %v486_v6 = vld [vmem:[#allocation9 + $0x220] sm:$0xff]  ;;  %v495_v16 = vld [vmem:[#allocation9 + $0x268] sm:$0xff] }
  0xe5   : > { %3500 = vmatprep.subr.bf16.mxu0 %v5361_v48  ;;  %3672 = vmatprep.subr.bf16.mxu1 %v5363_v49  ;;  %v5385_v11 = vcombine.high %v482_v5, %v486_v6  ;;  %v490_v13 = vld [vmem:[#allocation9 + $0x240] sm:$0xff]  ;;  %v5384_v17 = vcombine.low %v482_v5, %v486_v6  ;;  %v5395_v20 = vcombine.high %v491_v15, %v495_v16  ;;  %v499_v23 = vld [vmem:[#allocation9 + $0x288] sm:$0xff] }
  0xe6   : > { %3522 = vmatprep.mubr.bf16.mxu0 %v6812_v62  ;;  %3694 = vmatprep.mubr.bf16.mxu1 %v6812_v62  ;;  %v494_v14 = vld [vmem:[#allocation9 + $0x260] sm:$0xff]  ;;  %v503_v24 = vld [vmem:[#allocation9 + $0x2a8] sm:$0xff]  ;;  %v5394_v26 = vcombine.low %v491_v15, %v495_v16 }
  0xe7   : > { %v5393_v19 = vcombine.high %v490_v13, %v494_v14  ;;  %v498_v21 = vld [vmem:[#allocation9 + $0x280] sm:$0xff]  ;;  %v5392_v25 = vcombine.low %v490_v13, %v494_v14  ;;  %v5403_v28 = vcombine.high %v499_v23, %v503_v24  ;;  %v507_v31 = vld [vmem:[#allocation9 + $0x2c8] sm:$0xff]  ;;  %v5402_v34 = vcombine.low %v499_v23, %v503_v24 }
  0xe8   : > { %3501 = vmatpush1.bf16.msra.mxu0 %v5360_v54  ;;  %3673 = vmatpush1.bf16.msra.mxu1 %v5362_v55  ;;  %v502_v22 = vld [vmem:[#allocation9 + $0x2a0] sm:$0xff]  ;;  %v511_v32 = vld [vmem:[#allocation9 + $0x2e8] sm:$0xff] }
  0xe9   : > { %3502 = vmatprep.subr.bf16.mxu0 %v5369_v56  ;;  %3674 = vmatprep.subr.bf16.mxu1 %v5371_v59  ;;  %v5401_v27 = vcombine.high %v498_v21, %v502_v22  ;;  %v506_v29 = vld [vmem:[#allocation9 + $0x2c0] sm:$0xff]  ;;  %v5400_v33 = vcombine.low %v498_v21, %v502_v22  ;;  %v5411_v36 = vcombine.high %v507_v31, %v511_v32  ;;  %v515_v39 = vld [vmem:[#allocation9 + $0x308] sm:$0xff]  ;;  %v397_v21 = vld [vmem:[#allocation2 + $0x18] sm:$0xff] }
  0xea   : > { %v510_v30 = vld [vmem:[#allocation9 + $0x2e0] sm:$0xff]  ;;  %v519_v40 = vld [vmem:[#allocation9 + $0x328] sm:$0xff]  ;;  %v5410_v42 = vcombine.low %v507_v31, %v511_v32  ;;  %v405_v22 = vld [vmem:[#allocation2 + $0x58] sm:$0xff] }
  0xeb   : > { %v5409_v35 = vcombine.high %v506_v29, %v510_v30  ;;  %v514_v37 = vld [vmem:[#allocation9 + $0x300] sm:$0xff]  ;;  %v5408_v41 = vcombine.low %v506_v29, %v510_v30  ;;  %v5419_v44 = vcombine.high %v515_v39, %v519_v40  ;;  %v523_v47 = vld [vmem:[#allocation9 + $0x348] sm:$0xff]  ;;  %v5418_v50 = vcombine.low %v515_v39, %v519_v40 }
  0xec   : > { %3503 = vmatpush1.bf16.msra.mxu0 %v5368_v1  ;;  %3675 = vmatpush1.bf16.msra.mxu1 %v5370_v2  ;;  %v518_v38 = vld [vmem:[#allocation9 + $0x320] sm:$0xff]  ;;  %v527_v48 = vld [vmem:[#allocation9 + $0x368] sm:$0xff]  ;;  %v6818_v29 = vpack.c.bf16 %v405_v22, %v397_v21 }
  0xed   : > { %3504 = vmatprep.subr.bf16.mxu0 %v5377_v3  ;;  %3676 = vmatprep.subr.bf16.mxu1 %v5379_v4  ;;  %v5417_v43 = vcombine.high %v514_v37, %v518_v38  ;;  %v522_v45 = vld [vmem:[#allocation9 + $0x340] sm:$0xff]  ;;  %v5416_v49 = vcombine.low %v514_v37, %v518_v38  ;;  %v5427_v52 = vcombine.high %v523_v47, %v527_v48  ;;  %v531_v55 = vld [vmem:[#allocation9 + $0x388] sm:$0xff] }
  0xee   : > { %v526_v46 = vld [vmem:[#allocation9 + $0x360] sm:$0xff]  ;;  %v535_v56 = vld [vmem:[#allocation9 + $0x3a8] sm:$0xff]  ;;  %v5426_v58 = vcombine.low %v523_v47, %v527_v48 }
  0xef   : > { %v5425_v51 = vcombine.high %v522_v45, %v526_v46  ;;  %v530_v53 = vld [vmem:[#allocation9 + $0x380] sm:$0xff]  ;;  %v5424_v57 = vcombine.low %v522_v45, %v526_v46  ;;  %v5435_v60 = vcombine.high %v531_v55, %v535_v56  ;;  %v539_v0 = vld [vmem:[#allocation9 + $0x3c8] sm:$0xff]  ;;  %v5434_v3 = vcombine.low %v531_v55, %v535_v56 }
  0xf0   : > { %3505 = vmatpush1.bf16.msra.mxu0 %v5376_v9  ;;  %3677 = vmatpush1.bf16.msra.mxu1 %v5378_v10  ;;  %v534_v54 = vld [vmem:[#allocation9 + $0x3a0] sm:$0xff]  ;;  %v543_v1 = vld [vmem:[#allocation9 + $0x3e8] sm:$0xff] }
  0xf1   : > { %3506 = vmatprep.subr.bf16.mxu0 %v5385_v11  ;;  %3678 = vmatprep.subr.bf16.mxu1 %v5387_v12  ;;  %v5433_v59 = vcombine.high %v530_v53, %v534_v54  ;;  %v538_v61 = vld [vmem:[#allocation9 + $0x3c0] sm:$0xff]  ;;  %v5432_v2 = vcombine.low %v530_v53, %v534_v54  ;;  %v5443_v5 = vcombine.high %v539_v0, %v543_v1  ;;  %v547_v8 = vld [vmem:[#allocation9 + $0x408] sm:$0xff]  ;;  %v394_v11 = vld [vmem:[#allocation2] sm:$0xff] }
  0xf2   : > { %v542_v63 = vld [vmem:[#allocation9 + $0x3e0] sm:$0xff]  ;;  %v551_v9 = vld [vmem:[#allocation9 + $0x428] sm:$0xff]  ;;  %v402_v12 = vld [vmem:[#allocation2 + $0x40] sm:$0xff]  ;;  %v5442_v13 = vcombine.low %v539_v0, %v543_v1 }
  0xf3   : > { %v5441_v4 = vcombine.high %v538_v61, %v542_v63  ;;  %v546_v6 = vld [vmem:[#allocation9 + $0x400] sm:$0xff]  ;;  %v5440_v10 = vcombine.low %v538_v61, %v542_v63  ;;  %v5451_v15 = vcombine.high %v547_v8, %v551_v9  ;;  %v5450_v24 = vcombine.low %v547_v8, %v551_v9  ;;  %v563_v30 = vld [vmem:[#allocation9 + $0x488] sm:$0xff] }
  0xf4   : > { %3507 = vmatpush1.bf16.msra.mxu0 %v5384_v17  ;;  %3679 = vmatpush1.bf16.msra.mxu1 %v5386_v18  ;;  %v550_v7 = vld [vmem:[#allocation9 + $0x420] sm:$0xff]  ;;  %v555_v18 = vld [vmem:[#allocation9 + $0x448] sm:$0xff] }
  0xf5   : > { %3508 = vmatprep.subr.bf16.mxu0 %v5393_v19  ;;  %3680 = vmatprep.subr.bf16.mxu1 %v5395_v20  ;;  %v5449_v14 = vcombine.high %v546_v6, %v550_v7  ;;  %v554_v16 = vld [vmem:[#allocation9 + $0x440] sm:$0xff]  ;;  %v6816_v19 = vpack.c.bf16 %v402_v12, %v394_v11  ;;  %v559_v20 = vld [vmem:[#allocation9 + $0x468] sm:$0xff]  ;;  %v5448_v23 = vcombine.low %v546_v6, %v550_v7 }
  0xf6   : > { %v558_v17 = vld [vmem:[#allocation9 + $0x460] sm:$0xff]  ;;  %v567_v31 = vld [vmem:[#allocation9 + $0x4a8] sm:$0xff] }
  0xf7   : > { %v5456_v32 = vcombine.low %v554_v16, %v558_v17  ;;  %v5467_v37 = vcombine.high %v563_v30, %v567_v31  ;;  %v571_v38 = vld [vmem:[#allocation9 + $0x4c8] sm:$0xff]  ;;  %v610_v12 = vld [vmem:[#allocation9 + $0x600] sm:$0xff] }
  0xf8   : > { %3509 = vmatpush1.bf16.msra.mxu0 %v5392_v25  ;;  %3681 = vmatpush1.bf16.msra.mxu1 %v5394_v26  ;;  %v5457_v25 = vcombine.high %v554_v16, %v558_v17  ;;  %v5459_v26 = vcombine.high %v555_v18, %v559_v20  ;;  %v575_v39 = vld [vmem:[#allocation9 + $0x4e8] sm:$0xff]  ;;  %v618_v21 = vld [vmem:[#allocation9 + $0x640] sm:$0xff] }
  0xf9   : > { %3510 = vmatprep.subr.bf16.mxu0 %v5401_v27  ;;  %3682 = vmatprep.subr.bf16.mxu1 %v5403_v28  ;;  %v562_v27 = vld [vmem:[#allocation9 + $0x480] sm:$0xff]  ;;  %v579_v45 = vld [vmem:[#allocation9 + $0x508] sm:$0xff]  ;;  %v5475_v46 = vcombine.high %v571_v38, %v575_v39 }
  0xfa   : > { %v566_v28 = vld [vmem:[#allocation9 + $0x4a0] sm:$0xff]  ;;  %v583_v47 = vld [vmem:[#allocation9 + $0x528] sm:$0xff] }
  0xfb   : > { %v5464_v40 = vcombine.low %v562_v27, %v566_v28  ;;  %v587_v53 = vld [vmem:[#allocation9 + $0x548] sm:$0xff]  ;;  %v5483_v54 = vcombine.high %v579_v45, %v583_v47  ;;  %v622_v22 = vld [vmem:[#allocation9 + $0x660] sm:$0xff] }
  0xfc   : > { %3511 = vmatpush1.bf16.msra.mxu0 %v5400_v33  ;;  %3683 = vmatpush1.bf16.msra.mxu1 %v5402_v34  ;;  %v5458_v33 = vcombine.low %v555_v18, %v559_v20  ;;  %v5465_v34 = vcombine.high %v562_v27, %v566_v28  ;;  %v591_v55 = vld [vmem:[#allocation9 + $0x568] sm:$0xff]  ;;  %v5521_v28 = vcombine.high %v618_v21, %v622_v22 }
  0xfd   : > { %3512 = vmatprep.subr.bf16.mxu0 %v5409_v35  ;;  %3684 = vmatprep.subr.bf16.mxu1 %v5411_v36  ;;  %v570_v35 = vld [vmem:[#allocation9 + $0x4c0] sm:$0xff]  ;;  %v595_v61 = vld [vmem:[#allocation9 + $0x588] sm:$0xff]  ;;  %v5491_v63 = vcombine.high %v587_v53, %v591_v55 }
  0xfe   : > { %v574_v36 = vld [vmem:[#allocation9 + $0x4e0] sm:$0xff]  ;;  %v599_v0 = vld [vmem:[#allocation9 + $0x5a8] sm:$0xff] }
  0xff   : > { %v5472_v48 = vcombine.low %v570_v35, %v574_v36  ;;  %v603_v6 = vld [vmem:[#allocation9 + $0x5c8] sm:$0xff]  ;;  %v5499_v7 = vcombine.high %v595_v61, %v599_v0 }
 0x100   : > { %3513 = vmatpush1.bf16.msra.mxu0 %v5408_v41  ;;  %3685 = vmatpush1.bf16.msra.mxu1 %v5410_v42  ;;  %v5466_v41 = vcombine.low %v563_v30, %v567_v31  ;;  %v5473_v42 = vcombine.high %v570_v35, %v574_v36  ;;  %v607_v8 = vld [vmem:[#allocation9 + $0x5e8] sm:$0xff]  ;;  %v626_v30 = vld [vmem:[#allocation9 + $0x680] sm:$0xff]  ;;  %v5520_v35 = vcombine.low %v618_v21, %v622_v22 }
 0x101   : > { %3514 = vmatprep.subr.bf16.mxu0 %v5417_v43  ;;  %3686 = vmatprep.subr.bf16.mxu1 %v5419_v44  ;;  %v578_v43 = vld [vmem:[#allocation9 + $0x500] sm:$0xff]  ;;  %v615_v16 = vld [vmem:[#allocation9 + $0x628] sm:$0xff]  ;;  %v5506_v18 = vcombine.low %v603_v6, %v607_v8 }
 0x102   : > { %v582_v44 = vld [vmem:[#allocation9 + $0x520] sm:$0xff]  ;;  %v396_v21 = vld [vmem:[#allocation2 + $0x10] sm:$0xff] }
 0x103   : > { %v5480_v56 = vcombine.low %v578_v43, %v582_v44  ;;  %v630_v31 = vld [vmem:[#allocation9 + $0x6a0] sm:$0xff]  ;;  %v404_v22 = vld [vmem:[#allocation2 + $0x50] sm:$0xff] }
 0x104   : > { %3515 = vmatpush1.bf16.msra.mxu0 %v5416_v49  ;;  %3687 = vmatpush1.bf16.msra.mxu1 %v5418_v50  ;;  %v5474_v49 = vcombine.low %v571_v38, %v575_v39  ;;  %v5481_v50 = vcombine.high %v578_v43, %v582_v44  ;;  %v634_v38 = vld [vmem:[#allocation9 + $0x6c0] sm:$0xff]  ;;  %v5528_v43 = vcombine.low %v626_v30, %v630_v31 }
 0x105   : > { %3516 = vmatprep.subr.bf16.mxu0 %v5425_v51  ;;  %3688 = vmatprep.subr.bf16.mxu1 %v5427_v52  ;;  %v586_v51 = vld [vmem:[#allocation9 + $0x540] sm:$0xff] }
 0x106   : > { %v590_v52 = vld [vmem:[#allocation9 + $0x560] sm:$0xff] }
 0x107   : > { %v5488_v1 = vcombine.low %v586_v51, %v590_v52  ;;  %v638_v39 = vld [vmem:[#allocation9 + $0x6e0] sm:$0xff] }
 0x108   : > { %3517 = vmatpush1.bf16.msra.mxu0 %v5424_v57  ;;  %3689 = vmatpush1.bf16.msra.mxu1 %v5426_v58  ;;  %v5482_v57 = vcombine.low %v579_v45, %v583_v47  ;;  %v5489_v58 = vcombine.high %v586_v51, %v590_v52  ;;  %v5537_v45 = vcombine.high %v634_v38, %v638_v39  ;;  %v646_v47 = vld [vmem:[#allocation9 + $0x720] sm:$0xff] }
 0x109   : > { %3518 = vmatprep.subr.bf16.mxu0 %v5433_v59  ;;  %3690 = vmatprep.subr.bf16.mxu1 %v5435_v60  ;;  %v594_v59 = vld [vmem:[#allocation9 + $0x580] sm:$0xff]  ;;  %v5536_v51 = vcombine.low %v634_v38, %v638_v39 }
 0x10a   : > { %v598_v60 = vld [vmem:[#allocation9 + $0x5a0] sm:$0xff] }
 0x10b   : > { %v5496_v9 = vcombine.low %v594_v59, %v598_v60  ;;  %v690_v38 = vld [vmem:[#allocation9 + $0x880] sm:$0xff] }
 0x10c   : > { %3519 = vmatpush1.bf16.msra.mxu0 %v5432_v2  ;;  %3691 = vmatpush1.bf16.msra.mxu1 %v5434_v3  ;;  %v5490_v2 = vcombine.low %v587_v53, %v591_v55  ;;  %v5497_v3 = vcombine.high %v594_v59, %v598_v60  ;;  %v654_v55 = vld [vmem:[#allocation9 + $0x760] sm:$0xff] }
 0x10d   : > { %3520 = vmatprep.subr.bf16.mxu0 %v5441_v4  ;;  %3692 = vmatprep.subr.bf16.mxu1 %v5443_v5  ;;  %v602_v4 = vld [vmem:[#allocation9 + $0x5c0] sm:$0xff] }
 0x10e   : > { %v606_v5 = vld [vmem:[#allocation9 + $0x5e0] sm:$0xff] }
 0x10f   : > { %v5505_v11 = vcombine.high %v602_v4, %v606_v5  ;;  %v5504_v17 = vcombine.low %v602_v4, %v606_v5 }
 0x110   : > { %3521 = vmatpush1.bf16.msra.mxu0 %v5440_v10  ;;  %3693 = vmatpush1.bf16.msra.mxu1 %v5442_v13  ;;  %v5498_v10 = vcombine.low %v595_v61, %v599_v0  ;;  %v614_v13 = vld [vmem:[#allocation9 + $0x620] sm:$0xff] }
 0x111   : > { %3533 = vmatprep.subr.bf16.mxu0 %v5449_v14  ;;  %3705 = vmatprep.subr.bf16.mxu1 %v5451_v15  ;;  %v611_v14 = vld [vmem:[#allocation9 + $0x608] sm:$0xff]  ;;  %v5507_v15 = vcombine.high %v603_v6, %v607_v8  ;;  %v5513_v20 = vcombine.high %v610_v12, %v614_v13  ;;  %v662_v0 = vld [vmem:[#allocation9 + $0x7a0] sm:$0xff] }
 0x112   : > { %v5514_v27 = vcombine.low %v611_v14, %v615_v16  ;;  %v670_v8 = vld [vmem:[#allocation9 + $0x7e0] sm:$0xff] }
 0x113   : > { %3523 = vmatmul.mubr.bf16.vlgmr.msra.gmra.mrb[0].mxu0 %v6816_v19  ;;  %3695 = vmatmul.mubr.bf16.vlgmr.msra.gmra.mrb[0].mxu1 %v6816_v19 }
 0x114   : > { %3534 = vmatpush1.bf16.msra.mxu0 %v5448_v23  ;;  %3706 = vmatpush1.bf16.msra.mxu1 %v5450_v24  ;;  %v619_v23 = vld [vmem:[#allocation9 + $0x648] sm:$0xff]  ;;  %v5515_v24 = vcombine.high %v611_v14, %v615_v16  ;;  %v678_v16 = vld [vmem:[#allocation9 + $0x820] sm:$0xff] }
 0x115   : > { %3535 = vmatprep.subr.bf16.mxu0 %v5457_v25  ;;  %3707 = vmatprep.subr.bf16.mxu1 %v5459_v26  ;;  %v623_v25 = vld [vmem:[#allocation9 + $0x668] sm:$0xff]  ;;  %v5512_v26 = vcombine.low %v610_v12, %v614_v13  ;;  %v674_v13 = vld [vmem:[#allocation9 + $0x800] sm:$0xff] }
 0x116   : > { %3565 = vmatprep.mubr.bf16.mxu0 %v6818_v29  ;;  %3737 = vmatprep.mubr.bf16.mxu1 %v6818_v29  ;;  %v5522_v36 = vcombine.low %v619_v23, %v623_v25 }
 0x118   : > { %3536 = vmatpush1.bf16.msra.mxu0 %v5456_v32  ;;  %3708 = vmatpush1.bf16.msra.mxu1 %v5458_v33  ;;  %v627_v32 = vld [vmem:[#allocation9 + $0x688] sm:$0xff]  ;;  %v5523_v33 = vcombine.high %v619_v23, %v623_v25  ;;  %v686_v25 = vld [vmem:[#allocation9 + $0x860] sm:$0xff] }
 0x119   : > { %3537 = vmatprep.subr.bf16.mxu0 %v5465_v34  ;;  %3709 = vmatprep.subr.bf16.mxu1 %v5467_v37  ;;  %v631_v34 = vld [vmem:[#allocation9 + $0x6a8] sm:$0xff]  ;;  %v5529_v37 = vcombine.high %v626_v30, %v630_v31  ;;  %v399_v31 = vld [vmem:[#allocation2 + $0x28] sm:$0xff] }
 0x11a   : > { %v5530_v44 = vcombine.low %v627_v32, %v631_v34  ;;  %v687_v30 = vld [vmem:[#allocation9 + $0x868] sm:$0xff] }
 0x11c   : > { %3538 = vmatpush1.bf16.msra.mxu0 %v5464_v40  ;;  %3710 = vmatpush1.bf16.msra.mxu1 %v5466_v41  ;;  %v635_v40 = vld [vmem:[#allocation9 + $0x6c8] sm:$0xff]  ;;  %v5531_v41 = vcombine.high %v627_v32, %v631_v34  ;;  %v6824_v34 = vpack.c.bf16 %v404_v22, %v396_v21 }
 0x11d   : > { %3539 = vmatprep.subr.bf16.mxu0 %v5473_v42  ;;  %3711 = vmatprep.subr.bf16.mxu1 %v5475_v46  ;;  %v639_v42 = vld [vmem:[#allocation9 + $0x6e8] sm:$0xff]  ;;  %v642_v46 = vld [vmem:[#allocation9 + $0x700] sm:$0xff] }
 0x11e   : > { %v5538_v52 = vcombine.low %v635_v40, %v639_v42  ;;  %v5545_v53 = vcombine.high %v642_v46, %v646_v47  ;;  %v5544_v59 = vcombine.low %v642_v46, %v646_v47  ;;  %v698_v47 = vld [vmem:[#allocation9 + $0x8c0] sm:$0xff]  ;;  %v735_v21 = vld [vmem:[#allocation9 + $0x9e8] sm:$0xff] }
 0x120   : > { %3540 = vmatpush1.bf16.msra.mxu0 %v5472_v48  ;;  %3712 = vmatpush1.bf16.msra.mxu1 %v5474_v49  ;;  %v643_v48 = vld [vmem:[#allocation9 + $0x708] sm:$0xff]  ;;  %v5539_v49 = vcombine.high %v635_v40, %v639_v42  ;;  %v694_v40 = vld [vmem:[#allocation9 + $0x8a0] sm:$0xff] }
 0x121   : > { %3541 = vmatprep.subr.bf16.mxu0 %v5481_v50  ;;  %3713 = vmatprep.subr.bf16.mxu1 %v5483_v54  ;;  %v647_v50 = vld [vmem:[#allocation9 + $0x728] sm:$0xff]  ;;  %v650_v54 = vld [vmem:[#allocation9 + $0x740] sm:$0xff]  ;;  %v5593_v46 = vcombine.high %v690_v38, %v694_v40 }
 0x122   : > { %v5546_v60 = vcombine.low %v643_v48, %v647_v50  ;;  %v5553_v61 = vcombine.high %v650_v54, %v654_v55  ;;  %v5552_v4 = vcombine.low %v650_v54, %v654_v55  ;;  %v695_v42 = vld [vmem:[#allocation9 + $0x8a8] sm:$0xff] }
 0x124   : > { %3542 = vmatpush1.bf16.msra.mxu0 %v5480_v56  ;;  %3714 = vmatpush1.bf16.msra.mxu1 %v5482_v57  ;;  %v651_v56 = vld [vmem:[#allocation9 + $0x748] sm:$0xff]  ;;  %v5547_v57 = vcombine.high %v643_v48, %v647_v50  ;;  %v702_v48 = vld [vmem:[#allocation9 + $0x8e0] sm:$0xff] }
 0x125   : > { %3543 = vmatprep.subr.bf16.mxu0 %v5489_v58  ;;  %3715 = vmatprep.subr.bf16.mxu1 %v5491_v63  ;;  %v655_v58 = vld [vmem:[#allocation9 + $0x768] sm:$0xff]  ;;  %v658_v63 = vld [vmem:[#allocation9 + $0x780] sm:$0xff]  ;;  %v5601_v54 = vcombine.high %v698_v47, %v702_v48 }
 0x126   : > { %v5554_v5 = vcombine.low %v651_v56, %v655_v58  ;;  %v5561_v6 = vcombine.high %v658_v63, %v662_v0  ;;  %v5560_v12 = vcombine.low %v658_v63, %v662_v0 }
 0x128   : > { %3544 = vmatpush1.bf16.msra.mxu0 %v5488_v1  ;;  %3716 = vmatpush1.bf16.msra.mxu1 %v5490_v2  ;;  %v659_v1 = vld [vmem:[#allocation9 + $0x788] sm:$0xff]  ;;  %v5555_v2 = vcombine.high %v651_v56, %v655_v58  ;;  %v706_v56 = vld [vmem:[#allocation9 + $0x900] sm:$0xff] }
 0x129   : > { %3545 = vmatprep.subr.bf16.mxu0 %v5497_v3  ;;  %3717 = vmatprep.subr.bf16.mxu1 %v5499_v7  ;;  %v663_v3 = vld [vmem:[#allocation9 + $0x7a8] sm:$0xff]  ;;  %v666_v7 = vld [vmem:[#allocation9 + $0x7c0] sm:$0xff] }
 0x12a   : > { %v5562_v14 = vcombine.low %v659_v1, %v663_v3  ;;  %v5568_v23 = vcombine.low %v666_v7, %v670_v8  ;;  %v707_v58 = vld [vmem:[#allocation9 + $0x908] sm:$0xff] }
 0x12c   : > { %3546 = vmatpush1.bf16.msra.mxu0 %v5496_v9  ;;  %3718 = vmatpush1.bf16.msra.mxu1 %v5498_v10  ;;  %v667_v9 = vld [vmem:[#allocation9 + $0x7c8] sm:$0xff]  ;;  %v5563_v10 = vcombine.high %v659_v1, %v663_v3  ;;  %v714_v1 = vld [vmem:[#allocation9 + $0x940] sm:$0xff] }
 0x12d   : > { %3547 = vmatprep.subr.bf16.mxu0 %v5505_v11  ;;  %3719 = vmatprep.subr.bf16.mxu1 %v5507_v15  ;;  %v671_v11 = vld [vmem:[#allocation9 + $0x7e8] sm:$0xff]  ;;  %v5569_v15 = vcombine.high %v666_v7, %v670_v8 }
 0x12e   : > { %v715_v3 = vld [vmem:[#allocation9 + $0x948] sm:$0xff] }
 0x130   : > { %3548 = vmatpush1.bf16.msra.mxu0 %v5504_v17  ;;  %3720 = vmatpush1.bf16.msra.mxu1 %v5506_v18  ;;  %v675_v17 = vld [vmem:[#allocation9 + $0x808] sm:$0xff] }
 0x131   : > { %3549 = vmatprep.subr.bf16.mxu0 %v5513_v20  ;;  %3721 = vmatprep.subr.bf16.mxu1 %v5515_v24  ;;  %v679_v18 = vld [vmem:[#allocation9 + $0x828] sm:$0xff]  ;;  %v5571_v20 = vcombine.high %v667_v9, %v671_v11  ;;  %v682_v24 = vld [vmem:[#allocation9 + $0x840] sm:$0xff] }
 0x132   : > { %v5579_v32 = vcombine.high %v675_v17, %v679_v18 }
 0x134   : > { %3550 = vmatpush1.bf16.msra.mxu0 %v5512_v26  ;;  %3722 = vmatpush1.bf16.msra.mxu1 %v5514_v27  ;;  %v5570_v26 = vcombine.low %v667_v9, %v671_v11  ;;  %v5577_v27 = vcombine.high %v674_v13, %v678_v16  ;;  %v722_v9 = vld [vmem:[#allocation9 + $0x980] sm:$0xff]  ;;  %v723_v11 = vld [vmem:[#allocation9 + $0x988] sm:$0xff] }
 0x135   : > { %3551 = vmatprep.subr.bf16.mxu0 %v5521_v28  ;;  %3723 = vmatprep.subr.bf16.mxu1 %v5523_v33  ;;  %v683_v28 = vld [vmem:[#allocation9 + $0x848] sm:$0xff]  ;;  %v407_v33 = vld [vmem:[#allocation2 + $0x68] sm:$0xff] }
 0x136   : > { %v5587_v39 = vcombine.high %v683_v28, %v687_v30 }
 0x138   : > { %3552 = vmatpush1.bf16.msra.mxu0 %v5520_v35  ;;  %3724 = vmatpush1.bf16.msra.mxu1 %v5522_v36  ;;  %v5576_v35 = vcombine.low %v674_v13, %v678_v16  ;;  %v5578_v36 = vcombine.low %v675_v17, %v679_v18  ;;  %v730_v17 = vld [vmem:[#allocation9 + $0x9c0] sm:$0xff] }
 0x139   : > { %3553 = vmatprep.subr.bf16.mxu0 %v5529_v37  ;;  %3725 = vmatprep.subr.bf16.mxu1 %v5531_v41  ;;  %v5585_v37 = vcombine.high %v682_v24, %v686_v25  ;;  %v691_v41 = vld [vmem:[#allocation9 + $0x888] sm:$0xff]  ;;  %v734_v18 = vld [vmem:[#allocation9 + $0x9e0] sm:$0xff] }
 0x13a   : > { %v5595_v50 = vcombine.high %v691_v41, %v695_v42 }
 0x13c   : > { %3554 = vmatpush1.bf16.msra.mxu0 %v5528_v43  ;;  %3726 = vmatpush1.bf16.msra.mxu1 %v5530_v44  ;;  %v6826_v43 = vpack.c.bf16 %v407_v33, %v399_v31  ;;  %v5584_v44 = vcombine.low %v682_v24, %v686_v25  ;;  %v5633_v24 = vcombine.high %v730_v17, %v734_v18 }
 0x13d   : > { %3555 = vmatprep.subr.bf16.mxu0 %v5537_v45  ;;  %3727 = vmatprep.subr.bf16.mxu1 %v5539_v49  ;;  %v5586_v45 = vcombine.low %v683_v28, %v687_v30  ;;  %v699_v49 = vld [vmem:[#allocation9 + $0x8c8] sm:$0xff]  ;;  %v5632_v31 = vcombine.low %v730_v17, %v734_v18 }
 0x13e   : > { %v739_v28 = vld [vmem:[#allocation9 + $0xa08] sm:$0xff] }
 0x13f   : > { %v743_v30 = vld [vmem:[#allocation9 + $0xa28] sm:$0xff] }
 0x140   : > { %3556 = vmatpush1.bf16.msra.mxu0 %v5536_v51  ;;  %3728 = vmatpush1.bf16.msra.mxu1 %v5538_v52  ;;  %v703_v51 = vld [vmem:[#allocation9 + $0x8e8] sm:$0xff]  ;;  %v5592_v52 = vcombine.low %v690_v38, %v694_v40 }
 0x141   : > { %3557 = vmatprep.subr.bf16.mxu0 %v5545_v53  ;;  %3729 = vmatprep.subr.bf16.mxu1 %v5547_v57  ;;  %v5594_v53 = vcombine.low %v691_v41, %v695_v42  ;;  %v5603_v55 = vcombine.high %v699_v49, %v703_v51  ;;  %v710_v57 = vld [vmem:[#allocation9 + $0x920] sm:$0xff]  ;;  %v747_v38 = vld [vmem:[#allocation9 + $0xa48] sm:$0xff]  ;;  %v5642_v41 = vcombine.low %v739_v28, %v743_v30 }
 0x142   : > { %v5609_v63 = vcombine.high %v706_v56, %v710_v57  ;;  %v791_v17 = vld [vmem:[#allocation9 + $0xba8] sm:$0xff] }
 0x144   : > { %3558 = vmatpush1.bf16.msra.mxu0 %v5544_v59  ;;  %3730 = vmatpush1.bf16.msra.mxu1 %v5546_v60  ;;  %v711_v59 = vld [vmem:[#allocation9 + $0x928] sm:$0xff]  ;;  %v5600_v60 = vcombine.low %v698_v47, %v702_v48 }
 0x145   : > { %3559 = vmatprep.subr.bf16.mxu0 %v5553_v61  ;;  %3731 = vmatprep.subr.bf16.mxu1 %v5555_v2  ;;  %v5602_v61 = vcombine.low %v699_v49, %v703_v51  ;;  %v5611_v0 = vcombine.high %v707_v58, %v711_v59  ;;  %v718_v2 = vld [vmem:[#allocation9 + $0x960] sm:$0xff]  ;;  %v755_v47 = vld [vmem:[#allocation9 + $0xa88] sm:$0xff] }
 0x146   : > { %v5617_v7 = vcombine.high %v714_v1, %v718_v2  ;;  %v5616_v13 = vcombine.low %v714_v1, %v718_v2  ;;  %v759_v48 = vld [vmem:[#allocation9 + $0xaa8] sm:$0xff] }
 0x147   : > { %v775_v1 = vld [vmem:[#allocation9 + $0xb28] sm:$0xff] }
 0x148   : > { %3560 = vmatpush1.bf16.msra.mxu0 %v5552_v4  ;;  %3732 = vmatpush1.bf16.msra.mxu1 %v5554_v5  ;;  %v719_v4 = vld [vmem:[#allocation9 + $0x968] sm:$0xff]  ;;  %v5608_v5 = vcombine.low %v706_v56, %v710_v57 }
 0x149   : > { %3561 = vmatprep.subr.bf16.mxu0 %v5561_v6  ;;  %3733 = vmatprep.subr.bf16.mxu1 %v5563_v10  ;;  %v5610_v6 = vcombine.low %v707_v58, %v711_v59  ;;  %v5619_v8 = vcombine.high %v715_v3, %v719_v4  ;;  %v726_v10 = vld [vmem:[#allocation9 + $0x9a0] sm:$0xff]  ;;  %v767_v56 = vld [vmem:[#allocation9 + $0xae8] sm:$0xff]  ;;  %v5658_v58 = vcombine.low %v755_v47, %v759_v48 }
 0x14a   : > { %v5624_v22 = vcombine.low %v722_v9, %v726_v10 }
 0x14c   : > { %3562 = vmatpush1.bf16.msra.mxu0 %v5560_v12  ;;  %3734 = vmatpush1.bf16.msra.mxu1 %v5562_v14  ;;  %v727_v12 = vld [vmem:[#allocation9 + $0x9a8] sm:$0xff]  ;;  %v5618_v14 = vcombine.low %v715_v3, %v719_v4 }
 0x14d   : > { %3563 = vmatprep.subr.bf16.mxu0 %v5569_v15  ;;  %3735 = vmatprep.subr.bf16.mxu1 %v5571_v20  ;;  %v5625_v15 = vcombine.high %v722_v9, %v726_v10  ;;  %v5627_v16 = vcombine.high %v723_v11, %v727_v12  ;;  %v731_v20 = vld [vmem:[#allocation9 + $0x9c8] sm:$0xff] }
 0x14e   : > { %v5635_v25 = vcombine.high %v731_v20, %v735_v21  ;;  %v783_v9 = vld [vmem:[#allocation9 + $0xb68] sm:$0xff] }
 0x150   : > { %3564 = vmatpush1.bf16.msra.mxu0 %v5568_v23  ;;  %3736 = vmatpush1.bf16.msra.mxu1 %v5570_v26  ;;  %v5626_v23 = vcombine.low %v723_v11, %v727_v12  ;;  %v738_v26 = vld [vmem:[#allocation9 + $0xa00] sm:$0xff] }
 0x151   : > { %3576 = vmatprep.subr.bf16.mxu0 %v5577_v27  ;;  %3748 = vmatprep.subr.bf16.mxu1 %v5579_v32  ;;  %v742_v27 = vld [vmem:[#allocation9 + $0xa20] sm:$0xff]  ;;  %v5634_v32 = vcombine.low %v731_v20, %v735_v21 }
 0x152   : > { %v5641_v33 = vcombine.high %v738_v26, %v742_v27  ;;  %v5640_v40 = vcombine.low %v738_v26, %v742_v27  ;;  %v799_v26 = vld [vmem:[#allocation9 + $0xbe8] sm:$0xff] }
 0x153   : > { %3566 = vmatmul.mubr.bf16.vlgmr.msra.gmra.mrb[0].mxu0 %v6824_v34  ;;  %3738 = vmatmul.mubr.bf16.vlgmr.msra.gmra.mrb[0].mxu1 %v6824_v34 }
 0x154   : > { %3577 = vmatpush1.bf16.msra.mxu0 %v5576_v35  ;;  %3749 = vmatpush1.bf16.msra.mxu1 %v5578_v36  ;;  %v5643_v35 = vcombine.high %v739_v28, %v743_v30  ;;  %v746_v36 = vld [vmem:[#allocation9 + $0xa40] sm:$0xff] }
 0x155   : > { %3578 = vmatprep.subr.bf16.mxu0 %v5585_v37  ;;  %3750 = vmatprep.subr.bf16.mxu1 %v5587_v39  ;;  %v750_v37 = vld [vmem:[#allocation9 + $0xa60] sm:$0xff]  ;;  %v751_v39 = vld [vmem:[#allocation9 + $0xa68] sm:$0xff] }
 0x156   : > { %3608 = vmatprep.mubr.bf16.mxu0 %v6826_v43  ;;  %3780 = vmatprep.mubr.bf16.mxu1 %v6826_v43  ;;  %v5649_v42 = vcombine.high %v746_v36, %v750_v37  ;;  %v5648_v49 = vcombine.low %v746_v36, %v750_v37  ;;  %v807_v36 = vld [vmem:[#allocation9 + $0xc28] sm:$0xff] }
 0x158   : > { %3579 = vmatpush1.bf16.msra.mxu0 %v5584_v44  ;;  %3751 = vmatpush1.bf16.msra.mxu1 %v5586_v45  ;;  %v5651_v44 = vcombine.high %v747_v38, %v751_v39  ;;  %v754_v45 = vld [vmem:[#allocation9 + $0xa80] sm:$0xff] }
 0x159   : > { %3580 = vmatprep.subr.bf16.mxu0 %v5593_v46  ;;  %3752 = vmatprep.subr.bf16.mxu1 %v5595_v50  ;;  %v758_v46 = vld [vmem:[#allocation9 + $0xaa0] sm:$0xff]  ;;  %v5650_v50 = vcombine.low %v747_v38, %v751_v39  ;;  %v398_v38 = vld [vmem:[#allocation2 + $0x20] sm:$0xff] }
 0x15a   : > { %v5657_v51 = vcombine.high %v754_v45, %v758_v46  ;;  %v5656_v57 = vcombine.low %v754_v45, %v758_v46  ;;  %v406_v39 = vld [vmem:[#allocation2 + $0x60] sm:$0xff]  ;;  %v814_v45 = vld [vmem:[#allocation9 + $0xc60] sm:$0xff]  ;;  %v811_v46 = vld [vmem:[#allocation9 + $0xc48] sm:$0xff] }
 0x15c   : > { %3581 = vmatpush1.bf16.msra.mxu0 %v5592_v52  ;;  %3753 = vmatpush1.bf16.msra.mxu1 %v5594_v53  ;;  %v5659_v52 = vcombine.high %v755_v47, %v759_v48  ;;  %v762_v53 = vld [vmem:[#allocation9 + $0xac0] sm:$0xff]  ;;  %v6832_v47 = vpack.c.bf16 %v406_v39, %v398_v38  ;;  %v815_v48 = vld [vmem:[#allocation9 + $0xc68] sm:$0xff] }
 0x15d   : > { %3582 = vmatprep.subr.bf16.mxu0 %v5601_v54  ;;  %3754 = vmatprep.subr.bf16.mxu1 %v5603_v55  ;;  %v766_v54 = vld [vmem:[#allocation9 + $0xae0] sm:$0xff]  ;;  %v763_v55 = vld [vmem:[#allocation9 + $0xac8] sm:$0xff] }
 0x15e   : > { %v5665_v59 = vcombine.high %v762_v53, %v766_v54  ;;  %v5664_v2 = vcombine.low %v762_v53, %v766_v54  ;;  %v5666_v3 = vcombine.low %v763_v55, %v767_v56  ;;  %v5715_v54 = vcombine.high %v811_v46, %v815_v48  ;;  %v859_v38 = vld [vmem:[#allocation9 + $0xdc8] sm:$0xff] }
 0x15f   : > { %v863_v39 = vld [vmem:[#allocation9 + $0xde8] sm:$0xff] }
 0x160   : > { %3583 = vmatpush1.bf16.msra.mxu0 %v5600_v60  ;;  %3755 = vmatpush1.bf16.msra.mxu1 %v5602_v61  ;;  %v5667_v60 = vcombine.high %v763_v55, %v767_v56  ;;  %v770_v61 = vld [vmem:[#allocation9 + $0xb00] sm:$0xff] }
 0x161   : > { %3584 = vmatprep.subr.bf16.mxu0 %v5609_v63  ;;  %3756 = vmatprep.subr.bf16.mxu1 %v5611_v0  ;;  %v774_v63 = vld [vmem:[#allocation9 + $0xb20] sm:$0xff]  ;;  %v771_v0 = vld [vmem:[#allocation9 + $0xb08] sm:$0xff] }
 0x162   : > { %v5673_v4 = vcombine.high %v770_v61, %v774_v63  ;;  %v5672_v10 = vcombine.low %v770_v61, %v774_v63  ;;  %v5674_v11 = vcombine.low %v771_v0, %v775_v1  ;;  %v818_v55 = vld [vmem:[#allocation9 + $0xc80] sm:$0xff]  ;;  %v5714_v61 = vcombine.low %v811_v46, %v815_v48  ;;  %v867_v48 = vld [vmem:[#allocation9 + $0xe08] sm:$0xff] }
 0x163   : > { %v822_v56 = vld [vmem:[#allocation9 + $0xca0] sm:$0xff] }
 0x164   : > { %3585 = vmatpush1.bf16.msra.mxu0 %v5608_v5  ;;  %3757 = vmatpush1.bf16.msra.mxu1 %v5610_v6  ;;  %v5675_v5 = vcombine.high %v771_v0, %v775_v1  ;;  %v778_v6 = vld [vmem:[#allocation9 + $0xb40] sm:$0xff]  ;;  %v5721_v63 = vcombine.high %v818_v55, %v822_v56 }
 0x165   : > { %3586 = vmatprep.subr.bf16.mxu0 %v5617_v7  ;;  %3758 = vmatprep.subr.bf16.mxu1 %v5619_v8  ;;  %v782_v7 = vld [vmem:[#allocation9 + $0xb60] sm:$0xff]  ;;  %v779_v8 = vld [vmem:[#allocation9 + $0xb48] sm:$0xff] }
 0x166   : > { %v5681_v12 = vcombine.high %v778_v6, %v782_v7  ;;  %v5680_v18 = vcombine.low %v778_v6, %v782_v7  ;;  %v5682_v20 = vcombine.low %v779_v8, %v783_v9  ;;  %v826_v1 = vld [vmem:[#allocation9 + $0xcc0] sm:$0xff] }
 0x167   : > { %v870_v46 = vld [vmem:[#allocation9 + $0xe20] sm:$0xff] }
 0x168   : > { %3587 = vmatpush1.bf16.msra.mxu0 %v5616_v13  ;;  %3759 = vmatpush1.bf16.msra.mxu1 %v5618_v14  ;;  %v5683_v13 = vcombine.high %v779_v8, %v783_v9  ;;  %v786_v14 = vld [vmem:[#allocation9 + $0xb80] sm:$0xff] }
 0x169   : > { %3588 = vmatprep.subr.bf16.mxu0 %v5625_v15  ;;  %3760 = vmatprep.subr.bf16.mxu1 %v5627_v16  ;;  %v790_v15 = vld [vmem:[#allocation9 + $0xba0] sm:$0xff]  ;;  %v787_v16 = vld [vmem:[#allocation9 + $0xb88] sm:$0xff] }
 0x16a   : > { %v5689_v21 = vcombine.high %v786_v14, %v790_v15  ;;  %v5688_v27 = vcombine.low %v786_v14, %v790_v15  ;;  %v5690_v28 = vcombine.low %v787_v16, %v791_v17  ;;  %v834_v9 = vld [vmem:[#allocation9 + $0xd00] sm:$0xff] }
 0x16c   : > { %3589 = vmatpush1.bf16.msra.mxu0 %v5624_v22  ;;  %3761 = vmatpush1.bf16.msra.mxu1 %v5626_v23  ;;  %v5691_v22 = vcombine.high %v787_v16, %v791_v17  ;;  %v794_v23 = vld [vmem:[#allocation9 + $0xbc0] sm:$0xff] }
 0x16d   : > { %3590 = vmatprep.subr.bf16.mxu0 %v5633_v24  ;;  %3762 = vmatprep.subr.bf16.mxu1 %v5635_v25  ;;  %v798_v24 = vld [vmem:[#allocation9 + $0xbe0] sm:$0xff]  ;;  %v795_v25 = vld [vmem:[#allocation9 + $0xbc8] sm:$0xff] }
 0x16e   : > { %v5697_v30 = vcombine.high %v794_v23, %v798_v24  ;;  %v5696_v37 = vcombine.low %v794_v23, %v798_v24  ;;  %v842_v17 = vld [vmem:[#allocation9 + $0xd40] sm:$0xff] }
 0x170   : > { %3591 = vmatpush1.bf16.msra.mxu0 %v5632_v31  ;;  %3763 = vmatpush1.bf16.msra.mxu1 %v5634_v32  ;;  %v5699_v31 = vcombine.high %v795_v25, %v799_v26  ;;  %v802_v32 = vld [vmem:[#allocation9 + $0xc00] sm:$0xff] }
 0x171   : > { %3592 = vmatprep.subr.bf16.mxu0 %v5641_v33  ;;  %3764 = vmatprep.subr.bf16.mxu1 %v5643_v35  ;;  %v806_v33 = vld [vmem:[#allocation9 + $0xc20] sm:$0xff]  ;;  %v803_v35 = vld [vmem:[#allocation9 + $0xc08] sm:$0xff] }
 0x174   : > { %3593 = vmatpush1.bf16.msra.mxu0 %v5640_v40  ;;  %3765 = vmatpush1.bf16.msra.mxu1 %v5642_v41  ;;  %v5698_v40 = vcombine.low %v795_v25, %v799_v26  ;;  %v5705_v41 = vcombine.high %v802_v32, %v806_v33  ;;  %v850_v26 = vld [vmem:[#allocation9 + $0xd80] sm:$0xff] }
 0x175   : > { %3594 = vmatprep.subr.bf16.mxu0 %v5649_v42  ;;  %3766 = vmatprep.subr.bf16.mxu1 %v5651_v44  ;;  %v5707_v42 = vcombine.high %v803_v35, %v807_v36  ;;  %v810_v44 = vld [vmem:[#allocation9 + $0xc40] sm:$0xff] }
 0x176   : > { %v5713_v53 = vcombine.high %v810_v44, %v814_v45 }
 0x178   : > { %3595 = vmatpush1.bf16.msra.mxu0 %v5648_v49  ;;  %3767 = vmatpush1.bf16.msra.mxu1 %v5650_v50  ;;  %v401_v49 = vld [vmem:[#allocation2 + $0x38] sm:$0xff] }
 0x179   : > { %3596 = vmatprep.subr.bf16.mxu0 %v5657_v51  ;;  %3768 = vmatprep.subr.bf16.mxu1 %v5659_v52  ;;  %v409_v50 = vld [vmem:[#allocation2 + $0x78] sm:$0xff]  ;;  %v5704_v51 = vcombine.low %v802_v32, %v806_v33  ;;  %v5706_v52 = vcombine.low %v803_v35, %v807_v36  ;;  %v858_v36 = vld [vmem:[#allocation9 + $0xdc0] sm:$0xff] }
 0x17c   : > { %3597 = vmatpush1.bf16.msra.mxu0 %v5656_v57  ;;  %3769 = vmatpush1.bf16.msra.mxu1 %v5658_v58  ;;  %v6834_v57 = vpack.c.bf16 %v409_v50, %v401_v49  ;;  %v819_v58 = vld [vmem:[#allocation9 + $0xc88] sm:$0xff] }
 0x17d   : > { %3598 = vmatprep.subr.bf16.mxu0 %v5665_v59  ;;  %3770 = vmatprep.subr.bf16.mxu1 %v5667_v60  ;;  %v823_v59 = vld [vmem:[#allocation9 + $0xca8] sm:$0xff]  ;;  %v5712_v60 = vcombine.low %v810_v44, %v814_v45  ;;  %v5763_v44 = vcombine.high %v859_v38, %v863_v39  ;;  %v866_v45 = vld [vmem:[#allocation9 + $0xe00] sm:$0xff] }
 0x17e   : > { %v5723_v0 = vcombine.high %v819_v58, %v823_v59  ;;  %v5722_v6 = vcombine.low %v819_v58, %v823_v59  ;;  %v871_v49 = vld [vmem:[#allocation9 + $0xe28] sm:$0xff]  ;;  %v5768_v59 = vcombine.low %v866_v45, %v870_v46 }
 0x17f   : > { %v879_v58 = vld [vmem:[#allocation9 + $0xe68] sm:$0xff] }
 0x180   : > { %3599 = vmatpush1.bf16.msra.mxu0 %v5664_v2  ;;  %3771 = vmatpush1.bf16.msra.mxu1 %v5666_v3  ;;  %v830_v2 = vld [vmem:[#allocation9 + $0xce0] sm:$0xff]  ;;  %v827_v3 = vld [vmem:[#allocation9 + $0xcc8] sm:$0xff] }
 0x181   : > { %3600 = vmatprep.subr.bf16.mxu0 %v5673_v4  ;;  %3772 = vmatprep.subr.bf16.mxu1 %v5675_v5  ;;  %v831_v4 = vld [vmem:[#allocation9 + $0xce8] sm:$0xff]  ;;  %v5720_v5 = vcombine.low %v818_v55, %v822_v56  ;;  %v5729_v7 = vcombine.high %v826_v1, %v830_v2  ;;  %v878_v55 = vld [vmem:[#allocation9 + $0xe60] sm:$0xff] }
 0x182   : > { %v5731_v8 = vcombine.high %v827_v3, %v831_v4  ;;  %v5730_v14 = vcombine.low %v827_v3, %v831_v4  ;;  %v875_v56 = vld [vmem:[#allocation9 + $0xe48] sm:$0xff] }
 0x183   : > { %v887_v3 = vld [vmem:[#allocation9 + $0xea8] sm:$0xff] }
 0x184   : > { %3601 = vmatpush1.bf16.msra.mxu0 %v5672_v10  ;;  %3773 = vmatpush1.bf16.msra.mxu1 %v5674_v11  ;;  %v838_v10 = vld [vmem:[#allocation9 + $0xd20] sm:$0xff]  ;;  %v835_v11 = vld [vmem:[#allocation9 + $0xd08] sm:$0xff] }
 0x185   : > { %3602 = vmatprep.subr.bf16.mxu0 %v5681_v12  ;;  %3774 = vmatprep.subr.bf16.mxu1 %v5683_v13  ;;  %v839_v12 = vld [vmem:[#allocation9 + $0xd28] sm:$0xff]  ;;  %v5728_v13 = vcombine.low %v826_v1, %v830_v2  ;;  %v5737_v15 = vcombine.high %v834_v9, %v838_v10  ;;  %v886_v1 = vld [vmem:[#allocation9 + $0xea0] sm:$0xff] }
 0x186   : > { %v5739_v16 = vcombine.high %v835_v11, %v839_v12  ;;  %v5738_v23 = vcombine.low %v835_v11, %v839_v12  ;;  %v883_v2 = vld [vmem:[#allocation9 + $0xe88] sm:$0xff] }
 0x187   : > { %v895_v11 = vld [vmem:[#allocation9 + $0xee8] sm:$0xff] }
 0x188   : > { %3603 = vmatpush1.bf16.msra.mxu0 %v5680_v18  ;;  %3775 = vmatpush1.bf16.msra.mxu1 %v5682_v20  ;;  %v846_v18 = vld [vmem:[#allocation9 + $0xd60] sm:$0xff]  ;;  %v843_v20 = vld [vmem:[#allocation9 + $0xd48] sm:$0xff] }
 0x189   : > { %3604 = vmatprep.subr.bf16.mxu0 %v5689_v21  ;;  %3776 = vmatprep.subr.bf16.mxu1 %v5691_v22  ;;  %v847_v21 = vld [vmem:[#allocation9 + $0xd68] sm:$0xff]  ;;  %v5736_v22 = vcombine.low %v834_v9, %v838_v10  ;;  %v5745_v24 = vcombine.high %v842_v17, %v846_v18  ;;  %v894_v9 = vld [vmem:[#allocation9 + $0xee0] sm:$0xff] }
 0x18a   : > { %v5747_v25 = vcombine.high %v843_v20, %v847_v21  ;;  %v5746_v32 = vcombine.low %v843_v20, %v847_v21  ;;  %v891_v10 = vld [vmem:[#allocation9 + $0xec8] sm:$0xff] }
 0x18b   : > { %v903_v20 = vld [vmem:[#allocation9 + $0xf28] sm:$0xff] }
 0x18c   : > { %3605 = vmatpush1.bf16.msra.mxu0 %v5688_v27  ;;  %3777 = vmatpush1.bf16.msra.mxu1 %v5690_v28  ;;  %v854_v27 = vld [vmem:[#allocation9 + $0xda0] sm:$0xff]  ;;  %v851_v28 = vld [vmem:[#allocation9 + $0xd88] sm:$0xff] }
 0x18d   : > { %3606 = vmatprep.subr.bf16.mxu0 %v5697_v30  ;;  %3778 = vmatprep.subr.bf16.mxu1 %v5699_v31  ;;  %v855_v30 = vld [vmem:[#allocation9 + $0xda8] sm:$0xff]  ;;  %v5744_v31 = vcombine.low %v842_v17, %v846_v18  ;;  %v5753_v33 = vcombine.high %v850_v26, %v854_v27  ;;  %v902_v17 = vld [vmem:[#allocation9 + $0xf20] sm:$0xff] }
 0x18e   : > { %v5755_v35 = vcombine.high %v851_v28, %v855_v30  ;;  %v899_v18 = vld [vmem:[#allocation9 + $0xf08] sm:$0xff] }
 0x190   : > { %3607 = vmatpush1.bf16.msra.mxu0 %v5696_v37  ;;  %3779 = vmatpush1.bf16.msra.mxu1 %v5698_v40  ;;  %v862_v37 = vld [vmem:[#allocation9 + $0xde0] sm:$0xff]  ;;  %v5752_v40 = vcombine.low %v850_v26, %v854_v27  ;;  %v907_v27 = vld [vmem:[#allocation9 + $0xf48] sm:$0xff] }
 0x191   : > { %3619 = vmatprep.subr.bf16.mxu0 %v5705_v41  ;;  %3791 = vmatprep.subr.bf16.mxu1 %v5707_v42  ;;  %v5754_v41 = vcombine.low %v851_v28, %v855_v30  ;;  %v5761_v42 = vcombine.high %v858_v36, %v862_v37  ;;  %v5760_v50 = vcombine.low %v858_v36, %v862_v37  ;;  %v910_v26 = vld [vmem:[#allocation9 + $0xf60] sm:$0xff]  ;;  %v911_v28 = vld [vmem:[#allocation9 + $0xf68] sm:$0xff] }
 0x192   : > { %v918_v36 = vld [vmem:[#allocation9 + $0xfa0] sm:$0xff]  ;;  %v915_v37 = vld [vmem:[#allocation9 + $0xf88] sm:$0xff] }
 0x193   : > { %3609 = vmatmul.mubr.bf16.vlgmr.msra.gmra.mrb[0].mxu0 %v6832_v47  ;;  %3781 = vmatmul.mubr.bf16.vlgmr.msra.gmra.mrb[0].mxu1 %v6832_v47 }
 0x194   : > { %3620 = vmatpush1.bf16.msra.mxu0 %v5704_v51  ;;  %3792 = vmatpush1.bf16.msra.mxu1 %v5706_v52  ;;  %v5762_v51 = vcombine.low %v859_v38, %v863_v39  ;;  %v5769_v52 = vcombine.high %v866_v45, %v870_v46  ;;  %v919_v38 = vld [vmem:[#allocation9 + $0xfa8] sm:$0xff]  ;;  %v926_v45 = vld [vmem:[#allocation9 + $0xfe0] sm:$0xff] }
 0x195   : > { %3621 = vmatprep.subr.bf16.mxu0 %v5713_v53  ;;  %3793 = vmatprep.subr.bf16.mxu1 %v5715_v54  ;;  %v5771_v53 = vcombine.high %v867_v48, %v871_v49  ;;  %v874_v54 = vld [vmem:[#allocation9 + $0xe40] sm:$0xff]  ;;  %v923_v46 = vld [vmem:[#allocation9 + $0xfc8] sm:$0xff] }
 0x196   : > { %3651 = vmatprep.mubr.bf16.mxu0 %v6834_v57  ;;  %3823 = vmatprep.mubr.bf16.mxu1 %v6834_v57  ;;  %v5776_v4 = vcombine.low %v874_v54, %v878_v55 }
 0x198   : > { %3622 = vmatpush1.bf16.msra.mxu0 %v5712_v60  ;;  %3794 = vmatpush1.bf16.msra.mxu1 %v5714_v61  ;;  %v5770_v60 = vcombine.low %v867_v48, %v871_v49  ;;  %v5777_v61 = vcombine.high %v874_v54, %v878_v55  ;;  %v927_v48 = vld [vmem:[#allocation9 + $0xfe8] sm:$0xff]  ;;  %v424_v54 = vld [vmem:[#allocation9 + $0x30] sm:$0xff]  ;;  %v421_v55 = vld [vmem:[#allocation9 + $0x18] sm:$0xff] }
 0x199   : > { %3623 = vmatprep.subr.bf16.mxu0 %v5721_v63  ;;  %3795 = vmatprep.subr.bf16.mxu1 %v5723_v0  ;;  %v5779_v63 = vcombine.high %v875_v56, %v879_v58  ;;  %v882_v0 = vld [vmem:[#allocation9 + $0xe80] sm:$0xff] }
 0x19a   : > { %v5784_v12 = vcombine.low %v882_v0, %v886_v1 }
 0x19c   : > { %3624 = vmatpush1.bf16.msra.mxu0 %v5720_v5  ;;  %3796 = vmatpush1.bf16.msra.mxu1 %v5722_v6  ;;  %v5778_v5 = vcombine.low %v875_v56, %v879_v58  ;;  %v5785_v6 = vcombine.high %v882_v0, %v886_v1  ;;  %v425_v56 = vld [vmem:[#allocation9 + $0x38] sm:$0xff]  ;;  %v428_v1 = vld [vmem:[#allocation9 + $0x50] sm:$0xff] }
 0x19d   : > { %3625 = vmatprep.subr.bf16.mxu0 %v5729_v7  ;;  %3797 = vmatprep.subr.bf16.mxu1 %v5731_v8  ;;  %v5787_v7 = vcombine.high %v883_v2, %v887_v3  ;;  %v890_v8 = vld [vmem:[#allocation9 + $0xec0] sm:$0xff]  ;;  %v5327_v0 = vcombine.high %v421_v55, %v425_v56 }
 0x19e   : > { %v5792_v21 = vcombine.low %v890_v8, %v894_v9 }
 0x1a0   : > { %3626 = vmatpush1.bf16.msra.mxu0 %v5728_v13  ;;  %3798 = vmatpush1.bf16.msra.mxu1 %v5730_v14  ;;  %v5786_v13 = vcombine.low %v883_v2, %v887_v3  ;;  %v5793_v14 = vcombine.high %v890_v8, %v894_v9  ;;  %v432_v2 = vld [vmem:[#allocation9 + $0x70] sm:$0xff] }
 0x1a1   : > { %3627 = vmatprep.subr.bf16.mxu0 %v5737_v15  ;;  %3799 = vmatprep.subr.bf16.mxu1 %v5739_v16  ;;  %v5795_v15 = vcombine.high %v891_v10, %v895_v11  ;;  %v898_v16 = vld [vmem:[#allocation9 + $0xf00] sm:$0xff]  ;;  %v5333_v8 = vcombine.high %v428_v1, %v432_v2 }
 0x1a2   : > { %v5800_v30 = vcombine.low %v898_v16, %v902_v17 }
 0x1a4   : > { %3628 = vmatpush1.bf16.msra.mxu0 %v5736_v22  ;;  %3800 = vmatpush1.bf16.msra.mxu1 %v5738_v23  ;;  %v5794_v22 = vcombine.low %v891_v10, %v895_v11  ;;  %v5801_v23 = vcombine.high %v898_v16, %v902_v17  ;;  %v436_v10 = vld [vmem:[#allocation9 + $0x90] sm:$0xff] }
 0x1a5   : > { %3629 = vmatprep.subr.bf16.mxu0 %v5745_v24  ;;  %3801 = vmatprep.subr.bf16.mxu1 %v5747_v25  ;;  %v5803_v24 = vcombine.high %v899_v18, %v903_v20  ;;  %v906_v25 = vld [vmem:[#allocation9 + $0xf40] sm:$0xff]  ;;  %v440_v11 = vld [vmem:[#allocation9 + $0xb0] sm:$0xff] }
 0x1a6   : > { %v5808_v39 = vcombine.low %v906_v25, %v910_v26  ;;  %v5341_v16 = vcombine.high %v436_v10, %v440_v11 }
 0x1a8   : > { %3630 = vmatpush1.bf16.msra.mxu0 %v5744_v31  ;;  %3802 = vmatpush1.bf16.msra.mxu1 %v5746_v32  ;;  %v5802_v31 = vcombine.low %v899_v18, %v903_v20  ;;  %v5809_v32 = vcombine.high %v906_v25, %v910_v26  ;;  %v444_v18 = vld [vmem:[#allocation9 + $0xd0] sm:$0xff] }
 0x1a9   : > { %3631 = vmatprep.subr.bf16.mxu0 %v5753_v33  ;;  %3803 = vmatprep.subr.bf16.mxu1 %v5755_v35  ;;  %v5811_v33 = vcombine.high %v907_v27, %v911_v28  ;;  %v914_v35 = vld [vmem:[#allocation9 + $0xf80] sm:$0xff]  ;;  %v448_v20 = vld [vmem:[#allocation9 + $0xf0] sm:$0xff] }
 0x1aa   : > { %v5816_v49 = vcombine.low %v914_v35, %v918_v36  ;;  %v5349_v25 = vcombine.high %v444_v18, %v448_v20 }
 0x1ac   : > { %3632 = vmatpush1.bf16.msra.mxu0 %v5752_v40  ;;  %3804 = vmatpush1.bf16.msra.mxu1 %v5754_v41  ;;  %v5810_v40 = vcombine.low %v907_v27, %v911_v28  ;;  %v5817_v41 = vcombine.high %v914_v35, %v918_v36  ;;  %v452_v27 = vld [vmem:[#allocation9 + $0x110] sm:$0xff] }
 0x1ad   : > { %3633 = vmatprep.subr.bf16.mxu0 %v5761_v42  ;;  %3805 = vmatprep.subr.bf16.mxu1 %v5763_v44  ;;  %v5819_v42 = vcombine.high %v915_v37, %v919_v38  ;;  %v922_v44 = vld [vmem:[#allocation9 + $0xfc0] sm:$0xff]  ;;  %v456_v28 = vld [vmem:[#allocation9 + $0x130] sm:$0xff] }
 0x1ae   : > { %v5824_v58 = vcombine.low %v922_v44, %v926_v45  ;;  %v5357_v35 = vcombine.high %v452_v27, %v456_v28  ;;  %v460_v36 = vld [vmem:[#allocation9 + $0x150] sm:$0xff] }
 0x1b0   : > { %3634 = vmatpush1.bf16.msra.mxu0 %v5760_v50  ;;  %3806 = vmatpush1.bf16.msra.mxu1 %v5762_v51  ;;  %v5818_v50 = vcombine.low %v915_v37, %v919_v38  ;;  %v5825_v51 = vcombine.high %v922_v44, %v926_v45  ;;  %v464_v37 = vld [vmem:[#allocation9 + $0x170] sm:$0xff]  ;;  %v461_v38 = vld [vmem:[#allocation9 + $0x158] sm:$0xff] }
 0x1b1   : > { %3635 = vmatprep.subr.bf16.mxu0 %v5769_v52  ;;  %3807 = vmatprep.subr.bf16.mxu1 %v5771_v53  ;;  %v5827_v52 = vcombine.high %v923_v46, %v927_v48  ;;  %v420_v53 = vld [vmem:[#allocation9 + $0x10] sm:$0xff] }
 0x1b2   : > { %v468_v45 = vld [vmem:[#allocation9 + $0x190] sm:$0xff] }
 0x1b4   : > { %3636 = vmatpush1.bf16.msra.mxu0 %v5768_v59  ;;  %3808 = vmatpush1.bf16.msra.mxu1 %v5770_v60  ;;  %v400_v59 = vld [vmem:[#allocation2 + $0x30] sm:$0xff] }
 0x1b5   : > { %3637 = vmatprep.subr.bf16.mxu0 %v5777_v61  ;;  %3809 = vmatprep.subr.bf16.mxu1 %v5779_v63  ;;  %v408_v60 = vld [vmem:[#allocation2 + $0x70] sm:$0xff]  ;;  %v5826_v61 = vcombine.low %v923_v46, %v927_v48  ;;  %v5325_v63 = vcombine.high %v420_v53, %v424_v54  ;;  %v472_v46 = vld [vmem:[#allocation9 + $0x1b0] sm:$0xff]  ;;  %v469_v48 = vld [vmem:[#allocation9 + $0x198] sm:$0xff] }
 0x1b6   : > { %v6840_v3 = vpack.c.bf16 %v408_v60, %v400_v59  ;;  %v5372_v59 = vcombine.low %v468_v45, %v472_v46 }
 0x1b8   : > { %3638 = vmatpush1.bf16.msra.mxu0 %v5776_v4  ;;  %3810 = vmatpush1.bf16.msra.mxu1 %v5778_v5  ;;  %v429_v4 = vld [vmem:[#allocation9 + $0x58] sm:$0xff] }
 0x1b9   : > { %3639 = vmatprep.subr.bf16.mxu0 %v5785_v6  ;;  %3811 = vmatprep.subr.bf16.mxu1 %v5787_v7  ;;  %v433_v5 = vld [vmem:[#allocation9 + $0x78] sm:$0xff]  ;;  %v5324_v6 = vcombine.low %v420_v53, %v424_v54  ;;  %v5326_v7 = vcombine.low %v421_v55, %v425_v56  ;;  %v476_v54 = vld [vmem:[#allocation9 + $0x1d0] sm:$0xff] }
 0x1ba   : > { %v5335_v9 = vcombine.high %v429_v4, %v433_v5  ;;  %v480_v55 = vld [vmem:[#allocation9 + $0x1f0] sm:$0xff]  ;;  %v477_v56 = vld [vmem:[#allocation9 + $0x1d8] sm:$0xff] }
 0x1bc   : > { %3640 = vmatpush1.bf16.msra.mxu0 %v5784_v12  ;;  %3812 = vmatpush1.bf16.msra.mxu1 %v5786_v13  ;;  %v437_v12 = vld [vmem:[#allocation9 + $0x98] sm:$0xff] }
 0x1bd   : > { %3641 = vmatprep.subr.bf16.mxu0 %v5793_v14  ;;  %3813 = vmatprep.subr.bf16.mxu1 %v5795_v15  ;;  %v441_v13 = vld [vmem:[#allocation9 + $0xb8] sm:$0xff]  ;;  %v5332_v14 = vcombine.low %v428_v1, %v432_v2  ;;  %v5334_v15 = vcombine.low %v429_v4, %v433_v5  ;;  %v488_v1 = vld [vmem:[#allocation9 + $0x230] sm:$0xff]  ;;  %v5380_v5 = vcombine.low %v476_v54, %v480_v55 }
 0x1be   : > { %v5343_v17 = vcombine.high %v437_v12, %v441_v13  ;;  %v485_v2 = vld [vmem:[#allocation9 + $0x218] sm:$0xff] }
 0x1bf   : > { %v489_v4 = vld [vmem:[#allocation9 + $0x238] sm:$0xff] }
 0x1c0   : > { %3642 = vmatpush1.bf16.msra.mxu0 %v5792_v21  ;;  %3814 = vmatpush1.bf16.msra.mxu1 %v5794_v22  ;;  %v445_v21 = vld [vmem:[#allocation9 + $0xd8] sm:$0xff] }
 0x1c1   : > { %3643 = vmatprep.subr.bf16.mxu0 %v5801_v23  ;;  %3815 = vmatprep.subr.bf16.mxu1 %v5803_v24  ;;  %v449_v22 = vld [vmem:[#allocation9 + $0xf8] sm:$0xff]  ;;  %v5340_v23 = vcombine.low %v436_v10, %v440_v11  ;;  %v5342_v24 = vcombine.low %v437_v12, %v441_v13  ;;  %v496_v10 = vld [vmem:[#allocation9 + $0x270] sm:$0xff] }
 0x1c2   : > { %v5351_v26 = vcombine.high %v445_v21, %v449_v22  ;;  %v493_v11 = vld [vmem:[#allocation9 + $0x258] sm:$0xff] }
 0x1c3   : > { %v497_v12 = vld [vmem:[#allocation9 + $0x278] sm:$0xff] }
 0x1c4   : > { %3644 = vmatpush1.bf16.msra.mxu0 %v5800_v30  ;;  %3816 = vmatpush1.bf16.msra.mxu1 %v5802_v31  ;;  %v453_v30 = vld [vmem:[#allocation9 + $0x118] sm:$0xff] }
 0x1c5   : > { %3645 = vmatprep.subr.bf16.mxu0 %v5809_v32  ;;  %3817 = vmatprep.subr.bf16.mxu1 %v5811_v33  ;;  %v457_v31 = vld [vmem:[#allocation9 + $0x138] sm:$0xff]  ;;  %v5348_v32 = vcombine.low %v444_v18, %v448_v20  ;;  %v5350_v33 = vcombine.low %v445_v21, %v449_v22  ;;  %v504_v18 = vld [vmem:[#allocation9 + $0x2b0] sm:$0xff] }
 0x1c6   : > { %v501_v20 = vld [vmem:[#allocation9 + $0x298] sm:$0xff] }
 0x1c7   : > { %v505_v21 = vld [vmem:[#allocation9 + $0x2b8] sm:$0xff] }
 0x1c8   : > { %3646 = vmatpush1.bf16.msra.mxu0 %v5808_v39  ;;  %3818 = vmatpush1.bf16.msra.mxu1 %v5810_v40  ;;  %v465_v39 = vld [vmem:[#allocation9 + $0x178] sm:$0xff]  ;;  %v5356_v40 = vcombine.low %v452_v27, %v456_v28  ;;  %v512_v27 = vld [vmem:[#allocation9 + $0x2f0] sm:$0xff] }
 0x1c9   : > { %3647 = vmatprep.subr.bf16.mxu0 %v5817_v41  ;;  %3819 = vmatprep.subr.bf16.mxu1 %v5819_v42  ;;  %v5358_v41 = vcombine.low %v453_v30, %v457_v31  ;;  %v5365_v42 = vcombine.high %v460_v36, %v464_v37  ;;  %v5367_v44 = vcombine.high %v461_v38, %v465_v39  ;;  %v509_v28 = vld [vmem:[#allocation9 + $0x2d8] sm:$0xff] }
 0x1cc   : > { %3648 = vmatpush1.bf16.msra.mxu0 %v5816_v49  ;;  %3820 = vmatpush1.bf16.msra.mxu1 %v5818_v50  ;;  %v473_v49 = vld [vmem:[#allocation9 + $0x1b8] sm:$0xff]  ;;  %v5364_v50 = vcombine.low %v460_v36, %v464_v37  ;;  %v520_v36 = vld [vmem:[#allocation9 + $0x330] sm:$0xff] }
 0x1cd   : > { %3649 = vmatprep.subr.bf16.mxu0 %v5825_v51  ;;  %3821 = vmatprep.subr.bf16.mxu1 %v5827_v52  ;;  %v5366_v51 = vcombine.low %v461_v38, %v465_v39  ;;  %v5373_v52 = vcombine.high %v468_v45, %v472_v46  ;;  %v5375_v53 = vcombine.high %v469_v48, %v473_v49  ;;  %v517_v37 = vld [vmem:[#allocation9 + $0x318] sm:$0xff]  ;;  %v528_v45 = vld [vmem:[#allocation9 + $0x370] sm:$0xff] }
 0x1ce   : > { %v5374_v60 = vcombine.low %v469_v48, %v473_v49  ;;  %v521_v38 = vld [vmem:[#allocation9 + $0x338] sm:$0xff] }
 0x1cf   : > { %v525_v46 = vld [vmem:[#allocation9 + $0x358] sm:$0xff] }
 0x1d0   : > { %3650 = vmatpush1.bf16.msra.mxu0 %v5824_v58  ;;  %3822 = vmatpush1.bf16.msra.mxu1 %v5826_v61  ;;  %v481_v58 = vld [vmem:[#allocation9 + $0x1f8] sm:$0xff]  ;;  %v5381_v61 = vcombine.high %v476_v54, %v480_v55  ;;  %v536_v54 = vld [vmem:[#allocation9 + $0x3b0] sm:$0xff] }
 0x1d1   : > { %3834 = vmatprep.subr.bf16.mxu0 %v5325_v63  ;;  %4006 = vmatprep.subr.bf16.mxu1 %v5327_v0  ;;  %v5383_v63 = vcombine.high %v477_v56, %v481_v58  ;;  %v484_v0 = vld [vmem:[#allocation9 + $0x210] sm:$0xff]  ;;  %v529_v48 = vld [vmem:[#allocation9 + $0x378] sm:$0xff] }
 0x1d2   : > { %v5388_v13 = vcombine.low %v484_v0, %v488_v1  ;;  %v533_v55 = vld [vmem:[#allocation9 + $0x398] sm:$0xff] }
 0x1d3   : > { %3652 = vmatmul.mubr.bf16.vlgmr.msra.gmra.mrb[0].mxu0 %v6840_v3  ;;  %3824 = vmatmul.mubr.bf16.vlgmr.msra.gmra.mrb[0].mxu1 %v6840_v3 }
 0x1d4   : > { %3835 = vmatpush1.bf16.msra.mxu0 %v5324_v6  ;;  %4007 = vmatpush1.bf16.msra.mxu1 %v5326_v7  ;;  %v5382_v6 = vcombine.low %v477_v56, %v481_v58  ;;  %v5389_v7 = vcombine.high %v484_v0, %v488_v1  ;;  %v537_v56 = vld [vmem:[#allocation9 + $0x3b8] sm:$0xff]  ;;  %v544_v0 = vld [vmem:[#allocation9 + $0x3f0] sm:$0xff] }
 0x1d5   : > { %3836 = vmatprep.subr.bf16.mxu0 %v5333_v8  ;;  %4008 = vmatprep.subr.bf16.mxu1 %v5335_v9  ;;  %v5391_v8 = vcombine.high %v485_v2, %v489_v4  ;;  %v492_v9 = vld [vmem:[#allocation9 + $0x250] sm:$0xff]  ;;  %v541_v1 = vld [vmem:[#allocation9 + $0x3d8] sm:$0xff] }
 0x1d6   : > { %3866 = vmatprep.mubr.bf16.mxu0 %v6812_v62  ;;  %4038 = vmatprep.mubr.bf16.mxu1 %v6812_v62  ;;  %v5359_v62 = vcombine.high %v453_v30, %v457_v31  ;;  %v5396_v22 = vcombine.low %v492_v9, %v496_v10  ;;  %v513_v30 = vld [vmem:[#allocation9 + $0x2f8] sm:$0xff] }
 0x1d8   : > { %3837 = vmatpush1.bf16.msra.mxu0 %v5332_v14  ;;  %4009 = vmatpush1.bf16.msra.mxu1 %v5334_v15  ;;  %v5390_v14 = vcombine.low %v485_v2, %v489_v4  ;;  %v5397_v15 = vcombine.high %v492_v9, %v496_v10  ;;  %v545_v2 = vld [vmem:[#allocation9 + $0x3f8] sm:$0xff]  ;;  %v552_v9 = vld [vmem:[#allocation9 + $0x430] sm:$0xff] }
 0x1d9   : > { %3838 = vmatprep.subr.bf16.mxu0 %v5341_v16  ;;  %4010 = vmatprep.subr.bf16.mxu1 %v5343_v17  ;;  %v5399_v16 = vcombine.high %v493_v11, %v497_v12  ;;  %v500_v17 = vld [vmem:[#allocation9 + $0x290] sm:$0xff]  ;;  %v549_v10 = vld [vmem:[#allocation9 + $0x418] sm:$0xff] }
 0x1da   : > { %v5404_v31 = vcombine.low %v500_v17, %v504_v18 }
 0x1dc   : > { %3839 = vmatpush1.bf16.msra.mxu0 %v5340_v23  ;;  %4011 = vmatpush1.bf16.msra.mxu1 %v5342_v24  ;;  %v5398_v23 = vcombine.low %v493_v11, %v497_v12  ;;  %v5405_v24 = vcombine.high %v500_v17, %v504_v18  ;;  %v553_v11 = vld [vmem:[#allocation9 + $0x438] sm:$0xff]  ;;  %v560_v17 = vld [vmem:[#allocation9 + $0x470] sm:$0xff] }
 0x1dd   : > { %3840 = vmatprep.subr.bf16.mxu0 %v5349_v25  ;;  %4012 = vmatprep.subr.bf16.mxu1 %v5351_v26  ;;  %v5407_v25 = vcombine.high %v501_v20, %v505_v21  ;;  %v508_v26 = vld [vmem:[#allocation9 + $0x2d0] sm:$0xff]  ;;  %v557_v18 = vld [vmem:[#allocation9 + $0x458] sm:$0xff] }
 0x1de   : > { %v5412_v39 = vcombine.low %v508_v26, %v512_v27 }
 0x1e0   : > { %3841 = vmatpush1.bf16.msra.mxu0 %v5348_v32  ;;  %4013 = vmatpush1.bf16.msra.mxu1 %v5350_v33  ;;  %v5406_v32 = vcombine.low %v501_v20, %v505_v21  ;;  %v5413_v33 = vcombine.high %v508_v26, %v512_v27  ;;  %v561_v20 = vld [vmem:[#allocation9 + $0x478] sm:$0xff]  ;;  %v568_v26 = vld [vmem:[#allocation9 + $0x4b0] sm:$0xff] }
 0x1e1   : > { %3842 = vmatprep.subr.bf16.mxu0 %v5357_v35  ;;  %4014 = vmatprep.subr.bf16.mxu1 %v5359_v62  ;;  %v5415_v35 = vcombine.high %v509_v28, %v513_v30  ;;  %v516_v62 = vld [vmem:[#allocation9 + $0x310] sm:$0xff]  ;;  %v565_v27 = vld [vmem:[#allocation9 + $0x498] sm:$0xff] }
 0x1e2   : > { %v5420_v49 = vcombine.low %v516_v62, %v520_v36 }
 0x1e4   : > { %3843 = vmatpush1.bf16.msra.mxu0 %v5356_v40  ;;  %4015 = vmatpush1.bf16.msra.mxu1 %v5358_v41  ;;  %v5414_v40 = vcombine.low %v509_v28, %v513_v30  ;;  %v5421_v41 = vcombine.high %v516_v62, %v520_v36  ;;  %v569_v28 = vld [vmem:[#allocation9 + $0x4b8] sm:$0xff]  ;;  %v576_v62 = vld [vmem:[#allocation9 + $0x4f0] sm:$0xff] }
 0x1e5   : > { %3844 = vmatprep.subr.bf16.mxu0 %v5365_v42  ;;  %4016 = vmatprep.subr.bf16.mxu1 %v5367_v44  ;;  %v5423_v42 = vcombine.high %v517_v37, %v521_v38  ;;  %v524_v44 = vld [vmem:[#allocation9 + $0x350] sm:$0xff]  ;;  %v573_v36 = vld [vmem:[#allocation9 + $0x4d8] sm:$0xff] }
 0x1e6   : > { %v5428_v58 = vcombine.low %v524_v44, %v528_v45 }
 0x1e8   : > { %3845 = vmatpush1.bf16.msra.mxu0 %v5364_v50  ;;  %4017 = vmatpush1.bf16.msra.mxu1 %v5366_v51  ;;  %v5422_v50 = vcombine.low %v517_v37, %v521_v38  ;;  %v5429_v51 = vcombine.high %v524_v44, %v528_v45  ;;  %v577_v37 = vld [vmem:[#allocation9 + $0x4f8] sm:$0xff] }
 0x1e9   : > { %3846 = vmatprep.subr.bf16.mxu0 %v5373_v52  ;;  %4018 = vmatprep.subr.bf16.mxu1 %v5375_v53  ;;  %v5431_v52 = vcombine.high %v525_v46, %v529_v48  ;;  %v532_v53 = vld [vmem:[#allocation9 + $0x390] sm:$0xff]  ;;  %v581_v44 = vld [vmem:[#allocation9 + $0x518] sm:$0xff] }
 0x1ea   : > { %v5436_v4 = vcombine.low %v532_v53, %v536_v54  ;;  %v585_v45 = vld [vmem:[#allocation9 + $0x538] sm:$0xff] }
 0x1ec   : > { %3847 = vmatpush1.bf16.msra.mxu0 %v5372_v59  ;;  %4019 = vmatpush1.bf16.msra.mxu1 %v5374_v60  ;;  %v5430_v59 = vcombine.low %v525_v46, %v529_v48  ;;  %v5437_v60 = vcombine.high %v532_v53, %v536_v54  ;;  %v5478_v48 = vcombine.low %v573_v36, %v577_v37  ;;  %v593_v53 = vld [vmem:[#allocation9 + $0x578] sm:$0xff] }
 0x1ed   : > { %3848 = vmatprep.subr.bf16.mxu0 %v5381_v61  ;;  %4020 = vmatprep.subr.bf16.mxu1 %v5383_v63  ;;  %v5439_v61 = vcombine.high %v533_v55, %v537_v56  ;;  %v540_v63 = vld [vmem:[#allocation9 + $0x3d0] sm:$0xff] }
 0x1ee   : > { %v5444_v12 = vcombine.low %v540_v63, %v544_v0 }
 0x1f0   : > { %3849 = vmatpush1.bf16.msra.mxu0 %v5380_v5  ;;  %4021 = vmatpush1.bf16.msra.mxu1 %v5382_v6  ;;  %v5438_v5 = vcombine.low %v533_v55, %v537_v56  ;;  %v5445_v6 = vcombine.high %v540_v63, %v544_v0  ;;  %v5486_v55 = vcombine.low %v581_v44, %v585_v45  ;;  %v601_v63 = vld [vmem:[#allocation9 + $0x5b8] sm:$0xff] }
 0x1f1   : > { %3850 = vmatprep.subr.bf16.mxu0 %v5389_v7  ;;  %4022 = vmatprep.subr.bf16.mxu1 %v5391_v8  ;;  %v5447_v7 = vcombine.high %v541_v1, %v545_v2  ;;  %v548_v8 = vld [vmem:[#allocation9 + $0x410] sm:$0xff] }
 0x1f2   : > { %v5452_v21 = vcombine.low %v548_v8, %v552_v9 }
 0x1f4   : > { %3851 = vmatpush1.bf16.msra.mxu0 %v5388_v13  ;;  %4023 = vmatpush1.bf16.msra.mxu1 %v5390_v14  ;;  %v5446_v13 = vcombine.low %v541_v1, %v545_v2  ;;  %v5453_v14 = vcombine.high %v548_v8, %v552_v9  ;;  %v609_v8 = vld [vmem:[#allocation9 + $0x5f8] sm:$0xff] }
 0x1f5   : > { %3852 = vmatprep.subr.bf16.mxu0 %v5397_v15  ;;  %4024 = vmatprep.subr.bf16.mxu1 %v5399_v16  ;;  %v5455_v15 = vcombine.high %v549_v10, %v553_v11  ;;  %v556_v16 = vld [vmem:[#allocation9 + $0x450] sm:$0xff] }
 0x1f6   : > { %v5460_v30 = vcombine.low %v556_v16, %v560_v17 }
 0x1f8   : > { %3853 = vmatpush1.bf16.msra.mxu0 %v5396_v22  ;;  %4025 = vmatpush1.bf16.msra.mxu1 %v5398_v23  ;;  %v5454_v22 = vcombine.low %v549_v10, %v553_v11  ;;  %v5461_v23 = vcombine.high %v556_v16, %v560_v17  ;;  %v617_v16 = vld [vmem:[#allocation9 + $0x638] sm:$0xff] }
 0x1f9   : > { %3854 = vmatprep.subr.bf16.mxu0 %v5405_v24  ;;  %4026 = vmatprep.subr.bf16.mxu1 %v5407_v25  ;;  %v5463_v24 = vcombine.high %v557_v18, %v561_v20  ;;  %v564_v25 = vld [vmem:[#allocation9 + $0x490] sm:$0xff] }
 0x1fa   : > { %v5468_v38 = vcombine.low %v564_v25, %v568_v26 }
 0x1fc   : > { %3855 = vmatpush1.bf16.msra.mxu0 %v5404_v31  ;;  %4027 = vmatpush1.bf16.msra.mxu1 %v5406_v32  ;;  %v5462_v31 = vcombine.low %v557_v18, %v561_v20  ;;  %v5469_v32 = vcombine.high %v564_v25, %v568_v26  ;;  %v625_v25 = vld [vmem:[#allocation9 + $0x678] sm:$0xff] }
 0x1fd   : > { %3856 = vmatprep.subr.bf16.mxu0 %v5413_v33  ;;  %4028 = vmatprep.subr.bf16.mxu1 %v5415_v35  ;;  %v5471_v33 = vcombine.high %v565_v27, %v569_v28  ;;  %v572_v35 = vld [vmem:[#allocation9 + $0x4d0] sm:$0xff] }
 0x1fe   : > { %v5476_v46 = vcombine.low %v572_v35, %v576_v62 }
 0x200   : > { %3857 = vmatpush1.bf16.msra.mxu0 %v5412_v39  ;;  %4029 = vmatpush1.bf16.msra.mxu1 %v5414_v40  ;;  %v5477_v39 = vcombine.high %v572_v35, %v576_v62  ;;  %v5479_v40 = vcombine.high %v573_v36, %v577_v37  ;;  %v633_v35 = vld [vmem:[#allocation9 + $0x6b8] sm:$0xff] }
 0x201   : > { %3858 = vmatprep.subr.bf16.mxu0 %v5421_v41  ;;  %4030 = vmatprep.subr.bf16.mxu1 %v5423_v42  ;;  %v580_v41 = vld [vmem:[#allocation9 + $0x510] sm:$0xff] }
 0x202   : > { %v584_v42 = vld [vmem:[#allocation9 + $0x530] sm:$0xff] }
 0x203   : > { %v5484_v54 = vcombine.low %v580_v41, %v584_v42 }
 0x204   : > { %3859 = vmatpush1.bf16.msra.mxu0 %v5420_v49  ;;  %4031 = vmatpush1.bf16.msra.mxu1 %v5422_v50  ;;  %v5485_v49 = vcombine.high %v580_v41, %v584_v42  ;;  %v588_v50 = vld [vmem:[#allocation9 + $0x550] sm:$0xff]  ;;  %v641_v41 = vld [vmem:[#allocation9 + $0x6f8] sm:$0xff] }
 0x205   : > { %3860 = vmatprep.subr.bf16.mxu0 %v5429_v51  ;;  %4032 = vmatprep.subr.bf16.mxu1 %v5431_v52  ;;  %v592_v51 = vld [vmem:[#allocation9 + $0x570] sm:$0xff]  ;;  %v589_v52 = vld [vmem:[#allocation9 + $0x558] sm:$0xff] }
 0x206   : > { %v5493_v56 = vcombine.high %v588_v50, %v592_v51  ;;  %v5492_v0 = vcombine.low %v588_v50, %v592_v51  ;;  %v5494_v1 = vcombine.low %v589_v52, %v593_v53  ;;  %v649_v50 = vld [vmem:[#allocation9 + $0x738] sm:$0xff] }
 0x208   : > { %3861 = vmatpush1.bf16.msra.mxu0 %v5428_v58  ;;  %4033 = vmatpush1.bf16.msra.mxu1 %v5430_v59  ;;  %v5495_v58 = vcombine.high %v589_v52, %v593_v53  ;;  %v596_v59 = vld [vmem:[#allocation9 + $0x590] sm:$0xff] }
 0x209   : > { %3862 = vmatprep.subr.bf16.mxu0 %v5437_v60  ;;  %4034 = vmatprep.subr.bf16.mxu1 %v5439_v61  ;;  %v600_v60 = vld [vmem:[#allocation9 + $0x5b0] sm:$0xff]  ;;  %v597_v61 = vld [vmem:[#allocation9 + $0x598] sm:$0xff] }
 0x20a   : > { %v5501_v2 = vcombine.high %v596_v59, %v600_v60  ;;  %v5500_v9 = vcombine.low %v596_v59, %v600_v60  ;;  %v5502_v10 = vcombine.low %v597_v61, %v601_v63  ;;  %v657_v59 = vld [vmem:[#allocation9 + $0x778] sm:$0xff] }
 0x20c   : > { %3863 = vmatpush1.bf16.msra.mxu0 %v5436_v4  ;;  %4035 = vmatpush1.bf16.msra.mxu1 %v5438_v5  ;;  %v5503_v4 = vcombine.high %v597_v61, %v601_v63  ;;  %v604_v5 = vld [vmem:[#allocation9 + $0x5d0] sm:$0xff] }
 0x20d   : > { %3864 = vmatprep.subr.bf16.mxu0 %v5445_v6  ;;  %4036 = vmatprep.subr.bf16.mxu1 %v5447_v7  ;;  %v608_v6 = vld [vmem:[#allocation9 + $0x5f0] sm:$0xff]  ;;  %v605_v7 = vld [vmem:[#allocation9 + $0x5d8] sm:$0xff] }
 0x20e   : > { %v5509_v11 = vcombine.high %v604_v5, %v608_v6  ;;  %v5508_v17 = vcombine.low %v604_v5, %v608_v6  ;;  %v5510_v18 = vcombine.low %v605_v7, %v609_v8  ;;  %v665_v5 = vld [vmem:[#allocation9 + $0x7b8] sm:$0xff] }
 0x210   : > { %3865 = vmatpush1.bf16.msra.mxu0 %v5444_v12  ;;  %4037 = vmatpush1.bf16.msra.mxu1 %v5446_v13  ;;  %v5511_v12 = vcombine.high %v605_v7, %v609_v8  ;;  %v612_v13 = vld [vmem:[#allocation9 + $0x610] sm:$0xff] }
 0x211   : > { %3877 = vmatprep.subr.bf16.mxu0 %v5453_v14  ;;  %4049 = vmatprep.subr.bf16.mxu1 %v5455_v15  ;;  %v616_v14 = vld [vmem:[#allocation9 + $0x630] sm:$0xff]  ;;  %v613_v15 = vld [vmem:[#allocation9 + $0x618] sm:$0xff] }
 0x212   : > { %v5517_v20 = vcombine.high %v612_v13, %v616_v14  ;;  %v5516_v26 = vcombine.low %v612_v13, %v616_v14  ;;  %v673_v13 = vld [vmem:[#allocation9 + $0x7f8] sm:$0xff] }
 0x213   : > { %3867 = vmatmul.mubr.bf16.vlgmr.msra.gmra.mrb[4].mxu0 %v6816_v19  ;;  %4039 = vmatmul.mubr.bf16.vlgmr.msra.gmra.mrb[4].mxu1 %v6816_v19  ;;  %v5470_v19 = vcombine.low %v565_v27, %v569_v28  ;;  %v5518_v27 = vcombine.low %v613_v15, %v617_v16 }
 0x214   : > { %3878 = vmatpush1.bf16.msra.mxu0 %v5452_v21  ;;  %4050 = vmatpush1.bf16.msra.mxu1 %v5454_v22  ;;  %v5519_v21 = vcombine.high %v613_v15, %v617_v16  ;;  %v620_v22 = vld [vmem:[#allocation9 + $0x650] sm:$0xff] }
 0x215   : > { %3879 = vmatprep.subr.bf16.mxu0 %v5461_v23  ;;  %4051 = vmatprep.subr.bf16.mxu1 %v5463_v24  ;;  %v624_v23 = vld [vmem:[#allocation9 + $0x670] sm:$0xff]  ;;  %v621_v24 = vld [vmem:[#allocation9 + $0x658] sm:$0xff] }
 0x216   : > { %3909 = vmatprep.mubr.bf16.mxu0 %v6818_v29  ;;  %4081 = vmatprep.mubr.bf16.mxu1 %v6818_v29  ;;  %v5487_v29 = vcombine.high %v581_v44, %v585_v45  ;;  %v5525_v28 = vcombine.high %v620_v22, %v624_v23  ;;  %v5524_v62 = vcombine.low %v620_v22, %v624_v23  ;;  %v681_v22 = vld [vmem:[#allocation9 + $0x838] sm:$0xff] }
 0x217   : > { %v5526_v36 = vcombine.low %v621_v24, %v625_v25 }
 0x218   : > { %3880 = vmatpush1.bf16.msra.mxu0 %v5460_v30  ;;  %4052 = vmatpush1.bf16.msra.mxu1 %v5462_v31  ;;  %v5527_v30 = vcombine.high %v621_v24, %v625_v25  ;;  %v628_v31 = vld [vmem:[#allocation9 + $0x690] sm:$0xff] }
 0x219   : > { %3881 = vmatprep.subr.bf16.mxu0 %v5469_v32  ;;  %4053 = vmatprep.subr.bf16.mxu1 %v5471_v33  ;;  %v632_v32 = vld [vmem:[#allocation9 + $0x6b0] sm:$0xff]  ;;  %v629_v33 = vld [vmem:[#allocation9 + $0x698] sm:$0xff] }
 0x21a   : > { %v5533_v37 = vcombine.high %v628_v31, %v632_v32  ;;  %v5532_v42 = vcombine.low %v628_v31, %v632_v32  ;;  %v5534_v44 = vcombine.low %v629_v33, %v633_v35  ;;  %v689_v31 = vld [vmem:[#allocation9 + $0x878] sm:$0xff] }
 0x21c   : > { %3882 = vmatpush1.bf16.msra.mxu0 %v5468_v38  ;;  %4054 = vmatpush1.bf16.msra.mxu1 %v5470_v19  ;;  %v5535_v38 = vcombine.high %v629_v33, %v633_v35  ;;  %v636_v19 = vld [vmem:[#allocation9 + $0x6d0] sm:$0xff] }
 0x21d   : > { %3883 = vmatprep.subr.bf16.mxu0 %v5477_v39  ;;  %4055 = vmatprep.subr.bf16.mxu1 %v5479_v40  ;;  %v640_v39 = vld [vmem:[#allocation9 + $0x6f0] sm:$0xff]  ;;  %v637_v40 = vld [vmem:[#allocation9 + $0x6d8] sm:$0xff] }
 0x21e   : > { %v5541_v45 = vcombine.high %v636_v19, %v640_v39  ;;  %v5540_v51 = vcombine.low %v636_v19, %v640_v39  ;;  %v5542_v52 = vcombine.low %v637_v40, %v641_v41  ;;  %v697_v19 = vld [vmem:[#allocation9 + $0x8b8] sm:$0xff] }
 0x220   : > { %3884 = vmatpush1.bf16.msra.mxu0 %v5476_v46  ;;  %4056 = vmatpush1.bf16.msra.mxu1 %v5478_v48  ;;  %v5543_v46 = vcombine.high %v637_v40, %v641_v41  ;;  %v644_v48 = vld [vmem:[#allocation9 + $0x710] sm:$0xff] }
 0x221   : > { %3885 = vmatprep.subr.bf16.mxu0 %v5485_v49  ;;  %4057 = vmatprep.subr.bf16.mxu1 %v5487_v29  ;;  %v648_v49 = vld [vmem:[#allocation9 + $0x730] sm:$0xff]  ;;  %v645_v29 = vld [vmem:[#allocation9 + $0x718] sm:$0xff] }
 0x222   : > { %v5549_v53 = vcombine.high %v644_v48, %v648_v49  ;;  %v5548_v60 = vcombine.low %v644_v48, %v648_v49  ;;  %v5550_v61 = vcombine.low %v645_v29, %v649_v50  ;;  %v705_v48 = vld [vmem:[#allocation9 + $0x8f8] sm:$0xff] }
 0x224   : > { %3886 = vmatpush1.bf16.msra.mxu0 %v5484_v54  ;;  %4058 = vmatpush1.bf16.msra.mxu1 %v5486_v55  ;;  %v5551_v54 = vcombine.high %v645_v29, %v649_v50  ;;  %v652_v55 = vld [vmem:[#allocation9 + $0x750] sm:$0xff] }
 0x225   : > { %3887 = vmatprep.subr.bf16.mxu0 %v5493_v56  ;;  %4059 = vmatprep.subr.bf16.mxu1 %v5495_v58  ;;  %v656_v56 = vld [vmem:[#allocation9 + $0x770] sm:$0xff]  ;;  %v653_v58 = vld [vmem:[#allocation9 + $0x758] sm:$0xff] }
 0x226   : > { %v5557_v63 = vcombine.high %v652_v55, %v656_v56  ;;  %v5556_v6 = vcombine.low %v652_v55, %v656_v56  ;;  %v5558_v7 = vcombine.low %v653_v58, %v657_v59 }
 0x228   : > { %3888 = vmatpush1.bf16.msra.mxu0 %v5492_v0  ;;  %4060 = vmatpush1.bf16.msra.mxu1 %v5494_v1  ;;  %v5559_v0 = vcombine.high %v653_v58, %v657_v59  ;;  %v660_v1 = vld [vmem:[#allocation9 + $0x790] sm:$0xff] }
 0x229   : > { %3889 = vmatprep.subr.bf16.mxu0 %v5501_v2  ;;  %4061 = vmatprep.subr.bf16.mxu1 %v5503_v4  ;;  %v664_v2 = vld [vmem:[#allocation9 + $0x7b0] sm:$0xff]  ;;  %v661_v4 = vld [vmem:[#allocation9 + $0x798] sm:$0xff] }
 0x22a   : > { %v5565_v8 = vcombine.high %v660_v1, %v664_v2  ;;  %v5564_v14 = vcombine.low %v660_v1, %v664_v2  ;;  %v5566_v15 = vcombine.low %v661_v4, %v665_v5  ;;  %v716_v59 = vld [vmem:[#allocation9 + $0x950] sm:$0xff] }
 0x22c   : > { %3890 = vmatpush1.bf16.msra.mxu0 %v5500_v9  ;;  %4062 = vmatpush1.bf16.msra.mxu1 %v5502_v10  ;;  %v5567_v9 = vcombine.high %v661_v4, %v665_v5  ;;  %v668_v10 = vld [vmem:[#allocation9 + $0x7d0] sm:$0xff] }
 0x22d   : > { %3891 = vmatprep.subr.bf16.mxu0 %v5509_v11  ;;  %4063 = vmatprep.subr.bf16.mxu1 %v5511_v12  ;;  %v672_v11 = vld [vmem:[#allocation9 + $0x7f0] sm:$0xff]  ;;  %v669_v12 = vld [vmem:[#allocation9 + $0x7d8] sm:$0xff] }
 0x22e   : > { %v5573_v16 = vcombine.high %v668_v10, %v672_v11  ;;  %v5572_v23 = vcombine.low %v668_v10, %v672_v11  ;;  %v5574_v24 = vcombine.low %v669_v12, %v673_v13  ;;  %v724_v5 = vld [vmem:[#allocation9 + $0x990] sm:$0xff] }
 0x230   : > { %3892 = vmatpush1.bf16.msra.mxu0 %v5508_v17  ;;  %4064 = vmatpush1.bf16.msra.mxu1 %v5510_v18  ;;  %v5575_v17 = vcombine.high %v669_v12, %v673_v13  ;;  %v676_v18 = vld [vmem:[#allocation9 + $0x810] sm:$0xff] }
 0x231   : > { %3893 = vmatprep.subr.bf16.mxu0 %v5517_v20  ;;  %4065 = vmatprep.subr.bf16.mxu1 %v5519_v21  ;;  %v680_v20 = vld [vmem:[#allocation9 + $0x830] sm:$0xff]  ;;  %v677_v21 = vld [vmem:[#allocation9 + $0x818] sm:$0xff] }
 0x232   : > { %v5581_v25 = vcombine.high %v676_v18, %v680_v20  ;;  %v5580_v32 = vcombine.low %v676_v18, %v680_v20  ;;  %v5582_v33 = vcombine.low %v677_v21, %v681_v22  ;;  %v732_v13 = vld [vmem:[#allocation9 + $0x9d0] sm:$0xff] }
 0x234   : > { %3894 = vmatpush1.bf16.msra.mxu0 %v5516_v26  ;;  %4066 = vmatpush1.bf16.msra.mxu1 %v5518_v27  ;;  %v5583_v26 = vcombine.high %v677_v21, %v681_v22  ;;  %v684_v27 = vld [vmem:[#allocation9 + $0x850] sm:$0xff] }
 0x235   : > { %3895 = vmatprep.subr.bf16.mxu0 %v5525_v28  ;;  %4067 = vmatprep.subr.bf16.mxu1 %v5527_v30  ;;  %v688_v28 = vld [vmem:[#allocation9 + $0x870] sm:$0xff]  ;;  %v685_v30 = vld [vmem:[#allocation9 + $0x858] sm:$0xff] }
 0x236   : > { %v5589_v35 = vcombine.high %v684_v27, %v688_v28  ;;  %v5588_v39 = vcombine.low %v684_v27, %v688_v28  ;;  %v5590_v40 = vcombine.low %v685_v30, %v689_v31  ;;  %v740_v22 = vld [vmem:[#allocation9 + $0xa10] sm:$0xff] }
 0x238   : > { %3896 = vmatpush1.bf16.msra.mxu0 %v5524_v62  ;;  %4068 = vmatpush1.bf16.msra.mxu1 %v5526_v36  ;;  %v5591_v62 = vcombine.high %v685_v30, %v689_v31  ;;  %v692_v36 = vld [vmem:[#allocation9 + $0x890] sm:$0xff] }
 0x239   : > { %3897 = vmatprep.subr.bf16.mxu0 %v5533_v37  ;;  %4069 = vmatprep.subr.bf16.mxu1 %v5535_v38  ;;  %v696_v37 = vld [vmem:[#allocation9 + $0x8b0] sm:$0xff]  ;;  %v693_v38 = vld [vmem:[#allocation9 + $0x898] sm:$0xff] }
 0x23a   : > { %v5597_v41 = vcombine.high %v692_v36, %v696_v37  ;;  %v5596_v49 = vcombine.low %v692_v36, %v696_v37  ;;  %v748_v31 = vld [vmem:[#allocation9 + $0xa50] sm:$0xff] }
 0x23c   : > { %3898 = vmatpush1.bf16.msra.mxu0 %v5532_v42  ;;  %4070 = vmatpush1.bf16.msra.mxu1 %v5534_v44  ;;  %v5599_v42 = vcombine.high %v693_v38, %v697_v19  ;;  %v700_v44 = vld [vmem:[#allocation9 + $0x8d0] sm:$0xff] }
 0x23d   : > { %3899 = vmatprep.subr.bf16.mxu0 %v5541_v45  ;;  %4071 = vmatprep.subr.bf16.mxu1 %v5543_v46  ;;  %v704_v45 = vld [vmem:[#allocation9 + $0x8f0] sm:$0xff]  ;;  %v701_v46 = vld [vmem:[#allocation9 + $0x8d8] sm:$0xff] }
 0x23e   : > { %v5605_v29 = vcombine.high %v700_v44, %v704_v45  ;;  %v5607_v50 = vcombine.high %v701_v46, %v705_v48  ;;  %v5604_v55 = vcombine.low %v700_v44, %v704_v45  ;;  %v5606_v56 = vcombine.low %v701_v46, %v705_v48  ;;  %v764_v48 = vld [vmem:[#allocation9 + $0xad0] sm:$0xff] }
 0x240   : > { %3900 = vmatpush1.bf16.msra.mxu0 %v5540_v51  ;;  %4072 = vmatpush1.bf16.msra.mxu1 %v5542_v52  ;;  %v708_v51 = vld [vmem:[#allocation9 + $0x910] sm:$0xff] }
 0x241   : > { %3901 = vmatprep.subr.bf16.mxu0 %v5549_v53  ;;  %4073 = vmatprep.subr.bf16.mxu1 %v5551_v54  ;;  %v712_v52 = vld [vmem:[#allocation9 + $0x930] sm:$0xff]  ;;  %v709_v53 = vld [vmem:[#allocation9 + $0x918] sm:$0xff] }
 0x242   : > { %v713_v54 = vld [vmem:[#allocation9 + $0x938] sm:$0xff]  ;;  %v5613_v58 = vcombine.high %v708_v51, %v712_v52 }
 0x243   : > { %v5614_v1 = vcombine.low %v709_v53, %v713_v54 }
 0x244   : > { %3902 = vmatpush1.bf16.msra.mxu0 %v5548_v60  ;;  %4074 = vmatpush1.bf16.msra.mxu1 %v5550_v61  ;;  %v720_v60 = vld [vmem:[#allocation9 + $0x970] sm:$0xff]  ;;  %v717_v61 = vld [vmem:[#allocation9 + $0x958] sm:$0xff] }
 0x245   : > { %3903 = vmatprep.subr.bf16.mxu0 %v5557_v63  ;;  %4075 = vmatprep.subr.bf16.mxu1 %v5559_v0  ;;  %v721_v63 = vld [vmem:[#allocation9 + $0x978] sm:$0xff]  ;;  %v5612_v0 = vcombine.low %v708_v51, %v712_v52  ;;  %v5621_v2 = vcombine.high %v716_v59, %v720_v60 }
 0x246   : > { %v5623_v4 = vcombine.high %v717_v61, %v721_v63  ;;  %v5622_v10 = vcombine.low %v717_v61, %v721_v63  ;;  %v780_v63 = vld [vmem:[#allocation9 + $0xb50] sm:$0xff] }
 0x248   : > { %3904 = vmatpush1.bf16.msra.mxu0 %v5556_v6  ;;  %4076 = vmatpush1.bf16.msra.mxu1 %v5558_v7  ;;  %v728_v6 = vld [vmem:[#allocation9 + $0x9b0] sm:$0xff]  ;;  %v725_v7 = vld [vmem:[#allocation9 + $0x998] sm:$0xff] }
 0x249   : > { %3905 = vmatprep.subr.bf16.mxu0 %v5565_v8  ;;  %4077 = vmatprep.subr.bf16.mxu1 %v5567_v9  ;;  %v729_v8 = vld [vmem:[#allocation9 + $0x9b8] sm:$0xff]  ;;  %v5620_v9 = vcombine.low %v716_v59, %v720_v60  ;;  %v5629_v11 = vcombine.high %v724_v5, %v728_v6 }
 0x24a   : > { %v5631_v12 = vcombine.high %v725_v7, %v729_v8  ;;  %v5630_v18 = vcombine.low %v725_v7, %v729_v8  ;;  %v788_v8 = vld [vmem:[#allocation9 + $0xb90] sm:$0xff] }
 0x24c   : > { %3906 = vmatpush1.bf16.msra.mxu0 %v5564_v14  ;;  %4078 = vmatpush1.bf16.msra.mxu1 %v5566_v15  ;;  %v736_v14 = vld [vmem:[#allocation9 + $0x9f0] sm:$0xff]  ;;  %v733_v15 = vld [vmem:[#allocation9 + $0x9d8] sm:$0xff] }
 0x24d   : > { %3907 = vmatprep.subr.bf16.mxu0 %v5573_v16  ;;  %4079 = vmatprep.subr.bf16.mxu1 %v5575_v17  ;;  %v737_v16 = vld [vmem:[#allocation9 + $0x9f8] sm:$0xff]  ;;  %v5628_v17 = vcombine.low %v724_v5, %v728_v6  ;;  %v5637_v20 = vcombine.high %v732_v13, %v736_v14 }
 0x24e   : > { %v5639_v21 = vcombine.high %v733_v15, %v737_v16  ;;  %v5638_v27 = vcombine.low %v733_v15, %v737_v16  ;;  %v796_v16 = vld [vmem:[#allocation9 + $0xbd0] sm:$0xff] }
 0x250   : > { %3908 = vmatpush1.bf16.msra.mxu0 %v5572_v23  ;;  %4080 = vmatpush1.bf16.msra.mxu1 %v5574_v24  ;;  %v744_v23 = vld [vmem:[#allocation9 + $0xa30] sm:$0xff]  ;;  %v741_v24 = vld [vmem:[#allocation9 + $0xa18] sm:$0xff] }
 0x251   : > { %3920 = vmatprep.subr.bf16.mxu0 %v5581_v25  ;;  %4092 = vmatprep.subr.bf16.mxu1 %v5583_v26  ;;  %v745_v25 = vld [vmem:[#allocation9 + $0xa38] sm:$0xff]  ;;  %v5636_v26 = vcombine.low %v732_v13, %v736_v14  ;;  %v5645_v28 = vcombine.high %v740_v22, %v744_v23 }
 0x252   : > { %v5647_v30 = vcombine.high %v741_v24, %v745_v25  ;;  %v5646_v36 = vcombine.low %v741_v24, %v745_v25  ;;  %v804_v25 = vld [vmem:[#allocation9 + $0xc10] sm:$0xff] }
 0x253   : > { %3910 = vmatmul.mubr.bf16.vlgmr.msra.gmra.mrb[4].mxu0 %v6824_v34  ;;  %4082 = vmatmul.mubr.bf16.vlgmr.msra.gmra.mrb[4].mxu1 %v6824_v34  ;;  %v5598_v34 = vcombine.low %v693_v38, %v697_v19  ;;  %v756_v19 = vld [vmem:[#allocation9 + $0xa90] sm:$0xff] }
 0x254   : > { %3921 = vmatpush1.bf16.msra.mxu0 %v5580_v32  ;;  %4093 = vmatpush1.bf16.msra.mxu1 %v5582_v33  ;;  %v752_v32 = vld [vmem:[#allocation9 + $0xa70] sm:$0xff]  ;;  %v749_v33 = vld [vmem:[#allocation9 + $0xa58] sm:$0xff] }
 0x255   : > { %3922 = vmatprep.subr.bf16.mxu0 %v5589_v35  ;;  %4094 = vmatprep.subr.bf16.mxu1 %v5591_v62  ;;  %v753_v35 = vld [vmem:[#allocation9 + $0xa78] sm:$0xff]  ;;  %v5644_v62 = vcombine.low %v740_v22, %v744_v23  ;;  %v5653_v37 = vcombine.high %v748_v31, %v752_v32 }
 0x256   : > { %3952 = vmatprep.mubr.bf16.mxu0 %v6826_v43  ;;  %4124 = vmatprep.mubr.bf16.mxu1 %v6826_v43  ;;  %v5615_v43 = vcombine.high %v709_v53, %v713_v54  ;;  %v5655_v38 = vcombine.high %v749_v33, %v753_v35  ;;  %v5654_v44 = vcombine.low %v749_v33, %v753_v35  ;;  %v772_v54 = vld [vmem:[#allocation9 + $0xb10] sm:$0xff] }
 0x257   : > { %v812_v35 = vld [vmem:[#allocation9 + $0xc50] sm:$0xff] }
 0x258   : > { %3923 = vmatpush1.bf16.msra.mxu0 %v5588_v39  ;;  %4095 = vmatpush1.bf16.msra.mxu1 %v5590_v40  ;;  %v760_v39 = vld [vmem:[#allocation9 + $0xab0] sm:$0xff]  ;;  %v757_v40 = vld [vmem:[#allocation9 + $0xa98] sm:$0xff] }
 0x259   : > { %3924 = vmatprep.subr.bf16.mxu0 %v5597_v41  ;;  %4096 = vmatprep.subr.bf16.mxu1 %v5599_v42  ;;  %v761_v41 = vld [vmem:[#allocation9 + $0xab8] sm:$0xff]  ;;  %v5652_v42 = vcombine.low %v748_v31, %v752_v32  ;;  %v5661_v45 = vcombine.high %v756_v19, %v760_v39 }
 0x25a   : > { %v5663_v46 = vcombine.high %v757_v40, %v761_v41  ;;  %v5662_v51 = vcombine.low %v757_v40, %v761_v41  ;;  %v820_v41 = vld [vmem:[#allocation9 + $0xc90] sm:$0xff] }
 0x25c   : > { %3925 = vmatpush1.bf16.msra.mxu0 %v5596_v49  ;;  %4097 = vmatpush1.bf16.msra.mxu1 %v5598_v34  ;;  %v768_v49 = vld [vmem:[#allocation9 + $0xaf0] sm:$0xff]  ;;  %v765_v34 = vld [vmem:[#allocation9 + $0xad8] sm:$0xff] }
 0x25d   : > { %3926 = vmatprep.subr.bf16.mxu0 %v5605_v29  ;;  %4098 = vmatprep.subr.bf16.mxu1 %v5607_v50  ;;  %v769_v29 = vld [vmem:[#allocation9 + $0xaf8] sm:$0xff]  ;;  %v5660_v50 = vcombine.low %v756_v19, %v760_v39  ;;  %v5669_v52 = vcombine.high %v764_v48, %v768_v49 }
 0x25e   : > { %v5671_v53 = vcombine.high %v765_v34, %v769_v29  ;;  %v5670_v59 = vcombine.low %v765_v34, %v769_v29  ;;  %v828_v29 = vld [vmem:[#allocation9 + $0xcd0] sm:$0xff] }
 0x260   : > { %3927 = vmatpush1.bf16.msra.mxu0 %v5604_v55  ;;  %4099 = vmatpush1.bf16.msra.mxu1 %v5606_v56  ;;  %v776_v55 = vld [vmem:[#allocation9 + $0xb30] sm:$0xff]  ;;  %v773_v56 = vld [vmem:[#allocation9 + $0xb18] sm:$0xff] }
 0x261   : > { %3928 = vmatprep.subr.bf16.mxu0 %v5613_v58  ;;  %4100 = vmatprep.subr.bf16.mxu1 %v5615_v43  ;;  %v777_v58 = vld [vmem:[#allocation9 + $0xb38] sm:$0xff]  ;;  %v5668_v43 = vcombine.low %v764_v48, %v768_v49  ;;  %v5677_v60 = vcombine.high %v772_v54, %v776_v55 }
 0x262   : > { %v5679_v61 = vcombine.high %v773_v56, %v777_v58  ;;  %v5678_v5 = vcombine.low %v773_v56, %v777_v58  ;;  %v836_v56 = vld [vmem:[#allocation9 + $0xd10] sm:$0xff] }
 0x263   : > { %v840_v58 = vld [vmem:[#allocation9 + $0xd30] sm:$0xff] }
 0x264   : > { %3929 = vmatpush1.bf16.msra.mxu0 %v5612_v0  ;;  %4101 = vmatpush1.bf16.msra.mxu1 %v5614_v1  ;;  %v784_v0 = vld [vmem:[#allocation9 + $0xb70] sm:$0xff]  ;;  %v781_v1 = vld [vmem:[#allocation9 + $0xb58] sm:$0xff] }
 0x265   : > { %3930 = vmatprep.subr.bf16.mxu0 %v5621_v2  ;;  %4102 = vmatprep.subr.bf16.mxu1 %v5623_v4  ;;  %v785_v2 = vld [vmem:[#allocation9 + $0xb78] sm:$0xff]  ;;  %v5676_v4 = vcombine.low %v772_v54, %v776_v55  ;;  %v5685_v6 = vcombine.high %v780_v63, %v784_v0 }
 0x266   : > { %v5687_v7 = vcombine.high %v781_v1, %v785_v2  ;;  %v5686_v13 = vcombine.low %v781_v1, %v785_v2  ;;  %v848_v1 = vld [vmem:[#allocation9 + $0xd70] sm:$0xff]  ;;  %v845_v2 = vld [vmem:[#allocation9 + $0xd58] sm:$0xff] }
 0x268   : > { %3931 = vmatpush1.bf16.msra.mxu0 %v5620_v9  ;;  %4103 = vmatpush1.bf16.msra.mxu1 %v5622_v10  ;;  %v792_v9 = vld [vmem:[#allocation9 + $0xbb0] sm:$0xff]  ;;  %v789_v10 = vld [vmem:[#allocation9 + $0xb98] sm:$0xff] }
 0x269   : > { %3932 = vmatprep.subr.bf16.mxu0 %v5629_v11  ;;  %4104 = vmatprep.subr.bf16.mxu1 %v5631_v12  ;;  %v793_v11 = vld [vmem:[#allocation9 + $0xbb8] sm:$0xff]  ;;  %v5684_v12 = vcombine.low %v780_v63, %v784_v0  ;;  %v5693_v14 = vcombine.high %v788_v8, %v792_v9  ;;  %v5741_v63 = vcombine.high %v836_v56, %v840_v58  ;;  %v844_v0 = vld [vmem:[#allocation9 + $0xd50] sm:$0xff] }
 0x26a   : > { %v5695_v15 = vcombine.high %v789_v10, %v793_v11  ;;  %v5694_v22 = vcombine.low %v789_v10, %v793_v11  ;;  %v856_v10 = vld [vmem:[#allocation9 + $0xdb0] sm:$0xff]  ;;  %v853_v11 = vld [vmem:[#allocation9 + $0xd98] sm:$0xff] }
 0x26c   : > { %3933 = vmatpush1.bf16.msra.mxu0 %v5628_v17  ;;  %4105 = vmatpush1.bf16.msra.mxu1 %v5630_v18  ;;  %v800_v17 = vld [vmem:[#allocation9 + $0xbf0] sm:$0xff]  ;;  %v797_v18 = vld [vmem:[#allocation9 + $0xbd8] sm:$0xff] }
 0x26d   : > { %3934 = vmatprep.subr.bf16.mxu0 %v5637_v20  ;;  %4106 = vmatprep.subr.bf16.mxu1 %v5639_v21  ;;  %v801_v20 = vld [vmem:[#allocation9 + $0xbf8] sm:$0xff]  ;;  %v5692_v21 = vcombine.low %v788_v8, %v792_v9  ;;  %v5701_v23 = vcombine.high %v796_v16, %v800_v17  ;;  %v852_v9 = vld [vmem:[#allocation9 + $0xd90] sm:$0xff] }
 0x26e   : > { %v5703_v24 = vcombine.high %v797_v18, %v801_v20  ;;  %v5702_v31 = vcombine.low %v797_v18, %v801_v20  ;;  %v860_v18 = vld [vmem:[#allocation9 + $0xdd0] sm:$0xff] }
 0x26f   : > { %v864_v20 = vld [vmem:[#allocation9 + $0xdf0] sm:$0xff] }
 0x270   : > { %3935 = vmatpush1.bf16.msra.mxu0 %v5636_v26  ;;  %4107 = vmatpush1.bf16.msra.mxu1 %v5638_v27  ;;  %v808_v26 = vld [vmem:[#allocation9 + $0xc30] sm:$0xff]  ;;  %v805_v27 = vld [vmem:[#allocation9 + $0xc18] sm:$0xff] }
 0x271   : > { %3936 = vmatprep.subr.bf16.mxu0 %v5645_v28  ;;  %4108 = vmatprep.subr.bf16.mxu1 %v5647_v30  ;;  %v809_v28 = vld [vmem:[#allocation9 + $0xc38] sm:$0xff]  ;;  %v5700_v30 = vcombine.low %v796_v16, %v800_v17  ;;  %v5709_v32 = vcombine.high %v804_v25, %v808_v26 }
 0x272   : > { %v5711_v33 = vcombine.high %v805_v27, %v809_v28  ;;  %v5710_v19 = vcombine.low %v805_v27, %v809_v28  ;;  %v5756_v27 = vcombine.low %v852_v9, %v856_v10 }
 0x274   : > { %3937 = vmatpush1.bf16.msra.mxu0 %v5644_v62  ;;  %4109 = vmatpush1.bf16.msra.mxu1 %v5646_v36  ;;  %v816_v62 = vld [vmem:[#allocation9 + $0xc70] sm:$0xff]  ;;  %v813_v36 = vld [vmem:[#allocation9 + $0xc58] sm:$0xff] }
 0x275   : > { %3938 = vmatprep.subr.bf16.mxu0 %v5653_v37  ;;  %4110 = vmatprep.subr.bf16.mxu1 %v5655_v38  ;;  %v817_v37 = vld [vmem:[#allocation9 + $0xc78] sm:$0xff]  ;;  %v5708_v38 = vcombine.low %v804_v25, %v808_v26  ;;  %v5717_v39 = vcombine.high %v812_v35, %v816_v62 }
 0x276   : > { %v5719_v40 = vcombine.high %v813_v36, %v817_v37  ;;  %v5718_v48 = vcombine.low %v813_v36, %v817_v37 }
 0x278   : > { %3939 = vmatpush1.bf16.msra.mxu0 %v5652_v42  ;;  %4111 = vmatpush1.bf16.msra.mxu1 %v5654_v44  ;;  %v824_v42 = vld [vmem:[#allocation9 + $0xcb0] sm:$0xff]  ;;  %v821_v44 = vld [vmem:[#allocation9 + $0xc98] sm:$0xff] }
 0x279   : > { %3940 = vmatprep.subr.bf16.mxu0 %v5661_v45  ;;  %4112 = vmatprep.subr.bf16.mxu1 %v5663_v46  ;;  %v825_v45 = vld [vmem:[#allocation9 + $0xcb8] sm:$0xff]  ;;  %v5716_v46 = vcombine.low %v812_v35, %v816_v62  ;;  %v5725_v49 = vcombine.high %v820_v41, %v824_v42 }
 0x27a   : > { %v5727_v34 = vcombine.high %v821_v44, %v825_v45 }
 0x27c   : > { %3941 = vmatpush1.bf16.msra.mxu0 %v5660_v50  ;;  %4113 = vmatpush1.bf16.msra.mxu1 %v5662_v51  ;;  %v832_v50 = vld [vmem:[#allocation9 + $0xcf0] sm:$0xff]  ;;  %v829_v51 = vld [vmem:[#allocation9 + $0xcd8] sm:$0xff] }
 0x27d   : > { %3942 = vmatprep.subr.bf16.mxu0 %v5669_v52  ;;  %4114 = vmatprep.subr.bf16.mxu1 %v5671_v53  ;;  %v833_v52 = vld [vmem:[#allocation9 + $0xcf8] sm:$0xff]  ;;  %v5724_v53 = vcombine.low %v820_v41, %v824_v42  ;;  %v5733_v54 = vcombine.high %v828_v29, %v832_v50 }
 0x27e   : > { %v5735_v55 = vcombine.high %v829_v51, %v833_v52  ;;  %v869_v41 = vld [vmem:[#allocation9 + $0xe18] sm:$0xff] }
 0x27f   : > { %v873_v42 = vld [vmem:[#allocation9 + $0xe38] sm:$0xff] }
 0x280   : > { %3943 = vmatpush1.bf16.msra.mxu0 %v5668_v43  ;;  %4115 = vmatpush1.bf16.msra.mxu1 %v5670_v59  ;;  %v837_v43 = vld [vmem:[#allocation9 + $0xd18] sm:$0xff] }
 0x281   : > { %3944 = vmatprep.subr.bf16.mxu0 %v5677_v60  ;;  %4116 = vmatprep.subr.bf16.mxu1 %v5679_v61  ;;  %v841_v59 = vld [vmem:[#allocation9 + $0xd38] sm:$0xff]  ;;  %v5732_v60 = vcombine.low %v828_v29, %v832_v50  ;;  %v5734_v61 = vcombine.low %v829_v51, %v833_v52 }
 0x284   : > { %3945 = vmatpush1.bf16.msra.mxu0 %v5676_v4  ;;  %4117 = vmatpush1.bf16.msra.mxu1 %v5678_v5  ;;  %v849_v4 = vld [vmem:[#allocation9 + $0xd78] sm:$0xff]  ;;  %v5740_v5 = vcombine.low %v836_v56, %v840_v58  ;;  %v880_v56 = vld [vmem:[#allocation9 + $0xe70] sm:$0xff] }
 0x285   : > { %3946 = vmatprep.subr.bf16.mxu0 %v5685_v6  ;;  %4118 = vmatprep.subr.bf16.mxu1 %v5687_v7  ;;  %v5742_v6 = vcombine.low %v837_v43, %v841_v59  ;;  %v5749_v7 = vcombine.high %v844_v0, %v848_v1  ;;  %v5751_v8 = vcombine.high %v845_v2, %v849_v4 }
 0x288   : > { %3947 = vmatpush1.bf16.msra.mxu0 %v5684_v12  ;;  %4119 = vmatpush1.bf16.msra.mxu1 %v5686_v13  ;;  %v857_v12 = vld [vmem:[#allocation9 + $0xdb8] sm:$0xff]  ;;  %v5748_v13 = vcombine.low %v844_v0, %v848_v1  ;;  %v5774_v0 = vcombine.low %v869_v41, %v873_v42 }
 0x289   : > { %3948 = vmatprep.subr.bf16.mxu0 %v5693_v14  ;;  %4120 = vmatprep.subr.bf16.mxu1 %v5695_v15  ;;  %v5750_v14 = vcombine.low %v845_v2, %v849_v4  ;;  %v5757_v15 = vcombine.high %v852_v9, %v856_v10  ;;  %v5759_v17 = vcombine.high %v853_v11, %v857_v12  ;;  %v884_v10 = vld [vmem:[#allocation9 + $0xe90] sm:$0xff] }
 0x28c   : > { %3949 = vmatpush1.bf16.msra.mxu0 %v5692_v21  ;;  %4121 = vmatpush1.bf16.msra.mxu1 %v5694_v22 }
 0x28d   : > { %3950 = vmatprep.subr.bf16.mxu0 %v5701_v23  ;;  %4122 = vmatprep.subr.bf16.mxu1 %v5703_v24  ;;  %v861_v23 = vld [vmem:[#allocation9 + $0xdd8] sm:$0xff] }
 0x28e   : > { %v865_v24 = vld [vmem:[#allocation9 + $0xdf8] sm:$0xff] }
 0x28f   : > { %v5767_v37 = vcombine.high %v861_v23, %v865_v24 }
 0x290   : > { %3951 = vmatpush1.bf16.msra.mxu0 %v5700_v30  ;;  %4123 = vmatpush1.bf16.msra.mxu1 %v5702_v31 }
 0x291   : > { %3963 = vmatprep.subr.bf16.mxu0 %v5709_v32  ;;  %4135 = vmatprep.subr.bf16.mxu1 %v5711_v33  ;;  %v5758_v32 = vcombine.low %v853_v11, %v857_v12  ;;  %v5765_v33 = vcombine.high %v860_v18, %v864_v20  ;;  %v888_v11 = vld [vmem:[#allocation9 + $0xeb0] sm:$0xff] }
 0x293   : > { %3953 = vmatmul.mubr.bf16.vlgmr.msra.gmra.mrb[4].mxu0 %v6832_v47  ;;  %4125 = vmatmul.mubr.bf16.vlgmr.msra.gmra.mrb[4].mxu1 %v6832_v47  ;;  %v5726_v47 = vcombine.low %v821_v44, %v825_v45 }
 0x294   : > { %3964 = vmatpush1.bf16.msra.mxu0 %v5708_v38  ;;  %4136 = vmatpush1.bf16.msra.mxu1 %v5710_v19  ;;  %v868_v38 = vld [vmem:[#allocation9 + $0xe10] sm:$0xff] }
 0x295   : > { %3965 = vmatprep.subr.bf16.mxu0 %v5717_v39  ;;  %4137 = vmatprep.subr.bf16.mxu1 %v5719_v40  ;;  %v872_v19 = vld [vmem:[#allocation9 + $0xe30] sm:$0xff] }
 0x296   : > { %3995 = vmatprep.mubr.bf16.mxu0 %v6834_v57  ;;  %4167 = vmatprep.mubr.bf16.mxu1 %v6834_v57  ;;  %v5743_v57 = vcombine.high %v837_v43, %v841_v59  ;;  %v5773_v51 = vcombine.high %v868_v38, %v872_v19  ;;  %v877_v59 = vld [vmem:[#allocation9 + $0xe58] sm:$0xff] }
 0x298   : > { %3966 = vmatpush1.bf16.msra.mxu0 %v5716_v46  ;;  %4138 = vmatpush1.bf16.msra.mxu1 %v5718_v48  ;;  %v5764_v46 = vcombine.low %v860_v18, %v864_v20  ;;  %v5766_v48 = vcombine.low %v861_v23, %v865_v24  ;;  %v5789_v23 = vcombine.high %v884_v10, %v888_v11 }
 0x299   : > { %3967 = vmatprep.subr.bf16.mxu0 %v5725_v49  ;;  %4139 = vmatprep.subr.bf16.mxu1 %v5727_v34  ;;  %v6532_v34 = vmov 1966171168  }
 0x29a   : > { %v4248_v29 = vunpack.c.l.s4 %v6532_v34 }
 0x29c   : > { %3968 = vmatpush1.bf16.msra.mxu0 %v5724_v53  ;;  %4140 = vmatpush1.bf16.msra.mxu1 %v5726_v47  ;;  %v4250_v47 = vlaneseq  ;;  %v4249_v2 = vunpack.c.0.s8 %v4248_v29 }
 0x29d   : > { %3969 = vmatprep.subr.bf16.mxu0 %v5733_v54  ;;  %4141 = vmatprep.subr.bf16.mxu1 %v5735_v55  ;;  %v5775_v54 = vcombine.high %v869_v41, %v873_v42  ;;  %v876_v55 = vld [vmem:[#allocation9 + $0xe50] sm:$0xff] }
 0x29e   : > { %v5780_v18 = vcombine.low %v876_v55, %v880_v56  ;;  %v904_v41 = vld [vmem:[#allocation9 + $0xf30] sm:$0xff] }
 0x2a0   : > { %3970 = vmatpush1.bf16.msra.mxu0 %v5732_v60  ;;  %4142 = vmatpush1.bf16.msra.mxu1 %v5734_v61  ;;  %v881_v60 = vld [vmem:[#allocation9 + $0xe78] sm:$0xff] }
 0x2a1   : > { %3971 = vmatprep.subr.bf16.mxu0 %v5741_v63  ;;  %4143 = vmatprep.subr.bf16.mxu1 %v5743_v57  ;;  %v5772_v57 = vcombine.low %v868_v38, %v872_v19  ;;  %v5783_v9 = vcombine.high %v877_v59, %v881_v60 }
 0x2a4   : > { %3972 = vmatpush1.bf16.msra.mxu0 %v5740_v5  ;;  %4144 = vmatpush1.bf16.msra.mxu1 %v5742_v6  ;;  %v5781_v5 = vcombine.high %v876_v55, %v880_v56 }
 0x2a5   : > { %3973 = vmatprep.subr.bf16.mxu0 %v5749_v7  ;;  %4145 = vmatprep.subr.bf16.mxu1 %v5751_v8  ;;  %v6858_v8 = vshrl.u32 %v4250_v47, 7 }
 0x2a6   : > { %v3653_v16 = vpop.f32.mrb[0].mxu0  ;;  %v3825_v21 = vpop.f32.mrb[0].mxu1 }
 0x2a7   : > { %v3655_v22 = vpop.f32.mrb[1].mxu0  ;;  %v3827_v25 = vpop.f32.mrb[1].mxu1 }
 0x2a8   : > { %v3657_v26 = vpop.f32.mrb[2].mxu0  ;;  %3974 = vmatpush1.bf16.msra.mxu0 %v5748_v13  ;;  %v3829_v30 = vpop.f32.mrb[2].mxu1  ;;  %4146 = vmatpush1.bf16.msra.mxu1 %v5750_v14  ;;  %v885_v14 = vld [vmem:[#allocation9 + $0xe98] sm:$0xff] }
 0x2a9   : > { %v4179_v28 = vadd.f32 %v3657_v26, %v3653_v16  ;;  %v3659_v31 = vpop.f32.mrb[3].mxu0  ;;  %3975 = vmatprep.subr.bf16.mxu0 %v5757_v15  ;;  %v4193_v35 = vadd.f32 %v3829_v30, %v3825_v21  ;;  %v3831_v36 = vpop.f32.mrb[3].mxu1  ;;  %4147 = vmatprep.subr.bf16.mxu1 %v5759_v17  ;;  %v889_v15 = vld [vmem:[#allocation9 + $0xeb8] sm:$0xff]  ;;  %v6861_v26 = vsub.s32 %v4249_v2, %v6858_v8  ;;  %v896_v30 = vld [vmem:[#allocation9 + $0xef0] sm:$0xff] }
 0x2aa   : > { %v4186_v62 = vadd.f32 %v3659_v31, %v3655_v22  ;;  %v4200_v40 = vadd.f32 %v3831_v36, %v3827_v25  ;;  %v5782_v22 = vcombine.low %v877_v59, %v881_v60  ;;  %v917_v59 = vld [vmem:[#allocation9 + $0xf98] sm:$0xff]  ;;  %v928_v2 = vld [vmem:[#allocation9 + $0xff0] sm:$0xff] }
 0x2ab   : > { %v4180_v39 = vrot.slane %v4179_v28, 4  ;;  %v4194_v44 = vrot.slane %v4193_v35, 4  ;;  %v921_v60 = vld [vmem:[#allocation9 + $0xfb8] sm:$0xff] }
 0x2ac   : > { %v4187_v45 = vrot.slane %v4186_v62, 4  ;;  %3976 = vmatpush1.bf16.msra.mxu0 %v5756_v27  ;;  %v4201_v50 = vrot.slane %v4200_v40, 4  ;;  %4148 = vmatpush1.bf16.msra.mxu1 %v5758_v32  ;;  %v5791_v27 = vcombine.high %v885_v14, %v889_v15  ;;  %v893_v32 = vld [vmem:[#allocation9 + $0xed8] sm:$0xff] }
 0x2ad   : > { %v4181_v49 = vadd.f32 %v4180_v39, %v4179_v28  ;;  %3977 = vmatprep.subr.bf16.mxu0 %v5765_v33  ;;  %v4195_v52 = vadd.f32 %v4194_v44, %v4193_v35  ;;  %4149 = vmatprep.subr.bf16.mxu1 %v5767_v37  ;;  %v892_v28 = vld [vmem:[#allocation9 + $0xed0] sm:$0xff]  ;;  %v897_v33 = vld [vmem:[#allocation9 + $0xef8] sm:$0xff]  ;;  %v5790_v37 = vcombine.low %v885_v14, %v889_v15 }
 0x2ae   : > { %v4188_v53 = vadd.f32 %v4187_v45, %v4186_v62  ;;  %v4202_v43 = vadd.f32 %v4201_v50, %v4200_v40  ;;  %v5788_v62 = vcombine.low %v884_v10, %v888_v11  ;;  %v5797_v38 = vcombine.high %v892_v28, %v896_v30  ;;  %v900_v40 = vld [vmem:[#allocation9 + $0xf10] sm:$0xff]  ;;  %v901_v44 = vld [vmem:[#allocation9 + $0xf18] sm:$0xff] }
 0x2af   : > { %v4182_v58 = vrot.slane %v4181_v49, 2  ;;  %v4196_v61 = vrot.slane %v4195_v52, 2  ;;  %v5799_v39 = vcombine.high %v893_v32, %v897_v33  ;;  %v905_v45 = vld [vmem:[#allocation9 + $0xf38] sm:$0xff]  ;;  %v5805_v34 = vcombine.high %v900_v40, %v904_v41  ;;  %v908_v50 = vld [vmem:[#allocation9 + $0xf50] sm:$0xff] }
 0x2b0   : > { %v4189_v63 = vrot.slane %v4188_v53, 2  ;;  %3978 = vmatpush1.bf16.msra.mxu0 %v5764_v46  ;;  %v4203_v4 = vrot.slane %v4202_v43, 2  ;;  %4150 = vmatpush1.bf16.msra.mxu1 %v5766_v48  ;;  %v5796_v46 = vcombine.low %v892_v28, %v896_v30  ;;  %v5807_v29 = vcombine.high %v901_v44, %v905_v45 }
 0x2b1   : > { %v4183_v1 = vadd.f32 %v4182_v58, %v4181_v49  ;;  %3979 = vmatprep.subr.bf16.mxu0 %v5773_v51  ;;  %v4197_v6 = vadd.f32 %v4196_v61, %v4195_v52  ;;  %4151 = vmatprep.subr.bf16.mxu1 %v5775_v54  ;;  %v5798_v49 = vcombine.low %v893_v32, %v897_v33  ;;  %v912_v51 = vld [vmem:[#allocation9 + $0xf70] sm:$0xff]  ;;  %v909_v52 = vld [vmem:[#allocation9 + $0xf58] sm:$0xff] }
 0x2b2   : > { %v4190_v7 = vadd.f32 %v4189_v63, %v4188_v53  ;;  %v4204_v13 = vadd.f32 %v4203_v4, %v4202_v43  ;;  %v913_v53 = vld [vmem:[#allocation9 + $0xf78] sm:$0xff]  ;;  %v5804_v47 = vcombine.low %v900_v40, %v904_v41  ;;  %v5806_v54 = vcombine.low %v901_v44, %v905_v45  ;;  %v916_v58 = vld [vmem:[#allocation9 + $0xf90] sm:$0xff] }
 0x2b3   : > { %v4184_v12 = vrot.slane %v4183_v1, 1  ;;  %v4198_v16 = vrot.slane %v4197_v6, 1  ;;  %v5813_v55 = vcombine.high %v908_v50, %v912_v51  ;;  %v5815_v56 = vcombine.high %v909_v52, %v913_v53  ;;  %v920_v43 = vld [vmem:[#allocation9 + $0xfb0] sm:$0xff]  ;;  %v925_v4 = vld [vmem:[#allocation9 + $0xfd8] sm:$0xff] }
 0x2b4   : > { %v4191_v17 = vrot.slane %v4190_v7, 1  ;;  %3980 = vmatpush1.bf16.msra.mxu0 %v5772_v57  ;;  %v4205_v21 = vrot.slane %v4204_v13, 1  ;;  %4152 = vmatpush1.bf16.msra.mxu1 %v5774_v0  ;;  %v5812_v61 = vcombine.low %v908_v50, %v912_v51  ;;  %v5814_v63 = vcombine.low %v909_v52, %v913_v53 }
 0x2b5   : > { %v4185_v20 = vadd.f32 %v4184_v12, %v4183_v1  ;;  %3981 = vmatprep.subr.bf16.mxu0 %v5781_v5  ;;  %v4199_v24 = vadd.f32 %v4198_v16, %v4197_v6  ;;  %4153 = vmatprep.subr.bf16.mxu1 %v5783_v9  ;;  %v5821_v57 = vcombine.high %v916_v58, %v920_v43  ;;  %v924_v1 = vld [vmem:[#allocation9 + $0xfd0] sm:$0xff]  ;;  %v929_v5 = vld [vmem:[#allocation9 + $0xff8] sm:$0xff] }
 0x2b6   : > { %v4192_v25 = vadd.f32 %v4191_v17, %v4190_v7  ;;  %v4206_v31 = vadd.f32 %v4205_v21, %v4204_v13  ;;  %v5823_v0 = vcombine.high %v917_v59, %v921_v60  ;;  %v5820_v6 = vcombine.low %v916_v58, %v920_v43 }
 0x2b7   : > { %v5822_v7 = vcombine.low %v917_v59, %v921_v60  ;;  %v5829_v9 = vcombine.high %v924_v1, %v928_v2  ;;  %v5831_v10 = vcombine.high %v925_v4, %v929_v5  ;;  %v5828_v11 = vcombine.low %v924_v1, %v928_v2  ;;  %v4178_v59 = vld [vmem:[#allocation3] sm:$0xff] }
 0x2b8   : > { %v4243_v35 = vcombine.low %v4185_v20, %v4192_v25  ;;  %3982 = vmatpush1.bf16.msra.mxu0 %v5780_v18  ;;  %v4244_v36 = vcombine.low %v4199_v24, %v4206_v31  ;;  %4154 = vmatpush1.bf16.msra.mxu1 %v5782_v22  ;;  %v5830_v12 = vcombine.low %v925_v4, %v929_v5  ;;  %v6890_v2 = vsub.s32 3, %v6858_v8 }
 0x2b9   : > { %3983 = vmatprep.subr.bf16.mxu0 %v5789_v23  ;;  %4155 = vmatprep.subr.bf16.mxu1 %v5791_v27  ;;  %v6900_v5 = vsub.s32 5, %v6858_v8 }
 0x2ba   : > { %v6864_v19 = vrot.slane %v4243_v35, %v6861_v26  ;;  %v6867_v42 = vrot.slane %v4244_v36, %v6861_v26 }
 0x2bc   : > { %3984 = vmatpush1.bf16.msra.mxu0 %v5788_v62  ;;  %v4275_v48 = vcombine.low %v6864_v19, %v6867_v42  ;;  %4156 = vmatpush1.bf16.msra.mxu1 %v5790_v37 }
 0x2bd   : > { %3985 = vmatprep.subr.bf16.mxu0 %v5797_v38  ;;  %4157 = vmatprep.subr.bf16.mxu1 %v5799_v39 }
 0x2be   : > { %v4283_v58 = vrot.slane %v4275_v48, %v6861_v26  ;;  %v6896_v48 = vsub.s32 4, %v6858_v8 }
 0x2c0   : > { %3986 = vmatpush1.bf16.msra.mxu0 %v5796_v46  ;;  %4158 = vmatpush1.bf16.msra.mxu1 %v5798_v49 }
 0x2c1   : > { %3987 = vmatprep.subr.bf16.mxu0 %v5805_v34  ;;  %4159 = vmatprep.subr.bf16.mxu1 %v5807_v29 }
 0x2c4   : > { %3988 = vmatpush1.bf16.msra.mxu0 %v5804_v47  ;;  %4160 = vmatpush1.bf16.msra.mxu1 %v5806_v54 }
 0x2c5   : > { %3989 = vmatprep.subr.bf16.mxu0 %v5813_v55  ;;  %4161 = vmatprep.subr.bf16.mxu1 %v5815_v56 }
 0x2c8   : > { %3990 = vmatpush1.bf16.msra.mxu0 %v5812_v61  ;;  %4162 = vmatpush1.bf16.msra.mxu1 %v5814_v63  ;;  %v6881_v63 = vsub.s32 0, %v6858_v8 }
 0x2c9   : > { %3991 = vmatprep.subr.bf16.mxu0 %v5821_v57  ;;  %4163 = vmatprep.subr.bf16.mxu1 %v5823_v0  ;;  %v6884_v57 = vsub.s32 1, %v6858_v8  ;;  %v6887_v0 = vsub.s32 2, %v6858_v8 }
 0x2cc   : > { %3992 = vmatpush1.bf16.msra.mxu0 %v5820_v6  ;;  %4164 = vmatpush1.bf16.msra.mxu1 %v5822_v7 }
 0x2cd   : > { %3993 = vmatprep.subr.bf16.mxu0 %v5829_v9  ;;  %4165 = vmatprep.subr.bf16.mxu1 %v5831_v10 }
 0x2d0   : > { %3994 = vmatpush1.bf16.msra.mxu0 %v5828_v11  ;;  %4166 = vmatpush1.bf16.msra.mxu1 %v5830_v12  ;;  %v6906_v11 = vsub.s32 6, %v6858_v8 }
 0x2d3   : > { %3996 = vmatmul.mubr.bf16.vlgmr.msra.gmra.mrb[4].mxu0 %v6840_v3  ;;  %4168 = vmatmul.mubr.bf16.vlgmr.msra.gmra.mrb[4].mxu1 %v6840_v3 }
 0x3a6   : > { %v3997_v13 = vpop.f32.mrb[4].mxu0  ;;  %v4169_v14 = vpop.f32.mrb[4].mxu1 }
 0x3a7   : > { %v3999_v15 = vpop.f32.mrb[5].mxu0  ;;  %v4171_v16 = vpop.f32.mrb[5].mxu1 }
 0x3a8   : > { %v4001_v17 = vpop.f32.mrb[6].mxu0  ;;  %v4173_v20 = vpop.f32.mrb[6].mxu1 }
 0x3a9   : > { %v4207_v18 = vadd.f32 %v4001_v17, %v3997_v13  ;;  %v4003_v21 = vpop.f32.mrb[7].mxu0  ;;  %v4221_v22 = vadd.f32 %v4173_v20, %v4169_v14  ;;  %v4175_v24 = vpop.f32.mrb[7].mxu1 }
 0x3aa   : > { %v4214_v23 = vadd.f32 %v4003_v21, %v3999_v15  ;;  %v4228_v27 = vadd.f32 %v4175_v24, %v4171_v16  ;;  %v6911_v15 = vsub.s32 7, %v6858_v8 }
 0x3ab   : > { %v4208_v25 = vrot.slane %v4207_v18, 4  ;;  %v4222_v28 = vrot.slane %v4221_v22, 4 }
 0x3ac   : > { %v4215_v30 = vrot.slane %v4214_v23, 4  ;;  %v4229_v32 = vrot.slane %v4228_v27, 4 }
 0x3ad   : > { %v4209_v31 = vadd.f32 %v4208_v25, %v4207_v18  ;;  %v4223_v33 = vadd.f32 %v4222_v28, %v4221_v22 }
 0x3ae   : > { %v4216_v35 = vadd.f32 %v4215_v30, %v4214_v23  ;;  %v4230_v62 = vadd.f32 %v4229_v32, %v4228_v27  ;;  %v6169_v30 = vld [vmem:[#allocation14 + $0x40] sm:$0xff]  }
 0x3af   : > { %v4210_v3 = vrot.slane %v4209_v31, 2  ;;  %v4224_v36 = vrot.slane %v4223_v33, 2  ;;  %v6171_v32 = vld [vmem:[#allocation14] sm:$0xff]   ;;  %5901 = vmatprep.subr.bf16.mxu0 %v6169_v30  ;;  %v6197_v30 = vld [vmem:[#allocation14 + $0x78] sm:$0xff]  }
 0x3b0   : > { %v4217_v37 = vrot.slane %v4216_v35, 2  ;;  %v4231_v39 = vrot.slane %v4230_v62, 2  ;;  %5902 = vmatpush3.bf16.msra.mxu0 %v6171_v32  ;;  %v6199_v32 = vld [vmem:[#allocation14 + $0x38] sm:$0xff]  }
 0x3b1   : > { %v4211_v38 = vadd.f32 %v4210_v3, %v4209_v31  ;;  %v4225_v40 = vadd.f32 %v4224_v36, %v4223_v33  ;;  %v6170_v31 = vld [vmem:[#allocation14 + $0xc0] sm:$0xff]   ;;  %v6174_v3 = vld [vmem:[#allocation14 + $0xc8] sm:$0xff]  }
 0x3b2   : > { %v4218_v41 = vadd.f32 %v4217_v37, %v4216_v35  ;;  %v4232_v45 = vadd.f32 %v4231_v39, %v4230_v62  ;;  %v6172_v33 = vld [vmem:[#allocation14 + $0x80] sm:$0xff]   ;;  %v6173_v35 = vld [vmem:[#allocation14 + $0x48] sm:$0xff]   ;;  %5923 = vmatprep.subr.bf16.mxu1 %v6170_v31  ;;  %v6198_v31 = vld [vmem:[#allocation14 + $0xf8] sm:$0xff]  }
 0x3b3   : > { %v4212_v44 = vrot.slane %v4211_v38, 1  ;;  %v4226_v46 = vrot.slane %v4225_v40, 1  ;;  %5924 = vmatpush3.bf16.msra.mxu1 %v6172_v33  ;;  %5903 = vmatprep.subr.bf16.mxu0 %v6173_v35  ;;  %v6200_v33 = vld [vmem:[#allocation14 + $0xb8] sm:$0xff]   ;;  %v6201_v35 = vld [vmem:[#allocation14 + $0x140] sm:$0xff]  }
 0x3b4   : > { %v4219_v49 = vrot.slane %v4218_v41, 1  ;;  %v4233_v29 = vrot.slane %v4232_v45, 1  ;;  %5925 = vmatprep.subr.bf16.mxu1 %v6174_v3  ;;  %v6202_v3 = vld [vmem:[#allocation14 + $0x1c0] sm:$0xff]  }
 0x3b5   : > { %v4213_v34 = vadd.f32 %v4212_v44, %v4211_v38  ;;  %v4227_v50 = vadd.f32 %v4226_v46, %v4225_v40 }
 0x3b6   : > { %v4220_v51 = vadd.f32 %v4219_v49, %v4218_v41  ;;  %v4234_v52 = vadd.f32 %v4233_v29, %v4232_v45 }
 0x3b8   : > { %v4245_v53 = vcombine.low %v4213_v34, %v4220_v51  ;;  %v4246_v47 = vcombine.low %v4227_v50, %v4234_v52 }
 0x3ba   : > { %v4267_v54 = vrot.slane %v4245_v53, %v6861_v26  ;;  %v4274_v55 = vrot.slane %v4246_v47, %v6861_v26 }
 0x3bc   : > { %v4276_v56 = vcombine.low %v4267_v54, %v4274_v55 }
 0x3be   : > { %v4290_v43 = vrot.slane %v4276_v56, %v6861_v26 }
 0x3c0   : > { %v4291_v60 = vcombine.low %v4283_v58, %v4290_v43 }
 0x3c2   : > { %v4293_v61 = vadd.f32 %v4291_v60, %v4178_v59 }
 0x3c4   : > { %4294 = vst [vmem:[#allocation3] sm:$0xff] %v4293_v61  ;;  %v4299_v1 = vmul.f32 0.125, %v4293_v61 }
 0x3c6   : > { %v4304_v26 = vrot.slane %v4299_v1, %v6881_v63  ;;  %v4308_v19 = vrot.slane %v4299_v1, %v6884_v57  ;;  %v4312_v42 = vrot.slane %v4299_v1, %v6887_v0  ;;  %v4316_v4 = vrot.slane %v4299_v1, %v6890_v2 }
 0x3c7   : > { %v4320_v10 = vrot.slane %v4299_v1, %v6896_v48  ;;  %v4324_v14 = vrot.slane %v4299_v1, %v6900_v5  ;;  %v4328_v18 = vrot.slane %v4299_v1, %v6906_v11  ;;  %v4332_v22 = vrot.slane %v4299_v1, %v6911_v15 }
 0x3c8   : > { %v4342_v6 = vsel %vm4341_vm0, %v4304_v26, 0.0  ;;  %v4343_v7 = vsel %vm4341_vm0, %v4308_v19, 0.0  ;;  %v4345_v12 = vsel %vm4341_vm0, %v4312_v42, 0.0  ;;  %v4347_v16 = vsel %vm4341_vm0, %v4316_v4, 0.0  ;;  %v6175_v19 = vld [vmem:[#allocation14 + $0x8] sm:$0xff]   ;;  %v6177_v4 = vld [vmem:[#allocation14 + $0x50] sm:$0xff]  }
 0x3c9   : > { %v4344_v9 = vadd.f32 %v4343_v7, %v4342_v6  ;;  %v4349_v20 = vsel %vm4341_vm0, %v4320_v10, 0.0  ;;  %v4351_v23 = vsel %vm4341_vm0, %v4324_v14, 0.0  ;;  %v4353_v25 = vsel %vm4341_vm0, %v4328_v18, 0.0  ;;  %v6176_v42 = vld [vmem:[#allocation14 + $0x88] sm:$0xff]   ;;  %5904 = vmatpush3.bf16.msra.mxu0 %v6175_v19  ;;  %v6178_v6 = vld [vmem:[#allocation14 + $0xd0] sm:$0xff]   ;;  %v6181_v10 = vld [vmem:[#allocation14 + $0x58] sm:$0xff]  }
 0x3ca   : > { %v4355_v28 = vsel %vm4341_vm0, %v4332_v22, 0.0  ;;  %5926 = vmatpush3.bf16.msra.mxu1 %v6176_v42  ;;  %v6179_v7 = vld [vmem:[#allocation14 + $0x10] sm:$0xff]   ;;  %5905 = vmatprep.subr.bf16.mxu0 %v6177_v4  ;;  %v6184_v14 = vld [vmem:[#allocation14 + $0x98] sm:$0xff]   ;;  %v6187_v18 = vld [vmem:[#allocation14 + $0x20] sm:$0xff]  }
 0x3cb   : > { %v4346_v13 = vadd.f32 %v4345_v12, %v4344_v9  ;;  %v6180_v9 = vld [vmem:[#allocation14 + $0x90] sm:$0xff]   ;;  %5927 = vmatprep.subr.bf16.mxu1 %v6178_v6  ;;  %v6182_v12 = vld [vmem:[#allocation14 + $0xd8] sm:$0xff]   ;;  %v6190_v22 = vld [vmem:[#allocation14 + $0xe8] sm:$0xff]  }
 0x3cc   : > { %v6215_v19 = vld [vmem:[#allocation14 + $0x118] sm:$0xff]   ;;  %v6217_v4 = vld [vmem:[#allocation14 + $0x160] sm:$0xff]  }
 0x3cd   : > { %v4348_v17 = vadd.f32 %v4347_v16, %v4346_v13  ;;  %5906 = vmatpush3.bf16.msra.mxu0 %v6179_v7  ;;  %v6183_v13 = vld [vmem:[#allocation14 + $0x18] sm:$0xff]   ;;  %v6185_v16 = vld [vmem:[#allocation14 + $0x60] sm:$0xff]  }
 0x3ce   : > { %5928 = vmatpush3.bf16.msra.mxu1 %v6180_v9  ;;  %5907 = vmatprep.subr.bf16.mxu0 %v6181_v10  ;;  %v6216_v42 = vld [vmem:[#allocation14 + $0x198] sm:$0xff]   ;;  %v6218_v6 = vld [vmem:[#allocation14 + $0x1e0] sm:$0xff]   ;;  %v6221_v10 = vld [vmem:[#allocation14 + $0x168] sm:$0xff]  }
 0x3cf   : > { %v4350_v21 = vadd.f32 %v4349_v20, %v4348_v17  ;;  %5929 = vmatprep.subr.bf16.mxu1 %v6182_v12  ;;  %v6186_v17 = vld [vmem:[#allocation14 + $0xe0] sm:$0xff]   ;;  %v6222_v12 = vld [vmem:[#allocation14 + $0x1e8] sm:$0xff]  }
 0x3d0   : > { %v6188_v20 = vld [vmem:[#allocation14 + $0xa0] sm:$0xff]  }
 0x3d1   : > { %v4352_v24 = vadd.f32 %v4351_v23, %v4350_v21  ;;  %5908 = vmatpush3.bf16.msra.mxu0 %v6183_v13  ;;  %v6189_v21 = vld [vmem:[#allocation14 + $0x68] sm:$0xff]   ;;  %v6219_v7 = vld [vmem:[#allocation14 + $0x120] sm:$0xff]  }
 0x3d2   : > { %5930 = vmatpush3.bf16.msra.mxu1 %v6184_v14  ;;  %5909 = vmatprep.subr.bf16.mxu0 %v6185_v16  ;;  %v6191_v23 = vld [vmem:[#allocation14 + $0x28] sm:$0xff]   ;;  %v6220_v9 = vld [vmem:[#allocation14 + $0x1a0] sm:$0xff]   ;;  %v6225_v16 = vld [vmem:[#allocation14 + $0x170] sm:$0xff]  }
 0x3d3   : > { %v4354_v27 = vadd.f32 %v4353_v25, %v4352_v24  ;;  %5931 = vmatprep.subr.bf16.mxu1 %v6186_v17  ;;  %v6192_v24 = vld [vmem:[#allocation14 + $0xa8] sm:$0xff]   ;;  %v6193_v25 = vld [vmem:[#allocation14 + $0x70] sm:$0xff]  }
 0x3d4   : > { %v6223_v13 = vld [vmem:[#allocation14 + $0x128] sm:$0xff]   ;;  %v6226_v17 = vld [vmem:[#allocation14 + $0x1f0] sm:$0xff]  }
 0x3d5   : > { %v4356_v8 = vadd.f32 %v4355_v28, %v4354_v27  ;;  %5910 = vmatpush3.bf16.msra.mxu0 %v6187_v18  ;;  %v6194_v27 = vld [vmem:[#allocation14 + $0xf0] sm:$0xff]   ;;  %v6224_v14 = vld [vmem:[#allocation14 + $0x1a8] sm:$0xff]  }
 0x3d6   : > { %5932 = vmatpush3.bf16.msra.mxu1 %v6188_v20  ;;  %5911 = vmatprep.subr.bf16.mxu0 %v6189_v21  ;;  %v6195_v28 = vld [vmem:[#allocation14 + $0x30] sm:$0xff]   ;;  %v6229_v21 = vld [vmem:[#allocation14 + $0x178] sm:$0xff]  }
 0x3d7   : > { %4357 = vadd.xlane.f32.xlu0 %v4356_v8  ;;  %5933 = vmatprep.subr.bf16.mxu1 %v6190_v22  ;;  %v6196_v8 = vld [vmem:[#allocation14 + $0xb0] sm:$0xff]   ;;  %v6230_v22 = vld [vmem:[#allocation14 + $0x1f8] sm:$0xff]  }
 0x3d8   : > { %v6227_v18 = vld [vmem:[#allocation14 + $0x130] sm:$0xff]  }
 0x3d9   : > { %5912 = vmatpush3.bf16.msra.mxu0 %v6191_v23  ;;  %v6228_v20 = vld [vmem:[#allocation14 + $0x1b0] sm:$0xff]   ;;  %v6231_v23 = vld [vmem:[#allocation14 + $0x138] sm:$0xff]  }
 0x3da   : > { %5934 = vmatpush3.bf16.msra.mxu1 %v6192_v24  ;;  %5913 = vmatprep.subr.bf16.mxu0 %v6193_v25  ;;  %v6232_v24 = vld [vmem:[#allocation14 + $0x1b8] sm:$0xff]  }
 0x3db   : > { %5935 = vmatprep.subr.bf16.mxu1 %v6194_v27 }
 0x3dd   : > { %5914 = vmatpush3.bf16.msra.mxu0 %v6195_v28 }
 0x3de   : > { %5936 = vmatpush3.bf16.msra.mxu1 %v6196_v8  ;;  %5915 = vmatprep.subr.bf16.mxu0 %v6197_v30 }
 0x3df   : > { %5937 = vmatprep.subr.bf16.mxu1 %v6198_v31 }
 0x3e1   : > { %5916 = vmatpush3.bf16.msra.mxu0 %v6199_v32  ;;  %v4618_v32 = vld [vmem:[#allocation15] sm:$0x1] }
 0x3e2   : > { %5938 = vmatpush3.bf16.msra.mxu1 %v6200_v33  ;;  %5945 = vmatprep.subr.bf16.mxu0 %v6201_v35 }
 0x3e3   : > { %5967 = vmatprep.subr.bf16.mxu1 %v6202_v3 }
 0x464   : > { %v4358_v62 = vpop.xlane.xlu0 %4357 }
 0x465   : > { %v4360_v36 = vmul.f32 0.0009765625, %v4358_v62 }
 0x467   : > { %v4365_v37 = vrot.slane %v4360_v36, %v6881_v63 }
 0x469   : > { %v6921_v38 = vsub.f32 %v4299_v1, %v4365_v37 }
 0x46b   : > { %v4368_v39 = vmul.f32 %v6921_v38, %v6921_v38 }
 0x46d   : > { %v4373_v40 = vrot.slane %v4368_v39, %v6881_v63  ;;  %v4377_v41 = vrot.slane %v4368_v39, %v6884_v57  ;;  %v4381_v44 = vrot.slane %v4368_v39, %v6887_v0  ;;  %v4385_v45 = vrot.slane %v4368_v39, %v6890_v2 }
 0x46e   : > { %v4389_v29 = vrot.slane %v4368_v39, %v6896_v48  ;;  %v4393_v52 = vrot.slane %v4368_v39, %v6900_v5  ;;  %v4397_v54 = vrot.slane %v4368_v39, %v6906_v11  ;;  %v4401_v58 = vrot.slane %v4368_v39, %v6911_v15 }
 0x46f   : > { %v4410_v46 = vsel %vm4341_vm0, %v4373_v40, 0.0  ;;  %v4411_v49 = vsel %vm4341_vm0, %v4377_v41, 0.0  ;;  %v4413_v50 = vsel %vm4341_vm0, %v4381_v44, 0.0  ;;  %v4415_v53 = vsel %vm4341_vm0, %v4385_v45, 0.0  ;;  %v4437_v41 = vld [vmem:[#allocation11] sm:$0xff]  ;;  %v4439_v45 = vld [vmem:[#allocation12] sm:$0xff] }
 0x470   : > { %v4412_v34 = vadd.f32 %v4411_v49, %v4410_v46  ;;  %v4417_v55 = vsel %vm4341_vm0, %v4389_v29, 0.0  ;;  %v4419_v43 = vsel %vm4341_vm0, %v4393_v52, 0.0  ;;  %v4421_v60 = vsel %vm4341_vm0, %v4397_v54, 0.0 }
 0x471   : > { %v4423_v1 = vsel %vm4341_vm0, %v4401_v58, 0.0  ;;  %v6206_v58 = vld [vmem:[#allocation14 + $0x1c8] sm:$0xff]  }
 0x472   : > { %v4414_v51 = vadd.f32 %v4413_v50, %v4412_v34 }
 0x474   : > { %v4416_v47 = vadd.f32 %v4415_v53, %v4414_v51 }
 0x476   : > { %v4418_v56 = vadd.f32 %v4417_v55, %v4416_v47 }
 0x478   : > { %v4420_v59 = vadd.f32 %v4419_v43, %v4418_v56  ;;  %v6204_v56 = vld [vmem:[#allocation14 + $0x180] sm:$0xff]   ;;  %v6208_v43 = vld [vmem:[#allocation14 + $0x188] sm:$0xff]  }
 0x47a   : > { %v4422_v61 = vadd.f32 %v4421_v60, %v4420_v59  ;;  %v6210_v59 = vld [vmem:[#allocation14 + $0x1d0] sm:$0xff]  }
 0x47b   : > { %v6211_v60 = vld [vmem:[#allocation14 + $0x110] sm:$0xff]  }
 0x47c   : > { %v4424_v26 = vadd.f32 %v4423_v1, %v4422_v61  ;;  %v6212_v61 = vld [vmem:[#allocation14 + $0x190] sm:$0xff]   ;;  %v6213_v1 = vld [vmem:[#allocation14 + $0x158] sm:$0xff]  }
 0x47e   : > { %4425 = vadd.xlane.f32.xlu0 %v4424_v26  ;;  %v6214_v26 = vld [vmem:[#allocation14 + $0x1d8] sm:$0xff]  }
 0x50b   : > { %v4426_v62 = vpop.xlane.xlu0 %4425 }
 0x50c   : > { %v4427_v36 = vmul.f32 0.0009765625, %v4426_v62 }
 0x50e   : > { %v4428_v37 = vadd.f32 1e-05, %v4427_v36 }
 0x510   : > { %6233 = vrsqrt.f32 %v4428_v37 }
 0x51a   : > { %v6234_v39 = vpop.eup %6233 }
 0x51b   : > { %v4434_v40 = vrot.slane %v6234_v39, %v6881_v63 }
 0x51d   : > { %v4436_v44 = vmul.f32 %v4434_v40, %v6921_v38 }
 0x51f   : > { %v4438_v46 = vmul.f32 %v4437_v41, %v4436_v44 }
 0x521   : > { %v6943_v49 = vadd.f32 %v4439_v45, %v4438_v46 }
 0x523   : > { %v4449_v34 = vrot.slane %v6943_v49, %v6884_v57  ;;  %v4457_v29 = vrot.slane %v6943_v49, %v6890_v2  ;;  %v4445_v50 = vrot.slane %v6943_v49, %v6881_v63  ;;  %v4453_v51 = vrot.slane %v6943_v49, %v6887_v0  ;;  %v6203_v57 = vld [vmem:[#allocation14 + $0x100] sm:$0xff]   ;;  %v6205_v2 = vld [vmem:[#allocation14 + $0x148] sm:$0xff]  }
 0x524   : > { %v4465_v52 = vrot.slane %v6943_v49, %v6900_v5  ;;  %v4473_v38 = vrot.slane %v6943_v49, %v6911_v15  ;;  %v6207_v5 = vld [vmem:[#allocation14 + $0x108] sm:$0xff]   ;;  %v6209_v15 = vld [vmem:[#allocation14 + $0x150] sm:$0xff]   ;;  %v4461_v25 = vrot.slane %v6943_v49, %v6896_v48  ;;  %v4469_v27 = vrot.slane %v6943_v49, %v6906_v11 }
 0x525   : > { %v4483_v53 = vpack.c.bf16 %v4449_v34, %v4449_v34  ;;  %v4485_v47 = vpack.c.bf16 %v4457_v29, %v4457_v29  ;;  %v4482_v54 = vpack.c.bf16 %v4445_v50, %v4445_v50  ;;  %v4484_v55 = vpack.c.bf16 %v4453_v51, %v4453_v51 }
 0x526   : > { %v4487_v63 = vpack.c.bf16 %v4465_v52, %v4465_v52  ;;  %v4489_v0 = vpack.c.bf16 %v4473_v38, %v4473_v38  ;;  %v4486_v28 = vpack.c.bf16 %v4461_v25, %v4461_v25  ;;  %v4488_v8 = vpack.c.bf16 %v4469_v27, %v4469_v27 }
 0x527   : > { %5035 = vmatprep.mubr.bf16.mxu0 %v4483_v53  ;;  %5075 = vmatprep.mubr.bf16.mxu1 %v4485_v47 }
 0x528   : > { %5036 = vmatmul.mubr.bf16.vlgmr.msra.gmra.mrb[8].mxu0 %v4482_v54  ;;  %5076 = vmatmul.mubr.bf16.vlgmr.msra.gmra.mrb[8].mxu1 %v4484_v55 }
 0x529   : > { %5946 = vmatpush3.bf16.msra.mxu0 %v6203_v57  ;;  %5968 = vmatpush3.bf16.msra.mxu1 %v6204_v56 }
 0x52a   : > { %5115 = vmatprep.mubr.bf16.mxu0 %v4487_v63  ;;  %5155 = vmatprep.mubr.bf16.mxu1 %v4489_v0 }
 0x52b   : > { %5947 = vmatprep.subr.bf16.mxu0 %v6205_v2  ;;  %5969 = vmatprep.subr.bf16.mxu1 %v6206_v58 }
 0x52d   : > { %5948 = vmatpush3.bf16.msra.mxu0 %v6207_v5  ;;  %5970 = vmatpush3.bf16.msra.mxu1 %v6208_v43 }
 0x52e   : > { %5949 = vmatprep.subr.bf16.mxu0 %v6209_v15  ;;  %5971 = vmatprep.subr.bf16.mxu1 %v6210_v59 }
 0x531   : > { %5950 = vmatpush3.bf16.msra.mxu0 %v6211_v60  ;;  %5972 = vmatpush3.bf16.msra.mxu1 %v6212_v61 }
 0x532   : > { %5951 = vmatprep.subr.bf16.mxu0 %v6213_v1  ;;  %5973 = vmatprep.subr.bf16.mxu1 %v6214_v26 }
 0x535   : > { %5952 = vmatpush3.bf16.msra.mxu0 %v6215_v19  ;;  %5974 = vmatpush3.bf16.msra.mxu1 %v6216_v42 }
 0x536   : > { %5953 = vmatprep.subr.bf16.mxu0 %v6217_v4  ;;  %5975 = vmatprep.subr.bf16.mxu1 %v6218_v6 }
 0x539   : > { %5954 = vmatpush3.bf16.msra.mxu0 %v6219_v7  ;;  %5976 = vmatpush3.bf16.msra.mxu1 %v6220_v9 }
 0x53a   : > { %5955 = vmatprep.subr.bf16.mxu0 %v6221_v10  ;;  %5977 = vmatprep.subr.bf16.mxu1 %v6222_v12 }
 0x53d   : > { %5956 = vmatpush3.bf16.msra.mxu0 %v6223_v13  ;;  %5978 = vmatpush3.bf16.msra.mxu1 %v6224_v14 }
 0x53e   : > { %5957 = vmatprep.subr.bf16.mxu0 %v6225_v16  ;;  %5979 = vmatprep.subr.bf16.mxu1 %v6226_v17 }
 0x541   : > { %5958 = vmatpush3.bf16.msra.mxu0 %v6227_v18  ;;  %5980 = vmatpush3.bf16.msra.mxu1 %v6228_v20 }
 0x542   : > { %5959 = vmatprep.subr.bf16.mxu0 %v6229_v21  ;;  %5981 = vmatprep.subr.bf16.mxu1 %v6230_v22 }
 0x545   : > { %5960 = vmatpush3.bf16.msra.mxu0 %v6231_v23  ;;  %5982 = vmatpush3.bf16.msra.mxu1 %v6232_v24 }
 0x548   : > { %5116 = vmatmul.mubr.bf16.vlgmr.msra.gmra.mrb[12].mxu0 %v4486_v28  ;;  %5156 = vmatmul.mubr.bf16.vlgmr.msra.gmra.mrb[12].mxu1 %v4488_v8 }
 0x5fb   : > { %v5917_v30 = vpop.f32.mrb[8].mxu0  ;;  %v5939_v31 = vpop.f32.mrb[8].mxu1 }
 0x5fc   : > { %v5918_v33 = vpop.f32.mrb[9].mxu0  ;;  %v5940_v35 = vpop.f32.mrb[9].mxu1 }
 0x5fd   : > { %v5919_v3 = vadd.f32 %v5918_v33, %v5917_v30  ;;  %v5941_v62 = vadd.f32 %v5940_v35, %v5939_v31  ;;  %v5920_v36 = vpop.f32.mrb[10].mxu0  ;;  %v5942_v37 = vpop.f32.mrb[10].mxu1 }
 0x5fe   : > { %v5921_v48 = vpop.f32.mrb[11].mxu0  ;;  %v5943_v39 = vpop.f32.mrb[11].mxu1 }
 0x5ff   : > { %v5038_v11 = vadd.f32 %v5919_v3, %v4618_v32 }
 0x601   : > { %v5078_v40 = vadd.f32 %v5941_v62, %v5038_v11 }
 0x61b   : > { %v5961_v41 = vpop.f32.mrb[12].mxu0  ;;  %v5983_v44 = vpop.f32.mrb[12].mxu1 }
 0x61c   : > { %v5962_v45 = vpop.f32.mrb[13].mxu0  ;;  %v5984_v46 = vpop.f32.mrb[13].mxu1 }
 0x61d   : > { %v5963_v49 = vadd.f32 %v5962_v45, %v5961_v41  ;;  %v5985_v34 = vadd.f32 %v5984_v46, %v5983_v44  ;;  %v5964_v29 = vpop.f32.mrb[14].mxu0  ;;  %v5986_v50 = vpop.f32.mrb[14].mxu1 }
 0x61e   : > { %v5965_v51 = vpop.f32.mrb[15].mxu0  ;;  %v5987_v52 = vpop.f32.mrb[15].mxu1 }
 0x61f   : > { %v5118_v38 = vadd.f32 %v5963_v49, %v5078_v40 }
 0x621   : > { %v5158_v53 = vadd.f32 %v5985_v34, %v5118_v38 }
 0x623   : > { %5163 = vst [vmem:[%s6809_s25] sm:$0x1] %v5158_v53 }
 0x624   : > { %6426 = shalt.err (!%p6423_p9)
}
 0x625   : > { %s6427_s25 = scalar_lea.hbm %s6966_s23, 16  ;;  %s6431_s16 = scalar_lea.hbm %s7023_s7, 32 }
 0x626   : > { %p6428_p10 = scmp.ne.s32.totalorder %s6966_s23, %s6427_s25  ;;  %p6432_p3 = scmp.lt.u32.totalorder %s6966_s23, %s7023_s7 }
 0x627   : > { %p6433_p7 = scmp.lt.u32.totalorder %s6431_s16, %s6427_s25  ;;  %p6435_p4 = scmp.lt.u32.totalorder %s6427_s25, %s6966_s23 }
 0x628   : > { %p6429_p12 = pnand %p6428_p10, %p7045_p11 }
 0x629   : > { %p6434_p2 = por %p6433_p7, %p6432_p3 }
 0x62a   : > { %p6430_p1 = pneg %p6429_p12 }
 0x62b   : > { %p6436_p13 = por %p6435_p4, %p6434_p2 }
 0x62d   : > { %p6437_p0 = pnand %p6436_p13, %p6430_p1 }
 0x62f   : > { %6440 = shalt.err (!%p6437_p0)
}
 0x630   : > { %6061 = dma.vmem_to_hbm [thread:$0]  (%p7045_p11), %s6968_s28, 16, %s6966_s23, %s5165_s10  }
 0x631 PF: > { %p6098_p5 = scmp.ge.s32.totalorder %s6513_s0, 2  ;;  %s5189_s8 = sand.u32 1, %s6493_s11  }
 0x632   : > { %p7046_p6 = scmp.ne.s32.totalorder %s7035_s22, 0  ;;  %s5190_s27 = scalar_lea.sflag [#allocation8], %s5189_s8 }
 0x634   : > { %p6083_p8 = pnand %p6098_p5, %p7046_p6 }
 0x636   : > { %6488 = dma.done.wait (!%p6083_p8), %s5190_s27, 16  }
 0x637   : > { %6490 = vsyncadd (!%p6083_p8), %s5190_s27, 4294967280  ;;  %s28_s0 = sadd.s32 1, %s6513_s0   ;;  %s7047_s20 = sld [smem:[#allocation26_spill]] }
 0x638   : > { %p25_p9 = scmp.ge.s32.totalorder %s28_s0, 4   ;;  %s7048_s14 = sld [smem:[#allocation24_spill]] }
 0x639   : > { %s7049_s15 = sld [smem:[#allocation25_spill]]  ;;  %s7050_s11 = smov %s6497_s12 }
 0x63a   : > { %s7051_s12 = smov %s6501_s13  ;;  %27 = sbr.rel (!%p25_p9) target bundleno = 20 (0x14), region = 133 }
 0x63d   : > { %s7052_s13 = smov %s7047_s20 }
 0x641   :  { %5194 = vsyncpa [#allocation7], 1 }
 0x642   :  { %5196 = vsyncpa [#allocation7 + $0x1], 1 }
 0x643   :  { %5197 = vsyncpa [#allocation10], 1 }
 0x644   :  { %5198 = vsyncpa [#allocation13], 1 }
 0x645   :  { %5199 = vsyncpa [#allocation16], 1 }
 0x646   :  { %5200 = vsyncpa [#allocation8], 1 }
 0x647   :  { %5202 = vsyncpa [#allocation8 + $0x1], 1 }

</bundles_post_ra>
